<compile_context>
chip_gen: v5e
topology: v5e:2x2
jax: 0.10.0
libtpu: 0.0.40
codegen_flags: <defaults>
</compile_context>

<pallas_src>
import math
from functools import partial

import jax
import jax.numpy as jnp
from jax import lax
from jax.experimental import pallas as pl
from jax.experimental.pallas import tpu as pltpu

HEAD = 4
D_MODEL = 32
D_K = D_MODEL // HEAD
T_OBS = 8

VMEM = pltpu.MemorySpace.VMEM
SMEM = pltpu.MemorySpace.SMEM


# ---------------------------- Pallas kernels ----------------------------

def _linear_kernel(x_ref, w_ref, b_ref, o_ref, *, relu):
    y = jnp.dot(x_ref[...], w_ref[...], preferred_element_type=jnp.float32) + b_ref[...]
    if relu:
        y = jnp.maximum(y, 0.0)
    o_ref[...] = y


def pallas_linear(x, w, b, relu=False):
    m = x.shape[0]
    n = w.shape[1]
    return pl.pallas_call(
        partial(_linear_kernel, relu=relu),
        out_shape=jax.ShapeDtypeStruct((m, n), jnp.float32),
        in_specs=[pl.BlockSpec(memory_space=VMEM)] * 3,
        out_specs=pl.BlockSpec(memory_space=VMEM),
    )(x, w, b)


def _com_attention_kernel(feat_ref, data_ref, blk_ref, beff_ref,
                          w_in_ref, b_in_ref, wo_ref, bo_ref,
                          w_tail_ref, b_tail_ref, o_ref):
    """Whole ComAttention block on a (N, 32) feature slab, N = B*S."""
    D, H, DK = D_MODEL, HEAD, D_K
    feat = feat_ref[...]                                              # (N, D)

    # single fused input projection:
    # columns = [q_gate(scaled) | k_gate | q_p k_p v_p | q_n k_n v_n]  -> (N, 8D)
    proj = jnp.dot(feat, w_in_ref[...], preferred_element_type=jnp.float32) + b_in_ref[...]

    def qk(q_off, k_off, width):
        q = proj[:, q_off:q_off + width]
        k = proj[:, k_off:k_off + width]
        return lax.dot_general(q, k, (((1,), (1,)), ((), ())),
                               preferred_element_type=jnp.float32)     # (N, N)

    # ---- stage A: soft gating map.  The 3 stacked 1x1 convs (no nonlinearity
    # between them) compose into one affine map over the head channel; its
    # weights and the 1/sqrt(d_k) score scale are folded into the q_gate
    # columns, so one full-width contraction + b_eff gives the conv output. ----
    sig = jax.nn.sigmoid(qk(0, D, D) + beff_ref[0])                   # (N, N)
    data = data_ref[...]          # block-diagonal data_mask
    blk = blk_ref[...]            # block-diagonal ones (same-batch indicator)
    p_mask = jnp.where(sig > 0.5, sig, 0.0) * data
    n_mask = jnp.where(sig <= 0.5, sig, 0.0) * data

    neg_mask = jnp.float32(-1e9)    # reference masked_fill value (in-batch, masked)
    neg_blk = jnp.float32(-1e30)    # cross-batch: never attended, even if a row is fully masked

    # ---- stage B: dual masked multi-head attention (p / n branches) ----
    branch_outs = []
    for br, mask in ((0, p_mask), (1, n_mask)):
        base = 2 * D + br * 3 * D
        heads = []
        for h in range(H):
            s = qk(base + h * DK, base + D + h * DK, DK)              # 1/sqrt(d_k) pre-folded
            s = jnp.where(mask == 0.0, neg_mask, s)
            s = jnp.where(blk == 0.0, neg_blk, s)
            s = s - jnp.max(s, axis=-1, keepdims=True)
            e = jnp.exp(s)
            p_attn = e * pl.reciprocal(jnp.sum(e, axis=-1, keepdims=True), approx=True)
            v = proj[:, base + 2 * D + h * DK: base + 2 * D + (h + 1) * DK]
            heads.append(jnp.dot(p_attn, v, preferred_element_type=jnp.float32))
        branch_outs.append(jnp.concatenate(heads, axis=-1))           # (N, D)

    pn = jnp.concatenate(branch_outs, axis=-1)                        # (N, 2D)
    pn = jnp.dot(pn, wo_ref[...], preferred_element_type=jnp.float32) + bo_ref[...]

    # ---- stage C: [vp | vn | ep | en] in one 128-lane matmul, then 2-way softmax gate ----
    t = jnp.dot(pn, w_tail_ref[...], preferred_element_type=jnp.float32) + b_tail_ref[...]
    vp, vn = t[:, 0:D], t[:, D:2 * D]
    ep, en = t[:, 2 * D:3 * D], t[:, 3 * D:4 * D]
    m = jnp.maximum(ep, en)
    a = jnp.exp(ep - m)
    c = jnp.exp(en - m)
    o_ref[...] = (vp * a + vn * c) * pl.reciprocal(a + c, approx=True)


def fused_com_attention(cp, feature, mask2d):
    """feature: (B, S, 32); mask2d: (S, S) shared across the batch dim."""
    B, S, D = feature.shape
    n = B * S
    eye_b = jnp.eye(B, dtype=jnp.float32)
    data_full = jnp.kron(eye_b, mask2d.astype(jnp.float32))           # (N, N)
    batch_blk = jnp.kron(eye_b, jnp.ones((S, S), jnp.float32))        # (N, N)
    out = pl.pallas_call(
        _com_attention_kernel,
        out_shape=jax.ShapeDtypeStruct((n, D), jnp.float32),
        in_specs=[pl.BlockSpec(memory_space=VMEM),    # feature (flattened)
                  pl.BlockSpec(memory_space=VMEM),    # data_full
                  pl.BlockSpec(memory_space=VMEM),    # batch_blk
                  pl.BlockSpec(memory_space=SMEM),    # b_eff scalar
                  pl.BlockSpec(memory_space=VMEM),    # w_in  (32, 256)
                  pl.BlockSpec(memory_space=VMEM),    # b_in  (1, 256)
                  pl.BlockSpec(memory_space=VMEM),    # wo    (64, 64)
                  pl.BlockSpec(memory_space=VMEM),    # bo    (1, 64)
                  pl.BlockSpec(memory_space=VMEM),    # w_tail(64, 128)
                  pl.BlockSpec(memory_space=VMEM)],   # b_tail(1, 128)
        out_specs=pl.BlockSpec(memory_space=VMEM),
    )(feature.reshape(n, D), data_full, batch_blk, cp["b_eff"],
      cp["w_in"], cp["b_in"], cp["wo"], cp["bo"], cp["w_tail"], cp["b_tail"])
    return out.reshape(B, S, D)


def _spa_kernel(tf_ref, pos_ref, w_tf_ref, w_pos_ref, b_ref, o_ref):
    # add_spa(cat(temporal_feature, initial_pos)) without the concat:
    y = jnp.dot(tf_ref[...], w_tf_ref[...], preferred_element_type=jnp.float32)
    y = y + jnp.dot(pos_ref[...], w_pos_ref[...], preferred_element_type=jnp.float32)
    o_ref[...] = y + b_ref[...]


def pallas_spa(tf, pos, sp):
    m = tf.shape[0]
    n = sp["w_tf"].shape[1]
    return pl.pallas_call(
        _spa_kernel,
        out_shape=jax.ShapeDtypeStruct((m, n), jnp.float32),
        in_specs=[pl.BlockSpec(memory_space=VMEM)] * 5,
        out_specs=pl.BlockSpec(memory_space=VMEM),
    )(tf, pos, sp["w_tf"], sp["w_pos"], sp["b"])


def _mlp_head_kernel(*refs, relu):
    x_ref, o_ref = refs[0], refs[-1]
    wb = refs[1:-1]
    x = x_ref[...]
    for i in range(len(wb) // 2):
        x = jnp.dot(x, wb[2 * i][...], preferred_element_type=jnp.float32) + wb[2 * i + 1][...]
        if relu[i]:
            x = jnp.maximum(x, 0.0)
    o_ref[...] = x


def pallas_mlp_head(x, layers, relu):
    flat = []
    for w, b in layers:
        flat.extend((w, b))
    n_out = layers[-1][0].shape[1]
    return pl.pallas_call(
        partial(_mlp_head_kernel, relu=tuple(relu)),
        out_shape=jax.ShapeDtypeStruct((x.shape[0], n_out), jnp.float32),
        in_specs=[pl.BlockSpec(memory_space=VMEM)] * (1 + len(flat)),
        out_specs=pl.BlockSpec(memory_space=VMEM),
    )(x, *flat)


# ---------------------------- model glue (plain JAX) ----------------------------

# TODO(synk): MLP class source not provided; PECNet-style MLP assumed
# (ReLU between hidden layers, none after the MLP's last layer or the head Linear).
RELU_PATTERN = (True, True, True, False, False)


def past_encoder(p, traj, initial_pos, scene_mask2d):
    peds = traj.shape[0]
    obs = pallas_linear(traj.reshape(peds * T_OBS, 2),
                        p["embed_w"], p["embed_b"]).reshape(peds, T_OBS, D_MODEL)
    # TODO(synk): subsequent_mask source not provided; standard causal (lower-tri) mask assumed.
    temporal_mask = jnp.tril(jnp.ones((T_OBS, T_OBS), jnp.float32))   # shared across peds

    def block(tr, sr, spa, feat_in):
        tf = fused_com_attention(tr, feat_in, temporal_mask) + obs
        tf = pallas_spa(tf.reshape(peds, T_OBS * D_MODEL), initial_pos, spa)
        tf = tf.reshape(peds, T_OBS, D_MODEL).transpose(1, 0, 2)       # (8, peds, 32)
        feat = fused_com_attention(sr, tf, scene_mask2d)
        return feat.transpose(1, 0, 2) + obs

    feat = block(p["TR"], p["SR"], p["add_spa"], obs)
    feat = block(p["TR2"], p["SR2"], p["add_spa2"], feat)
    return feat


def model_forward(p, traj, initial_pos, scene_mask, dest_gt):
    peds = traj.shape[0]
    pf = past_encoder(p, traj, initial_pos, scene_mask[0]).reshape(peds, -1)   # (peds, 256)
    multi_dest = pallas_mlp_head(pf, p["gen_dest"], RELU_PATTERN).reshape(-1, 20, 5)
    other_in = jnp.concatenate([traj, dest_gt], axis=1).reshape(-1, 18)
    others = pallas_mlp_head(other_in, p["gen_others"], RELU_PATTERN).reshape(-1, 11, 2)
    return multi_dest, others


# ---------------------------- deterministic parameter init & packing ----------------------------

def _lin(kg, fin, fout):
    lim = 1.0 / math.sqrt(fin)
    w = jax.random.uniform(next(kg), (fin, fout), jnp.float32, -lim, lim)
    b = jax.random.uniform(next(kg), (1, fout), jnp.float32, -lim, lim)
    return w, b


def _mha_params(kg, d):
    # TODO(synk): MultiHeadedAttention source not provided; standard
    # annotated-transformer variant assumed (masked_fill(mask==0, -1e9)).
    p = {}
    for nm in ("q", "k", "v", "o"):
        w, b = _lin(kg, d, d)
        p["w" + nm] = w
        p["b" + nm] = b
    return p


def _com_params(kg, head, d):
    p = {}
    p["q_w"], p["q_b"] = _lin(kg, d, d)
    p["k_w"], p["k_b"] = _lin(kg, d, d)
    p["f1_w"], p["f1_b"] = _lin(kg, head, 2 * head)     # Conv2d(head, 2*head, 1)
    p["f2_w"], p["f2_b"] = _lin(kg, 2 * head, head)     # Conv2d(2*head, head, 1)
    p["f3_w"], p["f3_b"] = _lin(kg, head, 1)            # Conv2d(head, 1, 1)
    p["p_attn"] = _mha_params(kg, d)
    p["n_attn"] = _mha_params(kg, d)
    p["gn_w"], p["gn_b"] = _lin(kg, d, d)
    p["gp_w"], p["gp_b"] = _lin(kg, d, d)
    p["vn_w"], p["vn_b"] = _lin(kg, d, d)
    p["vp_w"], p["vp_b"] = _lin(kg, d, d)
    return p


def _mlp_params(kg, fin, fout, hidden):
    dims = [fin] + list(hidden) + [fout]
    return [_lin(kg, dims[i], dims[i + 1]) for i in range(len(dims) - 1)]


def _pack_com(cp):
    """Fold the ComAttention block's weights into the fused-kernel layout."""
    d, dk = D_MODEL, D_K
    scale = 1.0 / math.sqrt(dk)
    # The 3 stacked 1x1 convs have no nonlinearity between them => compose into
    # a single affine map over the head channel.
    w_eff = cp["f1_w"] @ cp["f2_w"] @ cp["f3_w"]                               # (H, 1)
    b_eff = (cp["f1_b"] @ cp["f2_w"] @ cp["f3_w"]
             + cp["f2_b"] @ cp["f3_w"] + cp["f3_b"])                           # (1, 1)
    col_scale = jnp.repeat(w_eff[:, 0], dk) * scale                            # per-column fold
    pa, na = cp["p_attn"], cp["n_attn"]
    w_in = jnp.concatenate(
        [cp["q_w"] * col_scale[None, :], cp["k_w"],
         pa["wq"] * scale, pa["wk"], pa["wv"],
         na["wq"] * scale, na["wk"], na["wv"]], axis=1)                        # (32, 256)
    b_in = jnp.concatenate(
        [cp["q_b"] * col_scale[None, :], cp["k_b"],
         pa["bq"] * scale, pa["bk"], pa["bv"],
         na["bq"] * scale, na["bk"], na["bv"]], axis=1)                        # (1, 256)
    z = jnp.zeros((d, d), jnp.float32)
    wo = jnp.concatenate([jnp.concatenate([pa["wo"], z], axis=1),
                          jnp.concatenate([z, na["wo"]], axis=1)], axis=0)     # (64, 64)
    bo = jnp.concatenate([pa["bo"], na["bo"]], axis=1)                         # (1, 64)
    # NOTE: reference bug reproduced — gate_p is used for BOTH ep and en (gate_n unused).
    top = jnp.concatenate([cp["vp_w"], z, cp["gp_w"], z], axis=1)
    bot = jnp.concatenate([z, cp["vn_w"], z, cp["gp_w"]], axis=1)
    w_tail = jnp.concatenate([top, bot], axis=0)                               # (64, 128)
    b_tail = jnp.concatenate([cp["vp_b"], cp["vn_b"], cp["gp_b"], cp["gp_b"]], axis=1)  # (1, 128)
    return {"b_eff": b_eff.reshape(1), "w_in": w_in, "b_in": b_in,
            "wo": wo, "bo": bo, "w_tail": w_tail, "b_tail": b_tail}


def init_params(seed=42):
    key = jax.random.PRNGKey(seed)

    def gen():
        i = 0
        while True:
            i += 1
            yield jax.random.fold_in(key, i)

    kg = gen()
    raw = {}
    raw["embed_w"], raw["embed_b"] = _lin(kg, 2, D_MODEL)
    raw["TR"] = _com_params(kg, HEAD, D_MODEL)
    raw["SR"] = _com_params(kg, HEAD, D_MODEL)
    raw["TR2"] = _com_params(kg, HEAD, D_MODEL)
    raw["SR2"] = _com_params(kg, HEAD, D_MODEL)
    raw["add_spa_w"], raw["add_spa_b"] = _lin(kg, 258, 256)
    raw["add_spa2_w"], raw["add_spa2_b"] = _lin(kg, 258, 256)
    raw["gen_others_mlp"] = _mlp_params(kg, 18, 64, [128, 256, 128])
    raw["gen_others_out"] = _lin(kg, 64, 22)
    raw["gen_dest_mlp"] = _mlp_params(kg, 256, 64, [128, 256, 128])
    raw["gen_dest_out"] = _lin(kg, 64, 100)
    # embed2 / DisGate are constructed in the reference but never used in forward.

    p = {"embed_w": raw["embed_w"], "embed_b": raw["embed_b"]}
    for name in ("TR", "SR", "TR2", "SR2"):
        p[name] = _pack_com(raw[name])
    split = T_OBS * D_MODEL
    p["add_spa"] = {"w_tf": raw["add_spa_w"][:split], "w_pos": raw["add_spa_w"][split:],
                    "b": raw["add_spa_b"]}
    p["add_spa2"] = {"w_tf": raw["add_spa2_w"][:split], "w_pos": raw["add_spa2_w"][split:],
                     "b": raw["add_spa2_b"]}
    p["gen_dest"] = list(raw["gen_dest_mlp"]) + [raw["gen_dest_out"]]
    p["gen_others"] = list(raw["gen_others_mlp"]) + [raw["gen_others_out"]]
    return p


# ---------------------------- main ----------------------------

if __name__ == "__main__":
    peds = 6
    params = init_params(42)

    key = jax.random.PRNGKey(0)
    k1, k2, k3 = jax.random.split(key, 3)
    traj = jax.random.normal(k1, (peds, 8, 2), jnp.float32)
    initial_pos = jax.random.normal(k2, (peds, 2), jnp.float32)
    scene_mask = jnp.ones((1, peds, peds), jnp.float32)
    dest_gt = jax.random.normal(k3, (peds, 1, 2), jnp.float32)

    fwd = jax.jit(model_forward)
    multi_dest, others = fwd(params, traj, initial_pos, scene_mask, dest_gt)
    jax.block_until_ready((multi_dest, others))
    assert multi_dest.shape == (peds, 20, 5), multi_dest.shape
    assert others.shape == (peds, 11, 2), others.shape
    print("KERNEL_OK")
</pallas_src>

<mosaic_0001>
module attributes {stable_mosaic.version = 11 : i64} {
  func.func @_linear_kernel(%arg0: memref<48x2xf32, #tpu.memory_space<vmem>>, %arg1: memref<2x32xf32, #tpu.memory_space<vmem>>, %arg2: memref<1x32xf32, #tpu.memory_space<vmem>>, %arg3: memref<48x32xf32, #tpu.memory_space<vmem>>) attributes {dimension_semantics = [], scalar_prefetch = 0 : i64, scratch_operands = 0 : i64, tpu.core_type = #tpu.core_type<tc>} {
    %c0 = arith.constant 0 : index
    %c0_0 = arith.constant 0 : index
    %0 = vector.load %arg0[%c0, %c0_0] : memref<48x2xf32, #tpu.memory_space<vmem>>, vector<48x2xf32>
    %c0_1 = arith.constant 0 : index
    %c0_2 = arith.constant 0 : index
    %1 = vector.load %arg1[%c0_1, %c0_2] : memref<2x32xf32, #tpu.memory_space<vmem>>, vector<2x32xf32>
    %cst = arith.constant dense<0.000000e+00> : vector<48x32xf32>
    %2 = tpu.matmul %0, %1, %cst {dimension_numbers = #tpu.dot_dimension_numbers<[1], [0], [0], [1], [0, 0, 1, 1], [], []>} : vector<48x2xf32>, vector<2x32xf32>, vector<48x32xf32> -> vector<48x32xf32>
    %c0_3 = arith.constant 0 : index
    %c0_4 = arith.constant 0 : index
    %3 = vector.load %arg2[%c0_3, %c0_4] : memref<1x32xf32, #tpu.memory_space<vmem>>, vector<1x32xf32>
    %4 = vector.broadcast %3 : vector<1x32xf32> to vector<48x32xf32>
    %5 = arith.addf %2, %4 : vector<48x32xf32>
    %c0_5 = arith.constant 0 : index
    %c0_6 = arith.constant 0 : index
    %6 = vector.load %arg3[%c0_5, %c0_6] : memref<48x32xf32, #tpu.memory_space<vmem>>, vector<48x32xf32>
    tpu.vector_store %arg3[%c0_5, %c0_6], %5 {strides = array<i32>} : memref<48x32xf32, #tpu.memory_space<vmem>>, vector<48x32xf32>,
    return
  }
}

module attributes {stable_mosaic.version = 11 : i64} {
  func.func @_com_attention_kernel(%arg0: memref<48x32xf32, #tpu.memory_space<vmem>>, %arg1: memref<48x48xf32, #tpu.memory_space<vmem>>, %arg2: memref<48x48xf32, #tpu.memory_space<vmem>>, %arg3: memref<1xf32, #tpu.memory_space<smem>>, %arg4: memref<32x256xf32, #tpu.memory_space<vmem>>, %arg5: memref<1x256xf32, #tpu.memory_space<vmem>>, %arg6: memref<64x64xf32, #tpu.memory_space<vmem>>, %arg7: memref<1x64xf32, #tpu.memory_space<vmem>>, %arg8: memref<64x128xf32, #tpu.memory_space<vmem>>, %arg9: memref<1x128xf32, #tpu.memory_space<vmem>>, %arg10: memref<48x32xf32, #tpu.memory_space<vmem>>) attributes {dimension_semantics = [], scalar_prefetch = 0 : i64, scratch_operands = 0 : i64, tpu.core_type = #tpu.core_type<tc>} {
    %c0 = arith.constant 0 : index
    %c0_0 = arith.constant 0 : index
    %0 = vector.load %arg0[%c0, %c0_0] : memref<48x32xf32, #tpu.memory_space<vmem>>, vector<48x32xf32>
    %c0_1 = arith.constant 0 : index
    %c0_2 = arith.constant 0 : index
    %1 = vector.load %arg4[%c0_1, %c0_2] : memref<32x256xf32, #tpu.memory_space<vmem>>, vector<32x256xf32>
    %cst = arith.constant dense<0.000000e+00> : vector<48x256xf32>
    %2 = tpu.matmul %0, %1, %cst {dimension_numbers = #tpu.dot_dimension_numbers<[1], [0], [0], [1], [0, 0, 1, 1], [], []>} : vector<48x32xf32>, vector<32x256xf32>, vector<48x256xf32> -> vector<48x256xf32>
    %c0_3 = arith.constant 0 : index
    %c0_4 = arith.constant 0 : index
    %3 = vector.load %arg5[%c0_3, %c0_4] : memref<1x256xf32, #tpu.memory_space<vmem>>, vector<1x256xf32>
    %4 = vector.broadcast %3 : vector<1x256xf32> to vector<48x256xf32>
    %5 = arith.addf %2, %4 : vector<48x256xf32>
    %6 = vector.extract_strided_slice %5 {offsets = [0, 0], sizes = [48, 32], strides = [1, 1]} : vector<48x256xf32> to vector<48x32xf32>
    %7 = vector.extract_strided_slice %5 {offsets = [0, 32], sizes = [48, 32], strides = [1, 1]} : vector<48x256xf32> to vector<48x32xf32>
    %cst_5 = arith.constant dense<0.000000e+00> : vector<48x48xf32>
    %8 = tpu.matmul %6, %7, %cst_5 {dimension_numbers = #tpu.dot_dimension_numbers<[1], [1], [0], [0], [0, 0, 1, 0], [], []>} : vector<48x32xf32>, vector<48x32xf32>, vector<48x48xf32> -> vector<48x48xf32>
    %c0_6 = arith.constant 0 : index
    %9 = memref.load %arg3[%c0_6] : memref<1xf32, #tpu.memory_space<smem>>
    %10 = vector.broadcast %9 : f32 to vector<48x48xf32>
    %11 = arith.addf %8, %10 : vector<48x48xf32>
    %12 = arith.negf %11 : vector<48x48xf32>
    %13 = math.exp %12 : vector<48x48xf32>
    %cst_7 = arith.constant 1.000000e+00 : f32
    %14 = vector.broadcast %cst_7 : f32 to vector<48x48xf32>
    %15 = arith.addf %14, %13 : vector<48x48xf32>
    %16 = arith.divf %14, %15 : vector<48x48xf32>
    %c0_8 = arith.constant 0 : index
    %c0_9 = arith.constant 0 : index
    %17 = vector.load %arg1[%c0_8, %c0_9] : memref<48x48xf32, #tpu.memory_space<vmem>>, vector<48x48xf32>
    %c0_10 = arith.constant 0 : index
    %c0_11 = arith.constant 0 : index
    %18 = vector.load %arg2[%c0_10, %c0_11] : memref<48x48xf32, #tpu.memory_space<vmem>>, vector<48x48xf32>
    %cst_12 = arith.constant 5.000000e-01 : f32
    %19 = vector.broadcast %cst_12 : f32 to vector<48x48xf32>
    %20 = arith.cmpf ogt, %16, %19 : vector<48x48xf32>
    %cst_13 = arith.constant 0.000000e+00 : f32
    %21 = vector.broadcast %cst_13 : f32 to vector<48x48xf32>
    %22 = arith.select %20, %16, %21 : vector<48x48xi1>, vector<48x48xf32>
    %23 = arith.mulf %22, %17 : vector<48x48xf32>
    %cst_14 = arith.constant 5.000000e-01 : f32
    %24 = vector.broadcast %cst_14 : f32 to vector<48x48xf32>
    %25 = arith.cmpf ole, %16, %24 : vector<48x48xf32>
    %cst_15 = arith.constant 0.000000e+00 : f32
    %26 = vector.broadcast %cst_15 : f32 to vector<48x48xf32>
    %27 = arith.select %25, %16, %26 : vector<48x48xi1>, vector<48x48xf32>
    %28 = arith.mulf %27, %17 : vector<48x48xf32>
    %29 = vector.extract_strided_slice %5 {offsets = [0, 64], sizes = [48, 8], strides = [1, 1]} : vector<48x256xf32> to vector<48x8xf32>
    %30 = vector.extract_strided_slice %5 {offsets = [0, 96], sizes = [48, 8], strides = [1, 1]} : vector<48x256xf32> to vector<48x8xf32>
    %cst_16 = arith.constant dense<0.000000e+00> : vector<48x48xf32>
    %31 = tpu.matmul %29, %30, %cst_16 {dimension_numbers = #tpu.dot_dimension_numbers<[1], [1], [0], [0], [0, 0, 1, 0], [], []>} : vector<48x8xf32>, vector<48x8xf32>, vector<48x48xf32> -> vector<48x48xf32>
    %cst_17 = arith.constant 0.000000e+00 : f32
    %32 = vector.broadcast %cst_17 : f32 to vector<48x48xf32>
    %33 = arith.cmpf oeq, %23, %32 : vector<48x48xf32>
    %cst_18 = arith.constant -1.000000e+09 : f32
    %34 = vector.broadcast %cst_18 : f32 to vector<48x48xf32>
    %35 = arith.select %33, %34, %31 : vector<48x48xi1>, vector<48x48xf32>
    %cst_19 = arith.constant 0.000000e+00 : f32
    %36 = vector.broadcast %cst_19 : f32 to vector<48x48xf32>
    %37 = arith.cmpf oeq, %18, %36 : vector<48x48xf32>
    %cst_20 = arith.constant -1.000000e+30 : f32
    %38 = vector.broadcast %cst_20 : f32 to vector<48x48xf32>
    %39 = arith.select %37, %38, %35 : vector<48x48xi1>, vector<48x48xf32>
    %cst_21 = arith.constant dense<0xFF800000> : vector<48xf32>
    %40 = vector.multi_reduction <maximumf>, %39, %cst_21 [1] : vector<48x48xf32> to vector<48xf32>
    %41 = vector.shape_cast %40 : vector<48xf32> to vector<48x1xf32>
    %42 = vector.broadcast %41 : vector<48x1xf32> to vector<48x48xf32>
    %43 = arith.subf %39, %42 : vector<48x48xf32>
    %44 = math.exp %43 : vector<48x48xf32>
    %cst_22 = arith.constant dense<0.000000e+00> : vector<48xf32>
    %45 = vector.multi_reduction <add>, %44, %cst_22 [1] : vector<48x48xf32> to vector<48xf32>
    %46 = vector.shape_cast %45 : vector<48xf32> to vector<48x1xf32>
    %47 = tpu.reciprocal %46 {approx = true} : vector<48x1xf32> -> vector<48x1xf32>
    %48 = vector.broadcast %47 : vector<48x1xf32> to vector<48x48xf32>
    %49 = arith.mulf %44, %48 : vector<48x48xf32>
    %50 = vector.extract_strided_slice %5 {offsets = [0, 128], sizes = [48, 8], strides = [1, 1]} : vector<48x256xf32> to vector<48x8xf32>
    %cst_23 = arith.constant dense<0.000000e+00> : vector<48x8xf32>
    %51 = tpu.matmul %49, %50, %cst_23 {dimension_numbers = #tpu.dot_dimension_numbers<[1], [0], [0], [1], [0, 0, 1, 1], [], []>} : vector<48x48xf32>, vector<48x8xf32>, vector<48x8xf32> -> vector<48x8xf32>
    %52 = vector.extract_strided_slice %5 {offsets = [0, 72], sizes = [48, 8], strides = [1, 1]} : vector<48x256xf32> to vector<48x8xf32>
    %53 = vector.extract_strided_slice %5 {offsets = [0, 104], sizes = [48, 8], strides = [1, 1]} : vector<48x256xf32> to vector<48x8xf32>
    %cst_24 = arith.constant dense<0.000000e+00> : vector<48x48xf32>
    %54 = tpu.matmul %52, %53, %cst_24 {dimension_numbers = #tpu.dot_dimension_numbers<[1], [1], [0], [0], [0, 0, 1, 0], [], []>} : vector<48x8xf32>, vector<48x8xf32>, vector<48x48xf32> -> vector<48x48xf32>
    %cst_25 = arith.constant 0.000000e+00 : f32
    %55 = vector.broadcast %cst_25 : f32 to vector<48x48xf32>
    %56 = arith.cmpf oeq, %23, %55 : vector<48x48xf32>
    %cst_26 = arith.constant -1.000000e+09 : f32
    %57 = vector.broadcast %cst_26 : f32 to vector<48x48xf32>
    %58 = arith.select %56, %57, %54 : vector<48x48xi1>, vector<48x48xf32>
    %cst_27 = arith.constant 0.000000e+00 : f32
    %59 = vector.broadcast %cst_27 : f32 to vector<48x48xf32>
    %60 = arith.cmpf oeq, %18, %59 : vector<48x48xf32>
    %cst_28 = arith.constant -1.000000e+30 : f32
    %61 = vector.broadcast %cst_28 : f32 to vector<48x48xf32>
    %62 = arith.select %60, %61, %58 : vector<48x48xi1>, vector<48x48xf32>
    %cst_29 = arith.constant dense<0xFF800000> : vector<48xf32>
    %63 = vector.multi_reduction <maximumf>, %62, %cst_29 [1] : vector<48x48xf32> to vector<48xf32>
    %64 = vector.shape_cast %63 : vector<48xf32> to vector<48x1xf32>
    %65 = vector.broadcast %64 : vector<48x1xf32> to vector<48x48xf32>
    %66 = arith.subf %62, %65 : vector<48x48xf32>
    %67 = math.exp %66 : vector<48x48xf32>
    %cst_30 = arith.constant dense<0.000000e+00> : vector<48xf32>
    %68 = vector.multi_reduction <add>, %67, %cst_30 [1] : vector<48x48xf32> to vector<48xf32>
    %69 = vector.shape_cast %68 : vector<48xf32> to vector<48x1xf32>
    %70 = tpu.reciprocal %69 {approx = true} : vector<48x1xf32> -> vector<48x1xf32>
    %71 = vector.broadcast %70 : vector<48x1xf32> to vector<48x48xf32>
    %72 = arith.mulf %67, %71 : vector<48x48xf32>
    %73 = vector.extract_strided_slice %5 {offsets = [0, 136], sizes = [48, 8], strides = [1, 1]} : vector<48x256xf32> to vector<48x8xf32>
    %cst_31 = arith.constant dense<0.000000e+00> : vector<48x8xf32>
    %74 = tpu.matmul %72, %73, %cst_31 {dimension_numbers = #tpu.dot_dimension_numbers<[1], [0], [0], [1], [0, 0, 1, 1], [], []>} : vector<48x48xf32>, vector<48x8xf32>, vector<48x8xf32> -> vector<48x8xf32>
    %75 = vector.extract_strided_slice %5 {offsets = [0, 80], sizes = [48, 8], strides = [1, 1]} : vector<48x256xf32> to vector<48x8xf32>
    %76 = vector.extract_strided_slice %5 {offsets = [0, 112], sizes = [48, 8], strides = [1, 1]} : vector<48x256xf32> to vector<48x8xf32>
    %cst_32 = arith.constant dense<0.000000e+00> : vector<48x48xf32>
    %77 = tpu.matmul %75, %76, %cst_32 {dimension_numbers = #tpu.dot_dimension_numbers<[1], [1], [0], [0], [0, 0, 1, 0], [], []>} : vector<48x8xf32>, vector<48x8xf32>, vector<48x48xf32> -> vector<48x48xf32>
    %cst_33 = arith.constant 0.000000e+00 : f32
    %78 = vector.broadcast %cst_33 : f32 to vector<48x48xf32>
    %79 = arith.cmpf oeq, %23, %78 : vector<48x48xf32>
    %cst_34 = arith.constant -1.000000e+09 : f32
    %80 = vector.broadcast %cst_34 : f32 to vector<48x48xf32>
    %81 = arith.select %79, %80, %77 : vector<48x48xi1>, vector<48x48xf32>
    %cst_35 = arith.constant 0.000000e+00 : f32
    %82 = vector.broadcast %cst_35 : f32 to vector<48x48xf32>
    %83 = arith.cmpf oeq, %18, %82 : vector<48x48xf32>
    %cst_36 = arith.constant -1.000000e+30 : f32
    %84 = vector.broadcast %cst_36 : f32 to vector<48x48xf32>
    %85 = arith.select %83, %84, %81 : vector<48x48xi1>, vector<48x48xf32>
    %cst_37 = arith.constant dense<0xFF800000> : vector<48xf32>
    %86 = vector.multi_reduction <maximumf>, %85, %cst_37 [1] : vector<48x48xf32> to vector<48xf32>
    %87 = vector.shape_cast %86 : vector<48xf32> to vector<48x1xf32>
    %88 = vector.broadcast %87 : vector<48x1xf32> to vector<48x48xf32>
    %89 = arith.subf %85, %88 : vector<48x48xf32>
    %90 = math.exp %89 : vector<48x48xf32>
    %cst_38 = arith.constant dense<0.000000e+00> : vector<48xf32>
    %91 = vector.multi_reduction <add>, %90, %cst_38 [1] : vector<48x48xf32> to vector<48xf32>
    %92 = vector.shape_cast %91 : vector<48xf32> to vector<48x1xf32>
    %93 = tpu.reciprocal %92 {approx = true} : vector<48x1xf32> -> vector<48x1xf32>
    %94 = vector.broadcast %93 : vector<48x1xf32> to vector<48x48xf32>
    %95 = arith.mulf %90, %94 : vector<48x48xf32>
    %96 = vector.extract_strided_slice %5 {offsets = [0, 144], sizes = [48, 8], strides = [1, 1]} : vector<48x256xf32> to vector<48x8xf32>
    %cst_39 = arith.constant dense<0.000000e+00> : vector<48x8xf32>
    %97 = tpu.matmul %95, %96, %cst_39 {dimension_numbers = #tpu.dot_dimension_numbers<[1], [0], [0], [1], [0, 0, 1, 1], [], []>} : vector<48x48xf32>, vector<48x8xf32>, vector<48x8xf32> -> vector<48x8xf32>
    %98 = vector.extract_strided_slice %5 {offsets = [0, 88], sizes = [48, 8], strides = [1, 1]} : vector<48x256xf32> to vector<48x8xf32>
    %99 = vector.extract_strided_slice %5 {offsets = [0, 120], sizes = [48, 8], strides = [1, 1]} : vector<48x256xf32> to vector<48x8xf32>
    %cst_40 = arith.constant dense<0.000000e+00> : vector<48x48xf32>
    %100 = tpu.matmul %98, %99, %cst_40 {dimension_numbers = #tpu.dot_dimension_numbers<[1], [1], [0], [0], [0, 0, 1, 0], [], []>} : vector<48x8xf32>, vector<48x8xf32>, vector<48x48xf32> -> vector<48x48xf32>
    %cst_41 = arith.constant 0.000000e+00 : f32
    %101 = vector.broadcast %cst_41 : f32 to vector<48x48xf32>
    %102 = arith.cmpf oeq, %23, %101 : vector<48x48xf32>
    %cst_42 = arith.constant -1.000000e+09 : f32
    %103 = vector.broadcast %cst_42 : f32 to vector<48x48xf32>
    %104 = arith.select %102, %103, %100 : vector<48x48xi1>, vector<48x48xf32>
    %cst_43 = arith.constant 0.000000e+00 : f32
    %105 = vector.broadcast %cst_43 : f32 to vector<48x48xf32>
    %106 = arith.cmpf oeq, %18, %105 : vector<48x48xf32>
    %cst_44 = arith.constant -1.000000e+30 : f32
    %107 = vector.broadcast %cst_44 : f32 to vector<48x48xf32>
    %108 = arith.select %106, %107, %104 : vector<48x48xi1>, vector<48x48xf32>
    %cst_45 = arith.constant dense<0xFF800000> : vector<48xf32>
    %109 = vector.multi_reduction <maximumf>, %108, %cst_45 [1] : vector<48x48xf32> to vector<48xf32>
    %110 = vector.shape_cast %109 : vector<48xf32> to vector<48x1xf32>
    %111 = vector.broadcast %110 : vector<48x1xf32> to vector<48x48xf32>
    %112 = arith.subf %108, %111 : vector<48x48xf32>
    %113 = math.exp %112 : vector<48x48xf32>
    %cst_46 = arith.constant dense<0.000000e+00> : vector<48xf32>
    %114 = vector.multi_reduction <add>, %113, %cst_46 [1] : vector<48x48xf32> to vector<48xf32>
    %115 = vector.shape_cast %114 : vector<48xf32> to vector<48x1xf32>
    %116 = tpu.reciprocal %115 {approx = true} : vector<48x1xf32> -> vector<48x1xf32>
    %117 = vector.broadcast %116 : vector<48x1xf32> to vector<48x48xf32>
    %118 = arith.mulf %113, %117 : vector<48x48xf32>
    %119 = vector.extract_strided_slice %5 {offsets = [0, 152], sizes = [48, 8], strides = [1, 1]} : vector<48x256xf32> to vector<48x8xf32>
    %cst_47 = arith.constant dense<0.000000e+00> : vector<48x8xf32>
    %120 = tpu.matmul %118, %119, %cst_47 {dimension_numbers = #tpu.dot_dimension_numbers<[1], [0], [0], [1], [0, 0, 1, 1], [], []>} : vector<48x48xf32>, vector<48x8xf32>, vector<48x8xf32> -> vector<48x8xf32>
    %121 = tpu.concatenate %51, %74, %97, %120 in 1 : vector<48x8xf32>, vector<48x8xf32>, vector<48x8xf32>, vector<48x8xf32> -> vector<48x32xf32>
    %122 = vector.extract_strided_slice %5 {offsets = [0, 160], sizes = [48, 8], strides = [1, 1]} : vector<48x256xf32> to vector<48x8xf32>
    %123 = vector.extract_strided_slice %5 {offsets = [0, 192], sizes = [48, 8], strides = [1, 1]} : vector<48x256xf32> to vector<48x8xf32>
    %cst_48 = arith.constant dense<0.000000e+00> : vector<48x48xf32>
    %124 = tpu.matmul %122, %123, %cst_48 {dimension_numbers = #tpu.dot_dimension_numbers<[1], [1], [0], [0], [0, 0, 1, 0], [], []>} : vector<48x8xf32>, vector<48x8xf32>, vector<48x48xf32> -> vector<48x48xf32>
    %cst_49 = arith.constant 0.000000e+00 : f32
    %125 = vector.broadcast %cst_49 : f32 to vector<48x48xf32>
    %126 = arith.cmpf oeq, %28, %125 : vector<48x48xf32>
    %cst_50 = arith.constant -1.000000e+09 : f32
    %127 = vector.broadcast %cst_50 : f32 to vector<48x48xf32>
    %128 = arith.select %126, %127, %124 : vector<48x48xi1>, vector<48x48xf32>
    %cst_51 = arith.constant 0.000000e+00 : f32
    %129 = vector.broadcast %cst_51 : f32 to vector<48x48xf32>
    %130 = arith.cmpf oeq, %18, %129 : vector<48x48xf32>
    %cst_52 = arith.constant -1.000000e+30 : f32
    %131 = vector.broadcast %cst_52 : f32 to vector<48x48xf32>
    %132 = arith.select %130, %131, %128 : vector<48x48xi1>, vector<48x48xf32>
    %cst_53 = arith.constant dense<0xFF800000> : vector<48xf32>
    %133 = vector.multi_reduction <maximumf>, %132, %cst_53 [1] : vector<48x48xf32> to vector<48xf32>
    %134 = vector.shape_cast %133 : vector<48xf32> to vector<48x1xf32>
    %135 = vector.broadcast %134 : vector<48x1xf32> to vector<48x48xf32>
    %136 = arith.subf %132, %135 : vector<48x48xf32>
    %137 = math.exp %136 : vector<48x48xf32>
    %cst_54 = arith.constant dense<0.000000e+00> : vector<48xf32>
    %138 = vector.multi_reduction <add>, %137, %cst_54 [1] : vector<48x48xf32> to vector<48xf32>
    %139 = vector.shape_cast %138 : vector<48xf32> to vector<48x1xf32>
    %140 = tpu.reciprocal %139 {approx = true} : vector<48x1xf32> -> vector<48x1xf32>
    %141 = vector.broadcast %140 : vector<48x1xf32> to vector<48x48xf32>
    %142 = arith.mulf %137, %141 : vector<48x48xf32>
    %143 = vector.extract_strided_slice %5 {offsets = [0, 224], sizes = [48, 8], strides = [1, 1]} : vector<48x256xf32> to vector<48x8xf32>
    %cst_55 = arith.constant dense<0.000000e+00> : vector<48x8xf32>
    %144 = tpu.matmul %142, %143, %cst_55 {dimension_numbers = #tpu.dot_dimension_numbers<[1], [0], [0], [1], [0, 0, 1, 1], [], []>} : vector<48x48xf32>, vector<48x8xf32>, vector<48x8xf32> -> vector<48x8xf32>
    %145 = vector.extract_strided_slice %5 {offsets = [0, 168], sizes = [48, 8], strides = [1, 1]} : vector<48x256xf32> to vector<48x8xf32>
    %146 = vector.extract_strided_slice %5 {offsets = [0, 200], sizes = [48, 8], strides = [1, 1]} : vector<48x256xf32> to vector<48x8xf32>
    %cst_56 = arith.constant dense<0.000000e+00> : vector<48x48xf32>
    %147 = tpu.matmul %145, %146, %cst_56 {dimension_numbers = #tpu.dot_dimension_numbers<[1], [1], [0], [0], [0, 0, 1, 0], [], []>} : vector<48x8xf32>, vector<48x8xf32>, vector<48x48xf32> -> vector<48x48xf32>
    %cst_57 = arith.constant 0.000000e+00 : f32
    %148 = vector.broadcast %cst_57 : f32 to vector<48x48xf32>
    %149 = arith.cmpf oeq, %28, %148 : vector<48x48xf32>
    %cst_58 = arith.constant -1.000000e+09 : f32
    %150 = vector.broadcast %cst_58 : f32 to vector<48x48xf32>
    %151 = arith.select %149, %150, %147 : vector<48x48xi1>, vector<48x48xf32>
    %cst_59 = arith.constant 0.000000e+00 : f32
    %152 = vector.broadcast %cst_59 : f32 to vector<48x48xf32>
    %153 = arith.cmpf oeq, %18, %152 : vector<48x48xf32>
    %cst_60 = arith.constant -1.000000e+30 : f32
    %154 = vector.broadcast %cst_60 : f32 to vector<48x48xf32>
    %155 = arith.select %153, %154, %151 : vector<48x48xi1>, vector<48x48xf32>
    %cst_61 = arith.constant dense<0xFF800000> : vector<48xf32>
    %156 = vector.multi_reduction <maximumf>, %155, %cst_61 [1] : vector<48x48xf32> to vector<48xf32>
    %157 = vector.shape_cast %156 : vector<48xf32> to vector<48x1xf32>
    %158 = vector.broadcast %157 : vector<48x1xf32> to vector<48x48xf32>
    %159 = arith.subf %155, %158 : vector<48x48xf32>
    %160 = math.exp %159 : vector<48x48xf32>
    %cst_62 = arith.constant dense<0.000000e+00> : vector<48xf32>
    %161 = vector.multi_reduction <add>, %160, %cst_62 [1] : vector<48x48xf32> to vector<48xf32>
    %162 = vector.shape_cast %161 : vector<48xf32> to vector<48x1xf32>
    %163 = tpu.reciprocal %162 {approx = true} : vector<48x1xf32> -> vector<48x1xf32>
    %164 = vector.broadcast %163 : vector<48x1xf32> to vector<48x48xf32>
    %165 = arith.mulf %160, %164 : vector<48x48xf32>
    %166 = vector.extract_strided_slice %5 {offsets = [0, 232], sizes = [48, 8], strides = [1, 1]} : vector<48x256xf32> to vector<48x8xf32>
    %cst_63 = arith.constant dense<0.000000e+00> : vector<48x8xf32>
    %167 = tpu.matmul %165, %166, %cst_63 {dimension_numbers = #tpu.dot_dimension_numbers<[1], [0], [0], [1], [0, 0, 1, 1], [], []>} : vector<48x48xf32>, vector<48x8xf32>, vector<48x8xf32> -> vector<48x8xf32>
    %168 = vector.extract_strided_slice %5 {offsets = [0, 176], sizes = [48, 8], strides = [1, 1]} : vector<48x256xf32> to vector<48x8xf32>
    %169 = vector.extract_strided_slice %5 {offsets = [0, 208], sizes = [48, 8], strides = [1, 1]} : vector<48x256xf32> to vector<48x8xf32>
    %cst_64 = arith.constant dense<0.000000e+00> : vector<48x48xf32>
    %170 = tpu.matmul %168, %169, %cst_64 {dimension_numbers = #tpu.dot_dimension_numbers<[1], [1], [0], [0], [0, 0, 1, 0], [], []>} : vector<48x8xf32>, vector<48x8xf32>, vector<48x48xf32> -> vector<48x48xf32>
    %cst_65 = arith.constant 0.000000e+00 : f32
    %171 = vector.broadcast %cst_65 : f32 to vector<48x48xf32>
    %172 = arith.cmpf oeq, %28, %171 : vector<48x48xf32>
    %cst_66 = arith.constant -1.000000e+09 : f32
    %173 = vector.broadcast %cst_66 : f32 to vector<48x48xf32>
    %174 = arith.select %172, %173, %170 : vector<48x48xi1>, vector<48x48xf32>
    %cst_67 = arith.constant 0.000000e+00 : f32
    %175 = vector.broadcast %cst_67 : f32 to vector<48x48xf32>
    %176 = arith.cmpf oeq, %18, %175 : vector<48x48xf32>
    %cst_68 = arith.constant -1.000000e+30 : f32
    %177 = vector.broadcast %cst_68 : f32 to vector<48x48xf32>
    %178 = arith.select %176, %177, %174 : vector<48x48xi1>, vector<48x48xf32>
    %cst_69 = arith.constant dense<0xFF800000> : vector<48xf32>
    %179 = vector.multi_reduction <maximumf>, %178, %cst_69 [1] : vector<48x48xf32> to vector<48xf32>
    %180 = vector.shape_cast %179 : vector<48xf32> to vector<48x1xf32>
    %181 = vector.broadcast %180 : vector<48x1xf32> to vector<48x48xf32>
    %182 = arith.subf %178, %181 : vector<48x48xf32>
    %183 = math.exp %182 : vector<48x48xf32>
    %cst_70 = arith.constant dense<0.000000e+00> : vector<48xf32>
    %184 = vector.multi_reduction <add>, %183, %cst_70 [1] : vector<48x48xf32> to vector<48xf32>
    %185 = vector.shape_cast %184 : vector<48xf32> to vector<48x1xf32>
    %186 = tpu.reciprocal %185 {approx = true} : vector<48x1xf32> -> vector<48x1xf32>
    %187 = vector.broadcast %186 : vector<48x1xf32> to vector<48x48xf32>
    %188 = arith.mulf %183, %187 : vector<48x48xf32>
    %189 = vector.extract_strided_slice %5 {offsets = [0, 240], sizes = [48, 8], strides = [1, 1]} : vector<48x256xf32> to vector<48x8xf32>
    %cst_71 = arith.constant dense<0.000000e+00> : vector<48x8xf32>
    %190 = tpu.matmul %188, %189, %cst_71 {dimension_numbers = #tpu.dot_dimension_numbers<[1], [0], [0], [1], [0, 0, 1, 1], [], []>} : vector<48x48xf32>, vector<48x8xf32>, vector<48x8xf32> -> vector<48x8xf32>
    %191 = vector.extract_strided_slice %5 {offsets = [0, 184], sizes = [48, 8], strides = [1, 1]} : vector<48x256xf32> to vector<48x8xf32>
    %192 = vector.extract_strided_slice %5 {offsets = [0, 216], sizes = [48, 8], strides = [1, 1]} : vector<48x256xf32> to vector<48x8xf32>
    %cst_72 = arith.constant dense<0.000000e+00> : vector<48x48xf32>
    %193 = tpu.matmul %191, %192, %cst_72 {dimension_numbers = #tpu.dot_dimension_numbers<[1], [1], [0], [0], [0, 0, 1, 0], [], []>} : vector<48x8xf32>, vector<48x8xf32>, vector<48x48xf32> -> vector<48x48xf32>
    %cst_73 = arith.constant 0.000000e+00 : f32
    %194 = vector.broadcast %cst_73 : f32 to vector<48x48xf32>
    %195 = arith.cmpf oeq, %28, %194 : vector<48x48xf32>
    %cst_74 = arith.constant -1.000000e+09 : f32
    %196 = vector.broadcast %cst_74 : f32 to vector<48x48xf32>
    %197 = arith.select %195, %196, %193 : vector<48x48xi1>, vector<48x48xf32>
    %cst_75 = arith.constant 0.000000e+00 : f32
    %198 = vector.broadcast %cst_75 : f32 to vector<48x48xf32>
    %199 = arith.cmpf oeq, %18, %198 : vector<48x48xf32>
    %cst_76 = arith.constant -1.000000e+30 : f32
    %200 = vector.broadcast %cst_76 : f32 to vector<48x48xf32>
    %201 = arith.select %199, %200, %197 : vector<48x48xi1>, vector<48x48xf32>
    %cst_77 = arith.constant dense<0xFF800000> : vector<48xf32>
    %202 = vector.multi_reduction <maximumf>, %201, %cst_77 [1] : vector<48x48xf32> to vector<48xf32>
    %203 = vector.shape_cast %202 : vector<48xf32> to vector<48x1xf32>
    %204 = vector.broadcast %203 : vector<48x1xf32> to vector<48x48xf32>
    %205 = arith.subf %201, %204 : vector<48x48xf32>
    %206 = math.exp %205 : vector<48x48xf32>
    %cst_78 = arith.constant dense<0.000000e+00> : vector<48xf32>
    %207 = vector.multi_reduction <add>, %206, %cst_78 [1] : vector<48x48xf32> to vector<48xf32>
    %208 = vector.shape_cast %207 : vector<48xf32> to vector<48x1xf32>
    %209 = tpu.reciprocal %208 {approx = true} : vector<48x1xf32> -> vector<48x1xf32>
    %210 = vector.broadcast %209 : vector<48x1xf32> to vector<48x48xf32>
    %211 = arith.mulf %206, %210 : vector<48x48xf32>
    %212 = vector.extract_strided_slice %5 {offsets = [0, 248], sizes = [48, 8], strides = [1, 1]} : vector<48x256xf32> to vector<48x8xf32>
    %cst_79 = arith.constant dense<0.000000e+00> : vector<48x8xf32>
    %213 = tpu.matmul %211, %212, %cst_79 {dimension_numbers = #tpu.dot_dimension_numbers<[1], [0], [0], [1], [0, 0, 1, 1], [], []>} : vector<48x48xf32>, vector<48x8xf32>, vector<48x8xf32> -> vector<48x8xf32>
    %214 = tpu.concatenate %144, %167, %190, %213 in 1 : vector<48x8xf32>, vector<48x8xf32>, vector<48x8xf32>, vector<48x8xf32> -> vector<48x32xf32>
    %215 = tpu.concatenate %121, %214 in 1 : vector<48x32xf32>, vector<48x32xf32> -> vector<48x64xf32>
    %c0_80 = arith.constant 0 : index
    %c0_81 = arith.constant 0 : index
    %216 = vector.load %arg6[%c0_80, %c0_81] : memref<64x64xf32, #tpu.memory_space<vmem>>, vector<64x64xf32>
    %cst_82 = arith.constant dense<0.000000e+00> : vector<48x64xf32>
    %217 = tpu.matmul %215, %216, %cst_82 {dimension_numbers = #tpu.dot_dimension_numbers<[1], [0], [0], [1], [0, 0, 1, 1], [], []>} : vector<48x64xf32>, vector<64x64xf32>, vector<48x64xf32> -> vector<48x64xf32>
    %c0_83 = arith.constant 0 : index
    %c0_84 = arith.constant 0 : index
    %218 = vector.load %arg7[%c0_83, %c0_84] : memref<1x64xf32, #tpu.memory_space<vmem>>, vector<1x64xf32>
    %219 = vector.broadcast %218 : vector<1x64xf32> to vector<48x64xf32>
    %220 = arith.addf %217, %219 : vector<48x64xf32>
    %c0_85 = arith.constant 0 : index
    %c0_86 = arith.constant 0 : index
    %221 = vector.load %arg8[%c0_85, %c0_86] : memref<64x128xf32, #tpu.memory_space<vmem>>, vector<64x128xf32>
    %cst_87 = arith.constant dense<0.000000e+00> : vector<48x128xf32>
    %222 = tpu.matmul %220, %221, %cst_87 {dimension_numbers = #tpu.dot_dimension_numbers<[1], [0], [0], [1], [0, 0, 1, 1], [], []>} : vector<48x64xf32>, vector<64x128xf32>, vector<48x128xf32> -> vector<48x128xf32>
    %c0_88 = arith.constant 0 : index
    %c0_89 = arith.constant 0 : index
    %223 = vector.load %arg9[%c0_88, %c0_89] : memref<1x128xf32, #tpu.memory_space<vmem>>, vector<1x128xf32>
    %224 = vector.broadcast %223 : vector<1x128xf32> to vector<48x128xf32>
    %225 = arith.addf %222, %224 : vector<48x128xf32>
    %226 = vector.extract_strided_slice %225 {offsets = [0, 0], sizes = [48, 32], strides = [1, 1]} : vector<48x128xf32> to vector<48x32xf32>
    %227 = vector.extract_strided_slice %225 {offsets = [0, 32], sizes = [48, 32], strides = [1, 1]} : vector<48x128xf32> to vector<48x32xf32>
    %228 = vector.extract_strided_slice %225 {offsets = [0, 64], sizes = [48, 32], strides = [1, 1]} : vector<48x128xf32> to vector<48x32xf32>
    %229 = vector.extract_strided_slice %225 {offsets = [0, 96], sizes = [48, 32], strides = [1, 1]} : vector<48x128xf32> to vector<48x32xf32>
    %230 = arith.maximumf %228, %229 : vector<48x32xf32>
    %231 = arith.subf %228, %230 : vector<48x32xf32>
    %232 = math.exp %231 : vector<48x32xf32>
    %233 = arith.subf %229, %230 : vector<48x32xf32>
    %234 = math.exp %233 : vector<48x32xf32>
    %235 = arith.mulf %226, %232 : vector<48x32xf32>
    %236 = arith.mulf %227, %234 : vector<48x32xf32>
    %237 = arith.addf %235, %236 : vector<48x32xf32>
    %238 = arith.addf %232, %234 : vector<48x32xf32>
    %239 = tpu.reciprocal %238 {approx = true} : vector<48x32xf32> -> vector<48x32xf32>
    %240 = arith.mulf %237, %239 : vector<48x32xf32>
    %c0_90 = arith.constant 0 : index
    %c0_91 = arith.constant 0 : index
    %241 = vector.load %arg10[%c0_90, %c0_91] : memref<48x32xf32, #tpu.memory_space<vmem>>, vector<48x32xf32>
    tpu.vector_store %arg10[%c0_90, %c0_91], %240 {strides = array<i32>} : memref<48x32xf32, #tpu.memory_space<vmem>>, vector<48x32xf32>,
    return
  }
}

module attributes {stable_mosaic.version = 11 : i64} {
  func.func @_spa_kernel(%arg0: memref<6x256xf32, #tpu.memory_space<vmem>>, %arg1: memref<6x2xf32, #tpu.memory_space<vmem>>, %arg2: memref<256x256xf32, #tpu.memory_space<vmem>>, %arg3: memref<2x256xf32, #tpu.memory_space<vmem>>, %arg4: memref<1x256xf32, #tpu.memory_space<vmem>>, %arg5: memref<6x256xf32, #tpu.memory_space<vmem>>) attributes {dimension_semantics = [], scalar_prefetch = 0 : i64, scratch_operands = 0 : i64, tpu.core_type = #tpu.core_type<tc>} {
    %c0 = arith.constant 0 : index
    %c0_0 = arith.constant 0 : index
    %0 = vector.load %arg0[%c0, %c0_0] : memref<6x256xf32, #tpu.memory_space<vmem>>, vector<6x256xf32>
    %c0_1 = arith.constant 0 : index
    %c0_2 = arith.constant 0 : index
    %1 = vector.load %arg2[%c0_1, %c0_2] : memref<256x256xf32, #tpu.memory_space<vmem>>, vector<256x256xf32>
    %cst = arith.constant dense<0.000000e+00> : vector<6x256xf32>
    %2 = tpu.matmul %0, %1, %cst {dimension_numbers = #tpu.dot_dimension_numbers<[1], [0], [0], [1], [0, 0, 1, 1], [], []>} : vector<6x256xf32>, vector<256x256xf32>, vector<6x256xf32> -> vector<6x256xf32>
    %c0_3 = arith.constant 0 : index
    %c0_4 = arith.constant 0 : index
    %3 = vector.load %arg1[%c0_3, %c0_4] : memref<6x2xf32, #tpu.memory_space<vmem>>, vector<6x2xf32>
    %c0_5 = arith.constant 0 : index
    %c0_6 = arith.constant 0 : index
    %4 = vector.load %arg3[%c0_5, %c0_6] : memref<2x256xf32, #tpu.memory_space<vmem>>, vector<2x256xf32>
    %cst_7 = arith.constant dense<0.000000e+00> : vector<6x256xf32>
    %5 = tpu.matmul %3, %4, %cst_7 {dimension_numbers = #tpu.dot_dimension_numbers<[1], [0], [0], [1], [0, 0, 1, 1], [], []>} : vector<6x2xf32>, vector<2x256xf32>, vector<6x256xf32> -> vector<6x256xf32>
    %6 = arith.addf %2, %5 : vector<6x256xf32>
    %c0_8 = arith.constant 0 : index
    %c0_9 = arith.constant 0 : index
    %7 = vector.load %arg4[%c0_8, %c0_9] : memref<1x256xf32, #tpu.memory_space<vmem>>, vector<1x256xf32>
    %8 = vector.broadcast %7 : vector<1x256xf32> to vector<6x256xf32>
    %9 = arith.addf %6, %8 : vector<6x256xf32>
    %c0_10 = arith.constant 0 : index
    %c0_11 = arith.constant 0 : index
    %10 = vector.load %arg5[%c0_10, %c0_11] : memref<6x256xf32, #tpu.memory_space<vmem>>, vector<6x256xf32>
    tpu.vector_store %arg5[%c0_10, %c0_11], %9 {strides = array<i32>} : memref<6x256xf32, #tpu.memory_space<vmem>>, vector<6x256xf32>,
    return
  }
}

module attributes {stable_mosaic.version = 11 : i64} {
  func.func @_mlp_head_kernel(%arg0: memref<6x256xf32, #tpu.memory_space<vmem>>, %arg1: memref<256x128xf32, #tpu.memory_space<vmem>>, %arg2: memref<1x128xf32, #tpu.memory_space<vmem>>, %arg3: memref<128x256xf32, #tpu.memory_space<vmem>>, %arg4: memref<1x256xf32, #tpu.memory_space<vmem>>, %arg5: memref<256x128xf32, #tpu.memory_space<vmem>>, %arg6: memref<1x128xf32, #tpu.memory_space<vmem>>, %arg7: memref<128x64xf32, #tpu.memory_space<vmem>>, %arg8: memref<1x64xf32, #tpu.memory_space<vmem>>, %arg9: memref<64x100xf32, #tpu.memory_space<vmem>>, %arg10: memref<1x100xf32, #tpu.memory_space<vmem>>, %arg11: memref<6x100xf32, #tpu.memory_space<vmem>>) attributes {dimension_semantics = [], scalar_prefetch = 0 : i64, scratch_operands = 0 : i64, tpu.core_type = #tpu.core_type<tc>} {
    %c0 = arith.constant 0 : index
    %c0_0 = arith.constant 0 : index
    %0 = vector.load %arg0[%c0, %c0_0] : memref<6x256xf32, #tpu.memory_space<vmem>>, vector<6x256xf32>
    %c0_1 = arith.constant 0 : index
    %c0_2 = arith.constant 0 : index
    %1 = vector.load %arg1[%c0_1, %c0_2] : memref<256x128xf32, #tpu.memory_space<vmem>>, vector<256x128xf32>
    %cst = arith.constant dense<0.000000e+00> : vector<6x128xf32>
    %2 = tpu.matmul %0, %1, %cst {dimension_numbers = #tpu.dot_dimension_numbers<[1], [0], [0], [1], [0, 0, 1, 1], [], []>} : vector<6x256xf32>, vector<256x128xf32>, vector<6x128xf32> -> vector<6x128xf32>
    %c0_3 = arith.constant 0 : index
    %c0_4 = arith.constant 0 : index
    %3 = vector.load %arg2[%c0_3, %c0_4] : memref<1x128xf32, #tpu.memory_space<vmem>>, vector<1x128xf32>
    %4 = vector.broadcast %3 : vector<1x128xf32> to vector<6x128xf32>
    %5 = arith.addf %2, %4 : vector<6x128xf32>
    %cst_5 = arith.constant 0.000000e+00 : f32
    %6 = vector.broadcast %cst_5 : f32 to vector<6x128xf32>
    %7 = arith.maximumf %5, %6 : vector<6x128xf32>
    %c0_6 = arith.constant 0 : index
    %c0_7 = arith.constant 0 : index
    %8 = vector.load %arg3[%c0_6, %c0_7] : memref<128x256xf32, #tpu.memory_space<vmem>>, vector<128x256xf32>
    %cst_8 = arith.constant dense<0.000000e+00> : vector<6x256xf32>
    %9 = tpu.matmul %7, %8, %cst_8 {dimension_numbers = #tpu.dot_dimension_numbers<[1], [0], [0], [1], [0, 0, 1, 1], [], []>} : vector<6x128xf32>, vector<128x256xf32>, vector<6x256xf32> -> vector<6x256xf32>
    %c0_9 = arith.constant 0 : index
    %c0_10 = arith.constant 0 : index
    %10 = vector.load %arg4[%c0_9, %c0_10] : memref<1x256xf32, #tpu.memory_space<vmem>>, vector<1x256xf32>
    %11 = vector.broadcast %10 : vector<1x256xf32> to vector<6x256xf32>
    %12 = arith.addf %9, %11 : vector<6x256xf32>
    %cst_11 = arith.constant 0.000000e+00 : f32
    %13 = vector.broadcast %cst_11 : f32 to vector<6x256xf32>
    %14 = arith.maximumf %12, %13 : vector<6x256xf32>
    %c0_12 = arith.constant 0 : index
    %c0_13 = arith.constant 0 : index
    %15 = vector.load %arg5[%c0_12, %c0_13] : memref<256x128xf32, #tpu.memory_space<vmem>>, vector<256x128xf32>
    %cst_14 = arith.constant dense<0.000000e+00> : vector<6x128xf32>
    %16 = tpu.matmul %14, %15, %cst_14 {dimension_numbers = #tpu.dot_dimension_numbers<[1], [0], [0], [1], [0, 0, 1, 1], [], []>} : vector<6x256xf32>, vector<256x128xf32>, vector<6x128xf32> -> vector<6x128xf32>
    %c0_15 = arith.constant 0 : index
    %c0_16 = arith.constant 0 : index
    %17 = vector.load %arg6[%c0_15, %c0_16] : memref<1x128xf32, #tpu.memory_space<vmem>>, vector<1x128xf32>
    %18 = vector.broadcast %17 : vector<1x128xf32> to vector<6x128xf32>
    %19 = arith.addf %16, %18 : vector<6x128xf32>
    %cst_17 = arith.constant 0.000000e+00 : f32
    %20 = vector.broadcast %cst_17 : f32 to vector<6x128xf32>
    %21 = arith.maximumf %19, %20 : vector<6x128xf32>
    %c0_18 = arith.constant 0 : index
    %c0_19 = arith.constant 0 : index
    %22 = vector.load %arg7[%c0_18, %c0_19] : memref<128x64xf32, #tpu.memory_space<vmem>>, vector<128x64xf32>
    %cst_20 = arith.constant dense<0.000000e+00> : vector<6x64xf32>
    %23 = tpu.matmul %21, %22, %cst_20 {dimension_numbers = #tpu.dot_dimension_numbers<[1], [0], [0], [1], [0, 0, 1, 1], [], []>} : vector<6x128xf32>, vector<128x64xf32>, vector<6x64xf32> -> vector<6x64xf32>
    %c0_21 = arith.constant 0 : index
    %c0_22 = arith.constant 0 : index
    %24 = vector.load %arg8[%c0_21, %c0_22] : memref<1x64xf32, #tpu.memory_space<vmem>>, vector<1x64xf32>
    %25 = vector.broadcast %24 : vector<1x64xf32> to vector<6x64xf32>
    %26 = arith.addf %23, %25 : vector<6x64xf32>
    %c0_23 = arith.constant 0 : index
    %c0_24 = arith.constant 0 : index
    %27 = vector.load %arg9[%c0_23, %c0_24] : memref<64x100xf32, #tpu.memory_space<vmem>>, vector<64x100xf32>
    %cst_25 = arith.constant dense<0.000000e+00> : vector<6x100xf32>
    %28 = tpu.matmul %26, %27, %cst_25 {dimension_numbers = #tpu.dot_dimension_numbers<[1], [0], [0], [1], [0, 0, 1, 1], [], []>} : vector<6x64xf32>, vector<64x100xf32>, vector<6x100xf32> -> vector<6x100xf32>
    %c0_26 = arith.constant 0 : index
    %c0_27 = arith.constant 0 : index
    %29 = vector.load %arg10[%c0_26, %c0_27] : memref<1x100xf32, #tpu.memory_space<vmem>>, vector<1x100xf32>
    %30 = vector.broadcast %29 : vector<1x100xf32> to vector<6x100xf32>
    %31 = arith.addf %28, %30 : vector<6x100xf32>
    %c0_28 = arith.constant 0 : index
    %c0_29 = arith.constant 0 : index
    %32 = vector.load %arg11[%c0_28, %c0_29] : memref<6x100xf32, #tpu.memory_space<vmem>>, vector<6x100xf32>
    tpu.vector_store %arg11[%c0_28, %c0_29], %31 {strides = array<i32>} : memref<6x100xf32, #tpu.memory_space<vmem>>, vector<6x100xf32>,
    return
  }
}

module attributes {stable_mosaic.version = 11 : i64} {
  func.func @_mlp_head_kernel(%arg0: memref<6x18xf32, #tpu.memory_space<vmem>>, %arg1: memref<18x128xf32, #tpu.memory_space<vmem>>, %arg2: memref<1x128xf32, #tpu.memory_space<vmem>>, %arg3: memref<128x256xf32, #tpu.memory_space<vmem>>, %arg4: memref<1x256xf32, #tpu.memory_space<vmem>>, %arg5: memref<256x128xf32, #tpu.memory_space<vmem>>, %arg6: memref<1x128xf32, #tpu.memory_space<vmem>>, %arg7: memref<128x64xf32, #tpu.memory_space<vmem>>, %arg8: memref<1x64xf32, #tpu.memory_space<vmem>>, %arg9: memref<64x22xf32, #tpu.memory_space<vmem>>, %arg10: memref<1x22xf32, #tpu.memory_space<vmem>>, %arg11: memref<6x22xf32, #tpu.memory_space<vmem>>) attributes {dimension_semantics = [], scalar_prefetch = 0 : i64, scratch_operands = 0 : i64, tpu.core_type = #tpu.core_type<tc>} {
    %c0 = arith.constant 0 : index
    %c0_0 = arith.constant 0 : index
    %0 = vector.load %arg0[%c0, %c0_0] : memref<6x18xf32, #tpu.memory_space<vmem>>, vector<6x18xf32>
    %c0_1 = arith.constant 0 : index
    %c0_2 = arith.constant 0 : index
    %1 = vector.load %arg1[%c0_1, %c0_2] : memref<18x128xf32, #tpu.memory_space<vmem>>, vector<18x128xf32>
    %cst = arith.constant dense<0.000000e+00> : vector<6x128xf32>
    %2 = tpu.matmul %0, %1, %cst {dimension_numbers = #tpu.dot_dimension_numbers<[1], [0], [0], [1], [0, 0, 1, 1], [], []>} : vector<6x18xf32>, vector<18x128xf32>, vector<6x128xf32> -> vector<6x128xf32>
    %c0_3 = arith.constant 0 : index
    %c0_4 = arith.constant 0 : index
    %3 = vector.load %arg2[%c0_3, %c0_4] : memref<1x128xf32, #tpu.memory_space<vmem>>, vector<1x128xf32>
    %4 = vector.broadcast %3 : vector<1x128xf32> to vector<6x128xf32>
    %5 = arith.addf %2, %4 : vector<6x128xf32>
    %cst_5 = arith.constant 0.000000e+00 : f32
    %6 = vector.broadcast %cst_5 : f32 to vector<6x128xf32>
    %7 = arith.maximumf %5, %6 : vector<6x128xf32>
    %c0_6 = arith.constant 0 : index
    %c0_7 = arith.constant 0 : index
    %8 = vector.load %arg3[%c0_6, %c0_7] : memref<128x256xf32, #tpu.memory_space<vmem>>, vector<128x256xf32>
    %cst_8 = arith.constant dense<0.000000e+00> : vector<6x256xf32>
    %9 = tpu.matmul %7, %8, %cst_8 {dimension_numbers = #tpu.dot_dimension_numbers<[1], [0], [0], [1], [0, 0, 1, 1], [], []>} : vector<6x128xf32>, vector<128x256xf32>, vector<6x256xf32> -> vector<6x256xf32>
    %c0_9 = arith.constant 0 : index
    %c0_10 = arith.constant 0 : index
    %10 = vector.load %arg4[%c0_9, %c0_10] : memref<1x256xf32, #tpu.memory_space<vmem>>, vector<1x256xf32>
    %11 = vector.broadcast %10 : vector<1x256xf32> to vector<6x256xf32>
    %12 = arith.addf %9, %11 : vector<6x256xf32>
    %cst_11 = arith.constant 0.000000e+00 : f32
    %13 = vector.broadcast %cst_11 : f32 to vector<6x256xf32>
    %14 = arith.maximumf %12, %13 : vector<6x256xf32>
    %c0_12 = arith.constant 0 : index
    %c0_13 = arith.constant 0 : index
    %15 = vector.load %arg5[%c0_12, %c0_13] : memref<256x128xf32, #tpu.memory_space<vmem>>, vector<256x128xf32>
    %cst_14 = arith.constant dense<0.000000e+00> : vector<6x128xf32>
    %16 = tpu.matmul %14, %15, %cst_14 {dimension_numbers = #tpu.dot_dimension_numbers<[1], [0], [0], [1], [0, 0, 1, 1], [], []>} : vector<6x256xf32>, vector<256x128xf32>, vector<6x128xf32> -> vector<6x128xf32>
    %c0_15 = arith.constant 0 : index
    %c0_16 = arith.constant 0 : index
    %17 = vector.load %arg6[%c0_15, %c0_16] : memref<1x128xf32, #tpu.memory_space<vmem>>, vector<1x128xf32>
    %18 = vector.broadcast %17 : vector<1x128xf32> to vector<6x128xf32>
    %19 = arith.addf %16, %18 : vector<6x128xf32>
    %cst_17 = arith.constant 0.000000e+00 : f32
    %20 = vector.broadcast %cst_17 : f32 to vector<6x128xf32>
    %21 = arith.maximumf %19, %20 : vector<6x128xf32>
    %c0_18 = arith.constant 0 : index
    %c0_19 = arith.constant 0 : index
    %22 = vector.load %arg7[%c0_18, %c0_19] : memref<128x64xf32, #tpu.memory_space<vmem>>, vector<128x64xf32>
    %cst_20 = arith.constant dense<0.000000e+00> : vector<6x64xf32>
    %23 = tpu.matmul %21, %22, %cst_20 {dimension_numbers = #tpu.dot_dimension_numbers<[1], [0], [0], [1], [0, 0, 1, 1], [], []>} : vector<6x128xf32>, vector<128x64xf32>, vector<6x64xf32> -> vector<6x64xf32>
    %c0_21 = arith.constant 0 : index
    %c0_22 = arith.constant 0 : index
    %24 = vector.load %arg8[%c0_21, %c0_22] : memref<1x64xf32, #tpu.memory_space<vmem>>, vector<1x64xf32>
    %25 = vector.broadcast %24 : vector<1x64xf32> to vector<6x64xf32>
    %26 = arith.addf %23, %25 : vector<6x64xf32>
    %c0_23 = arith.constant 0 : index
    %c0_24 = arith.constant 0 : index
    %27 = vector.load %arg9[%c0_23, %c0_24] : memref<64x22xf32, #tpu.memory_space<vmem>>, vector<64x22xf32>
    %cst_25 = arith.constant dense<0.000000e+00> : vector<6x22xf32>
    %28 = tpu.matmul %26, %27, %cst_25 {dimension_numbers = #tpu.dot_dimension_numbers<[1], [0], [0], [1], [0, 0, 1, 1], [], []>} : vector<6x64xf32>, vector<64x22xf32>, vector<6x22xf32> -> vector<6x22xf32>
    %c0_26 = arith.constant 0 : index
    %c0_27 = arith.constant 0 : index
    %29 = vector.load %arg10[%c0_26, %c0_27] : memref<1x22xf32, #tpu.memory_space<vmem>>, vector<1x22xf32>
    %30 = vector.broadcast %29 : vector<1x22xf32> to vector<6x22xf32>
    %31 = arith.addf %28, %30 : vector<6x22xf32>
    %c0_28 = arith.constant 0 : index
    %c0_29 = arith.constant 0 : index
    %32 = vector.load %arg11[%c0_28, %c0_29] : memref<6x22xf32, #tpu.memory_space<vmem>>, vector<6x22xf32>
    tpu.vector_store %arg11[%c0_28, %c0_29], %31 {strides = array<i32>} : memref<6x22xf32, #tpu.memory_space<vmem>>, vector<6x22xf32>,
    return
  }
}

</mosaic_0001>

<bundles_post_ra>
// kernel: mul.70
= control target key start
LH: loop header
LB: loop body
LE: loop exit
PB: predicated region body
PF: predicated region fallthrough
CT: control target
= control target key end

     0   :  { %s144_s0 = inlined_call_operand.vmem [shape: f32[48,48], index: 0, kind: input, shape index: {}]   ;;  %s145_s1 = inlined_call_operand.vmem [shape: f32[48,48], index: 1, kind: input, shape index: {}]   ;;  %s146_s2 = inlined_call_operand.vmem [shape: f32[48,48], index: 2, kind: output, shape index: {}]  }
   0x1   :  { %v3_v0 = vld [vmem:[%s144_s0] sm:$0xff]  ;;  %v60_v2 = vld [vmem:[%s144_s0 + $0x8] sm:$0xff]  ;;  %v63_v5 = vld [vmem:[%s144_s0 + $0x10] sm:$0xff] }
   0x2   :  { %v4_v1 = vld [vmem:[%s145_s1] sm:$0xff]  ;;  %v61_v4 = vld [vmem:[%s145_s1 + $0x8] sm:$0xff]  ;;  %v64_v6 = vld [vmem:[%s145_s1 + $0x10] sm:$0xff] }
   0x3   :  { %v7_v3 = vmul.f32 %v4_v1, %v3_v0  ;;  %v16_v7 = vmul.f32 %v61_v4, %v60_v2  ;;  %v26_v8 = vmul.f32 %v64_v6, %v63_v5  ;;  %v66_v9 = vld [vmem:[%s144_s0 + $0x18] sm:$0xff]  ;;  %v69_v11 = vld [vmem:[%s144_s0 + $0x20] sm:$0xff]  ;;  %v72_v14 = vld [vmem:[%s144_s0 + $0x28] sm:$0xff] }
   0x4   :  { %v67_v10 = vld [vmem:[%s145_s1 + $0x18] sm:$0xff]  ;;  %v70_v13 = vld [vmem:[%s145_s1 + $0x20] sm:$0xff]  ;;  %v73_v15 = vld [vmem:[%s145_s1 + $0x28] sm:$0xff] }
   0x5   :  { %9 = vst [vmem:[%s146_s2] sm:$0xff] %v7_v3  ;;  %v36_v12 = vmul.f32 %v67_v10, %v66_v9  ;;  %v46_v16 = vmul.f32 %v70_v13, %v69_v11  ;;  %v56_v17 = vmul.f32 %v73_v15, %v72_v14 }
   0x6   :  { %62 = vst [vmem:[%s146_s2 + $0x8] sm:$0xff] %v16_v7 }
   0x7   :  { %65 = vst [vmem:[%s146_s2 + $0x10] sm:$0xff] %v26_v8 }
   0x8   :  { %68 = vst [vmem:[%s146_s2 + $0x18] sm:$0xff] %v36_v12 }
   0x9   :  { %71 = vst [vmem:[%s146_s2 + $0x20] sm:$0xff] %v46_v16 }
   0xa   :  { %74 = vst [vmem:[%s146_s2 + $0x28] sm:$0xff] %v56_v17 }

// kernel: model_forward.9
= control target key start
LH: loop header
LB: loop body
LE: loop exit
PB: predicated region body
PF: predicated region fallthrough
CT: control target
= control target key end

     0   :  { %vm44_vm0 = vcmask 1041408   ;;  %vm25_vm1 = vcmask 15360   ;;  %vm83_vm2 = vcmask 261120   ;;  %s179_s1 = inlined_call_operand.vmem [shape: f32[2,32], index: 1, kind: input, shape index: {}]   ;;  %s180_s0 = inlined_call_operand.vmem [shape: f32[48,2], index: 0, kind: input, shape index: {}]   ;;  %s181_s2 = inlined_call_operand.vmem [shape: f32[1,32], index: 2, kind: input, shape index: {}]   ;;  %s182_s3 = inlined_call_operand.vmem [shape: f32[48,32], index: 3, kind: output, shape index: {}]  }
   0x1   :  { %v20_v0 = vld [vmem:[%s179_s1] sm:$0x3]  ;;  %v17_v1 = vld [vmem:[%s180_s0 + $0x18] sm:$0xff]  ;;  %v15_v2 = vld [vmem:[%s180_s0 + $0x8] sm:$0xff] }
   0x2   :  { %102 = vmatpush.msk.msra.mxu2 %vm44_vm0, %v20_v0  ;;  %101 = vmatpush.msk.msra.mxu1 %vm44_vm0, %v20_v0  ;;  %v19_v3 = vld [vmem:[%s180_s0 + $0x28] sm:$0xff]  ;;  %v14_v4 = vld [vmem:[%s180_s0] sm:$0xff]  ;;  %v16_v6 = vld [vmem:[%s180_s0 + $0x10] sm:$0xff] }
   0x3   :  { %98 = vmatmul.msk.f32.vlgmr.msra.gmra.mxu2 %vm25_vm1, %v17_v1  ;;  %96 = vmatmul.msk.f32.vlgmr.msra.gmra.mxu1 %vm25_vm1, %v15_v2  ;;  %v18_v5 = vld [vmem:[%s180_s0 + $0x20] sm:$0xff] }
   0x4   :  { %103 = vmatpush.msk.msra.mxu3 %vm44_vm0, %v20_v0  ;;  %94 = vmatpush.msk.msra.mxu0 %vm44_vm0, %v20_v0  ;;  %v104_v7 = vld [vmem:[%s181_s2] ss:$0 sm:$0xff] }
   0x5   :  { %100 = vmatmul.msk.f32.vlgmr.msra.gmra.mxu3 %vm25_vm1, %v19_v3  ;;  %95 = vmatmul.msk.f32.vlgmr.msra.gmra.mxu0 %vm25_vm1, %v14_v4 }
   0xb   :  { %99 = vmatmul.msk.f32.gmra.mxu2 %vm25_vm1, %v18_v5  ;;  %97 = vmatmul.msk.f32.gmra.mxu1 %vm25_vm1, %v16_v6 }
  0x80   :  { %v68_v8 = vpop.f32.mrf.mxu1 }
  0x81   :  { %v69_v9 = vadd.f32 %v104_v7, %v68_v8 }
  0x82   :  { %v65_v10 = vpop.f32.mrf.mxu0 }
  0x83   :  { %85 = vst.msk [vmem:[%s182_s3 + $0x8] sm:$0xff] %vm83_vm2, %v69_v9  ;;  %v66_v11 = vadd.f32 %v104_v7, %v65_v10 }
  0x85   :  { %84 = vst.msk [vmem:[%s182_s3] sm:$0xff] %vm83_vm2, %v66_v11 }
  0x86   :  { %v74_v12 = vpop.f32.mrf.mxu2 }
  0x87   :  { %v75_v13 = vadd.f32 %v104_v7, %v74_v12 }
  0x88   :  { %v71_v14 = vpop.f32.mrf.mxu1  ;;  %v80_v15 = vpop.f32.mrf.mxu3 }
  0x89   :  { %87 = vst.msk [vmem:[%s182_s3 + $0x18] sm:$0xff] %vm83_vm2, %v75_v13  ;;  %v72_v16 = vadd.f32 %v104_v7, %v71_v14  ;;  %v81_v17 = vadd.f32 %v104_v7, %v80_v15 }
  0x8b   :  { %86 = vst.msk [vmem:[%s182_s3 + $0x10] sm:$0xff] %vm83_vm2, %v72_v16 }
  0x8c   :  { %89 = vst.msk [vmem:[%s182_s3 + $0x28] sm:$0xff] %vm83_vm2, %v81_v17 }
  0x8e   :  { %v77_v18 = vpop.f32.mrf.mxu2 }
  0x8f   :  { %v78_v19 = vadd.f32 %v104_v7, %v77_v18 }
  0x91   :  { %88 = vst.msk [vmem:[%s182_s3 + $0x20] sm:$0xff] %vm83_vm2, %v78_v19 }

// kernel: model_forward.11
= control target key start
LH: loop header
LB: loop body
LE: loop exit
PB: predicated region body
PF: predicated region fallthrough
CT: control target
= control target key end

     0   :  { %vm96_vm0 = vcmask 1041408   ;;  %vm92_vm1 = vcmask 15360   ;;  %s482_s2 = inlined_call_operand.vmem [shape: f32[256,256], index: 2, kind: input, shape index: {}]   ;;  %s483_s3 = inlined_call_operand.vmem [shape: f32[2,256], index: 3, kind: input, shape index: {}]   ;;  %s484_s0 = inlined_call_operand.vmem [shape: f32[6,256], index: 0, kind: input, shape index: {}]   ;;  %s485_s1 = inlined_call_operand.vmem [shape: f32[6,2], index: 1, kind: input, shape index: {}]   ;;  %s486_s4 = inlined_call_operand.vmem [shape: f32[1,256], index: 4, kind: input, shape index: {}]   ;;  %s487_s5 = inlined_call_operand.vmem [shape: f32[6,256], index: 5, kind: output, shape index: {}]  }
   0x1   :  { %v52_v0 = vld [vmem:[%s482_s2 + $0xf0] sm:$0xff]  ;;  %v50_v1 = vld [vmem:[%s482_s2 + $0xe0] sm:$0xff]  ;;  %v53_v11 = vld [vmem:[%s482_s2 + $0xf8] sm:$0xff] }
   0x2   :  { %v84_v2 = vld [vmem:[%s482_s2 + $0x1f0] sm:$0xff]  ;;  %141 = vmatpush.msra.mxu2 %v52_v0  ;;  %v82_v3 = vld [vmem:[%s482_s2 + $0x1e0] sm:$0xff]  ;;  %v85_v13 = vld [vmem:[%s482_s2 + $0x1f8] sm:$0xff] }
   0x3   :  { %161 = vmatpush.msra.mxu3 %v84_v2  ;;  %v48_v4 = vld [vmem:[%s482_s2 + $0xd0] sm:$0xff]  ;;  %v87_v6 = vld [vmem:[%s483_s3] sm:$0xf]  ;;  %v51_v17 = vld [vmem:[%s482_s2 + $0xe8] sm:$0xff] }
   0x4   :  { %v80_v5 = vld [vmem:[%s482_s2 + $0x1d0] sm:$0xff]  ;;  %142 = vmatpush.msra.mxu2 %v50_v1  ;;  %89 = vst [vmem:[#allocation1] ss:$4 sm:$0xff] %v87_v6  ;;  %v46_v7 = vld [vmem:[%s482_s2 + $0xc0] sm:$0xff]  ;;  %v83_v19 = vld [vmem:[%s482_s2 + $0x1e8] sm:$0xff] }
   0x5   :  { %162 = vmatpush.msra.mxu3 %v82_v3  ;;  %v78_v8 = vld [vmem:[%s482_s2 + $0x1c0] sm:$0xff]  ;;  %v44_v9 = vld [vmem:[%s482_s2 + $0xb0] sm:$0xff]  ;;  %v49_v21 = vld [vmem:[%s482_s2 + $0xd8] sm:$0xff] }
   0x6   :  { %143 = vmatpush.msra.mxu2 %v48_v4  ;;  %v76_v10 = vld [vmem:[%s482_s2 + $0x1b0] sm:$0xff]  ;;  %v42_v12 = vld [vmem:[%s482_s2 + $0xa0] sm:$0xff]  ;;  %v81_v23 = vld [vmem:[%s482_s2 + $0x1d8] sm:$0xff] }
   0x7   :  { %163 = vmatpush.msra.mxu3 %v80_v5  ;;  %v74_v14 = vld [vmem:[%s482_s2 + $0x1a0] sm:$0xff]  ;;  %v40_v18 = vld [vmem:[%s482_s2 + $0x90] sm:$0xff]  ;;  %v47_v25 = vld [vmem:[%s482_s2 + $0xc8] sm:$0xff] }
   0x8   :  { %144 = vmatpush.msra.mxu2 %v46_v7  ;;  %v72_v20 = vld [vmem:[%s482_s2 + $0x190] sm:$0xff]  ;;  %v38_v22 = vld [vmem:[%s482_s2 + $0x80] sm:$0xff]  ;;  %v79_v27 = vld [vmem:[%s482_s2 + $0x1c8] sm:$0xff] }
   0x9   :  { %164 = vmatpush.msra.mxu3 %v78_v8  ;;  %v70_v24 = vld [vmem:[%s482_s2 + $0x180] sm:$0xff]  ;;  %v36_v26 = vld [vmem:[%s482_s2 + $0x70] sm:$0xff]  ;;  %v45_v29 = vld [vmem:[%s482_s2 + $0xb8] sm:$0xff] }
   0xa   :  { %145 = vmatpush.msra.mxu2 %v44_v9  ;;  %v68_v28 = vld [vmem:[%s482_s2 + $0x170] sm:$0xff]  ;;  %v34_v30 = vld [vmem:[%s482_s2 + $0x60] sm:$0xff]  ;;  %v77_v31 = vld [vmem:[%s482_s2 + $0x1b8] sm:$0xff] }
   0xb   :  { %165 = vmatpush.msra.mxu3 %v76_v10  ;;  %v90_v15 = vld.sshfl [vmem:[#allocation1] sm:$0xff pattern:$0x73625140]  ;;  %v91_v16 = vld.sshfl [vmem:[#allocation1 + $0x8] sm:$0xff pattern:$0x73625140] }
   0xc   :  { %235 = vmatpush.msk.msra.mxu0 %vm96_vm0, %v90_v15  ;;  %237 = vmatpush.msk.msra.mxu1 %vm96_vm0, %v91_v16  ;;  %v66_v32 = vld [vmem:[%s482_s2 + $0x160] sm:$0xff]  ;;  %v43_v33 = vld [vmem:[%s482_s2 + $0xa8] sm:$0xff]  ;;  %v32_v34 = vld [vmem:[%s482_s2 + $0x50] sm:$0xff] }
   0xd   :  { %146 = vmatpush.msra.mxu2 %v42_v12  ;;  %166 = vmatpush.msra.mxu3 %v74_v14  ;;  %v75_v35 = vld [vmem:[%s482_s2 + $0x1a8] sm:$0xff]  ;;  %v64_v36 = vld [vmem:[%s482_s2 + $0x150] sm:$0xff]  ;;  %v41_v37 = vld [vmem:[%s482_s2 + $0x98] sm:$0xff] }
   0xe   :  { %181 = vmatpush.msrb.mxu0 %v53_v11  ;;  %201 = vmatpush.msrb.mxu1 %v85_v13  ;;  %v30_v38 = vld [vmem:[%s482_s2 + $0x40] sm:$0xff]  ;;  %v73_v39 = vld [vmem:[%s482_s2 + $0x198] sm:$0xff]  ;;  %v39_v41 = vld [vmem:[%s482_s2 + $0x88] sm:$0xff] }
   0xf   :  { %147 = vmatpush.msra.mxu2 %v40_v18  ;;  %167 = vmatpush.msra.mxu3 %v72_v20  ;;  %v62_v40 = vld [vmem:[%s482_s2 + $0x140] sm:$0xff]  ;;  %v28_v42 = vld [vmem:[%s482_s2 + $0x30] sm:$0xff]  ;;  %v71_v43 = vld [vmem:[%s482_s2 + $0x188] sm:$0xff] }
  0x10   :  { %182 = vmatpush.msrb.mxu0 %v51_v17  ;;  %202 = vmatpush.msrb.mxu1 %v83_v19  ;;  %v60_v44 = vld [vmem:[%s482_s2 + $0x130] sm:$0xff]  ;;  %v37_v45 = vld [vmem:[%s482_s2 + $0x78] sm:$0xff]  ;;  %v26_v46 = vld [vmem:[%s482_s2 + $0x20] sm:$0xff] }
  0x11   :  { %148 = vmatpush.msra.mxu2 %v38_v22  ;;  %168 = vmatpush.msra.mxu3 %v70_v24  ;;  %v69_v47 = vld [vmem:[%s482_s2 + $0x178] sm:$0xff]  ;;  %v58_v48 = vld [vmem:[%s482_s2 + $0x120] sm:$0xff]  ;;  %v35_v49 = vld [vmem:[%s482_s2 + $0x68] sm:$0xff] }
  0x12   :  { %183 = vmatpush.msrb.mxu0 %v49_v21  ;;  %203 = vmatpush.msrb.mxu1 %v81_v23  ;;  %v24_v50 = vld [vmem:[%s482_s2 + $0x10] sm:$0xff]  ;;  %v67_v51 = vld [vmem:[%s482_s2 + $0x168] sm:$0xff]  ;;  %v33_v53 = vld [vmem:[%s482_s2 + $0x58] sm:$0xff] }
  0x13   :  { %149 = vmatpush.msra.mxu2 %v36_v26  ;;  %169 = vmatpush.msra.mxu3 %v68_v28  ;;  %v56_v52 = vld [vmem:[%s482_s2 + $0x110] sm:$0xff]  ;;  %v22_v54 = vld [vmem:[%s482_s2] sm:$0xff]  ;;  %v65_v56 = vld [vmem:[%s482_s2 + $0x158] sm:$0xff] }
  0x14   :  { %184 = vmatpush.msrb.mxu0 %v47_v25  ;;  %204 = vmatpush.msrb.mxu1 %v79_v27  ;;  %v20_v55 = vld [vmem:[%s484_s0] sm:$0x3f]  ;;  %v31_v57 = vld [vmem:[%s482_s2 + $0x48] sm:$0xff]  ;;  %v29_v61 = vld [vmem:[%s482_s2 + $0x38] sm:$0xff] }
  0x15   :  { %150 = vmatpush.msra.mxu2 %v34_v30  ;;  %170 = vmatpush.msra.mxu3 %v66_v32  ;;  %v54_v58 = vld [vmem:[%s482_s2 + $0x100] sm:$0xff]  ;;  %v21_v60 = vld [vmem:[%s484_s0 + $0x8] sm:$0x3f]  ;;  %v61_v0 = vld [vmem:[%s482_s2 + $0x138] sm:$0xff] }
  0x16   :  { %185 = vmatpush.msrb.mxu0 %v45_v29  ;;  %205 = vmatpush.msrb.mxu1 %v77_v31  ;;  %v86_v59 = vld [vmem:[%s485_s1] sm:$0x3f]  ;;  %v63_v62 = vld [vmem:[%s482_s2 + $0x148] sm:$0xff]  ;;  %v25_v1 = vld [vmem:[%s482_s2 + $0x18] sm:$0xff] }
  0x17   :  { %151 = vmatpush.msra.mxu2 %v32_v34  ;;  %171 = vmatpush.msra.mxu3 %v64_v36  ;;  %v27_v63 = vld [vmem:[%s482_s2 + $0x28] sm:$0xff]  ;;  %v57_v4 = vld [vmem:[%s482_s2 + $0x118] sm:$0xff]  ;;  %v221_v8 = vld [vmem:[%s486_s4] sm:$0x3] }
  0x18   :  { %186 = vmatpush.msrb.mxu0 %v43_v33  ;;  %206 = vmatpush.msrb.mxu1 %v75_v35  ;;  %v59_v2 = vld [vmem:[%s482_s2 + $0x128] sm:$0xff]  ;;  %v223_v11 = vperm.slane %v221_v8, 0  ;;  %v224_v17 = vperm.slane %v221_v8, 1 }
  0x19   :  { %152 = vmatpush.msra.mxu2 %v30_v38  ;;  %172 = vmatpush.msra.mxu3 %v62_v40  ;;  %v23_v3 = vld [vmem:[%s482_s2 + $0x8] sm:$0xff] }
  0x1a   :  { %187 = vmatpush.msrb.mxu0 %v41_v37  ;;  %207 = vmatpush.msrb.mxu1 %v73_v39  ;;  %v55_v5 = vld [vmem:[%s482_s2 + $0x108] sm:$0xff] }
  0x1b   :  { %153 = vmatpush.msra.mxu2 %v28_v42  ;;  %173 = vmatpush.msra.mxu3 %v60_v44 }
  0x1c   :  { %188 = vmatpush.msrb.mxu0 %v39_v41  ;;  %208 = vmatpush.msrb.mxu1 %v71_v43 }
  0x1d   :  { %154 = vmatpush.msra.mxu2 %v26_v46  ;;  %174 = vmatpush.msra.mxu3 %v58_v48 }
  0x1e   :  { %189 = vmatpush.msrb.mxu0 %v37_v45  ;;  %209 = vmatpush.msrb.mxu1 %v69_v47 }
  0x1f   :  { %155 = vmatpush.msra.mxu2 %v24_v50  ;;  %175 = vmatpush.msra.mxu3 %v56_v52 }
  0x20   :  { %190 = vmatpush.msrb.mxu0 %v35_v49  ;;  %210 = vmatpush.msrb.mxu1 %v67_v51 }
  0x21   :  { %156 = vmatpush.msra.mxu2 %v22_v54  ;;  %176 = vmatpush.msra.mxu3 %v54_v58 }
  0x22   :  { %191 = vmatpush.msrb.mxu0 %v33_v53  ;;  %157 = vmatmul.f32.vlgmr.msra.gmra.mxu2 %v20_v55 }
  0x23   :  { %211 = vmatpush.msrb.mxu1 %v65_v56  ;;  %236 = vmatmul.msk.f32.vlgmr.msra.gmra.mxu0 %vm92_vm1, %v86_v59 }
  0x24   :  { %192 = vmatpush.msrb.mxu0 %v31_v57  ;;  %177 = vmatmul.f32.vlgmr.msra.gmra.mxu3 %v21_v60 }
  0x25   :  { %212 = vmatpush.msrb.mxu1 %v63_v62 }
  0x26   :  { %193 = vmatpush.msrb.mxu0 %v29_v61  ;;  %238 = vmatmul.msk.f32.vlgmr.msra.gmra.mxu1 %vm92_vm1, %v86_v59 }
  0x27   :  { %213 = vmatpush.msrb.mxu1 %v61_v0 }
  0x28   :  { %194 = vmatpush.msrb.mxu0 %v27_v63 }
  0x29   :  { %214 = vmatpush.msrb.mxu1 %v59_v2 }
  0x2a   :  { %195 = vmatpush.msrb.mxu0 %v25_v1 }
  0x2b   :  { %215 = vmatpush.msrb.mxu1 %v57_v4 }
  0x2c   :  { %196 = vmatpush.msrb.mxu0 %v23_v3 }
  0x2d   :  { %197 = vmatmul.f32.vlgmr.msrb.gmra.mxu0 %v20_v55  ;;  %216 = vmatpush.msrb.mxu1 %v55_v5 }
  0x2e   :  { %217 = vmatmul.f32.vlgmr.msrb.gmra.mxu1 %v21_v60 }
  0xa0   :  { %v118_v6 = vpop.f32.mrf.mxu0 }
  0xa3   :  { %v138_v7 = vpop.f32.mrf.mxu1 }
  0xa5   :  { %v158_v9 = vpop.f32.mrf.mxu2 }
  0xa6   :  { %v159_v10 = vadd.f32 %v158_v9, %v118_v6 }
  0xa7   :  { %v178_v12 = vpop.f32.mrf.mxu3 }
  0xa8   :  { %v179_v13 = vadd.f32 %v178_v12, %v159_v10 }
  0xaa   :  { %v198_v14 = vpop.f32.mrf.mxu0  ;;  %v227_v15 = vadd.f32 %v223_v11, %v179_v13 }
  0xab   :  { %v199_v16 = vadd.f32 %v198_v14, %v138_v7  ;;  %v218_v18 = vpop.f32.mrf.mxu1 }
  0xac   :  { %229 = vst [vmem:[%s487_s5] sm:$0x3f] %v227_v15 }
  0xad   :  { %v219_v19 = vadd.f32 %v218_v18, %v199_v16 }
  0xaf   :  { %v228_v20 = vadd.f32 %v224_v17, %v219_v19 }
  0xb1   :  { %230 = vst [vmem:[%s487_s5 + $0x8] sm:$0x3f] %v228_v20 }

// kernel: model_forward.16
= control target key start
LH: loop header
LB: loop body
LE: loop exit
PB: predicated region body
PF: predicated region fallthrough
CT: control target
= control target key end

     0   :  { %vm326_vm0 = vcmask 523264   ;;  %vm350_vm1 = vcmask 816128   ;;  %s805_s1 = inlined_call_operand.vmem [shape: f32[256,128], index: 1, kind: input, shape index: {}]   ;;  %s806_s3 = inlined_call_operand.vmem [shape: f32[128,256], index: 3, kind: input, shape index: {}]   ;;  %s807_s2 = inlined_call_operand.vmem [shape: f32[1,128], index: 2, kind: input, shape index: {}]   ;;  %s808_s0 = inlined_call_operand.vmem [shape: f32[6,256], index: 0, kind: input, shape index: {}]   ;;  %s809_s5 = inlined_call_operand.vmem [shape: f32[256,128], index: 5, kind: input, shape index: {}]   ;;  %s810_s6 = inlined_call_operand.vmem [shape: f32[1,128], index: 6, kind: input, shape index: {}]   ;;  %s811_s7 = inlined_call_operand.vmem [shape: f32[128,64], index: 7, kind: input, shape index: {}]   ;;  %s812_s4 = inlined_call_operand.vmem [shape: f32[1,256], index: 4, kind: input, shape index: {}]   ;;  %s813_s8 = inlined_call_operand.vmem [shape: f32[1,64], index: 8, kind: input, shape index: {}]   ;;  %s814_s9 = inlined_call_operand.vmem [shape: f32[64,100], index: 9, kind: input, shape index: {}]   ;;  %s815_s10 = inlined_call_operand.vmem [shape: f32[1,100], index: 10, kind: input, shape index: {}]   ;;  %s816_s11 = inlined_call_operand.vmem [shape: f32[6,100], index: 11, kind: output, shape index: {}]  }
   0x1   :  { %v55_v0 = vld [vmem:[%s805_s1 + $0x78] sm:$0xff]  ;;  %v54_v1 = vld [vmem:[%s805_s1 + $0x70] sm:$0xff]  ;;  %v53_v4 = vld [vmem:[%s805_s1 + $0x68] sm:$0xff] }
   0x2   :  { %v71_v2 = vld [vmem:[%s805_s1 + $0xf8] sm:$0xff]  ;;  %76 = vmatpush.msra.mxu0 %v55_v0  ;;  %v70_v3 = vld [vmem:[%s805_s1 + $0xf0] sm:$0xff]  ;;  %v69_v5 = vld [vmem:[%s805_s1 + $0xe8] sm:$0xff] }
   0x3   :  { %96 = vmatpush.msra.mxu1 %v71_v2  ;;  %v52_v6 = vld [vmem:[%s805_s1 + $0x60] sm:$0xff]  ;;  %v51_v8 = vld [vmem:[%s805_s1 + $0x58] sm:$0xff]  ;;  %v50_v10 = vld [vmem:[%s805_s1 + $0x50] sm:$0xff] }
   0x4   :  { %77 = vmatpush.msra.mxu0 %v54_v1  ;;  %v68_v7 = vld [vmem:[%s805_s1 + $0xe0] sm:$0xff]  ;;  %v67_v9 = vld [vmem:[%s805_s1 + $0xd8] sm:$0xff]  ;;  %v66_v11 = vld [vmem:[%s805_s1 + $0xd0] sm:$0xff] }
   0x5   :  { %97 = vmatpush.msra.mxu1 %v70_v3  ;;  %v49_v12 = vld [vmem:[%s805_s1 + $0x48] sm:$0xff]  ;;  %v48_v14 = vld [vmem:[%s805_s1 + $0x40] sm:$0xff]  ;;  %v147_v15 = vld [vmem:[%s806_s3 + $0xf0] sm:$0xff] }
   0x6   :  { %78 = vmatpush.msra.mxu0 %v53_v4  ;;  %v65_v13 = vld [vmem:[%s805_s1 + $0xc8] sm:$0xff]  ;;  %v148_v16 = vld [vmem:[%s806_s3 + $0xf8] sm:$0xff]  ;;  %v64_v17 = vld [vmem:[%s805_s1 + $0xc0] sm:$0xff]  ;;  %155 = vmatpush.msra.mxu2 %v147_v15 }
   0x7   :  { %98 = vmatpush.msra.mxu1 %v69_v5  ;;  %175 = vmatpush.msra.mxu3 %v148_v16  ;;  %v145_v18 = vld [vmem:[%s806_s3 + $0xe0] sm:$0xff]  ;;  %v146_v19 = vld [vmem:[%s806_s3 + $0xe8] sm:$0xff]  ;;  %v143_v20 = vld [vmem:[%s806_s3 + $0xd0] sm:$0xff] }
   0x8   :  { %79 = vmatpush.msra.mxu0 %v52_v6  ;;  %v144_v21 = vld [vmem:[%s806_s3 + $0xd8] sm:$0xff]  ;;  %156 = vmatpush.msra.mxu2 %v145_v18  ;;  %v141_v24 = vld [vmem:[%s806_s3 + $0xc0] sm:$0xff]  ;;  %v142_v25 = vld [vmem:[%s806_s3 + $0xc8] sm:$0xff] }
   0x9   :  { %99 = vmatpush.msra.mxu1 %v68_v7  ;;  %v47_v22 = vld [vmem:[%s805_s1 + $0x38] sm:$0xff]  ;;  %176 = vmatpush.msra.mxu3 %v146_v19  ;;  %v46_v26 = vld [vmem:[%s805_s1 + $0x30] sm:$0xff]  ;;  %v45_v30 = vld [vmem:[%s805_s1 + $0x28] sm:$0xff] }
   0xa   :  { %80 = vmatpush.msra.mxu0 %v51_v8  ;;  %v63_v23 = vld [vmem:[%s805_s1 + $0xb8] sm:$0xff]  ;;  %v62_v27 = vld [vmem:[%s805_s1 + $0xb0] sm:$0xff]  ;;  %157 = vmatpush.msra.mxu2 %v143_v20  ;;  %v61_v31 = vld [vmem:[%s805_s1 + $0xa8] sm:$0xff] }
   0xb   :  { %100 = vmatpush.msra.mxu1 %v67_v9  ;;  %177 = vmatpush.msra.mxu3 %v144_v21  ;;  %v139_v28 = vld [vmem:[%s806_s3 + $0xb0] sm:$0xff]  ;;  %v140_v29 = vld [vmem:[%s806_s3 + $0xb8] sm:$0xff]  ;;  %v137_v32 = vld [vmem:[%s806_s3 + $0xa0] sm:$0xff] }
   0xc   :  { %81 = vmatpush.msra.mxu0 %v50_v10  ;;  %158 = vmatpush.msra.mxu2 %v141_v24  ;;  %v138_v33 = vld [vmem:[%s806_s3 + $0xa8] sm:$0xff]  ;;  %v44_v34 = vld [vmem:[%s805_s1 + $0x20] sm:$0xff]  ;;  %v135_v36 = vld [vmem:[%s806_s3 + $0x90] sm:$0xff] }
   0xd   :  { %101 = vmatpush.msra.mxu1 %v66_v11  ;;  %178 = vmatpush.msra.mxu3 %v142_v25  ;;  %v60_v35 = vld [vmem:[%s805_s1 + $0xa0] sm:$0xff]  ;;  %v136_v37 = vld [vmem:[%s806_s3 + $0x98] sm:$0xff]  ;;  %v134_v41 = vld [vmem:[%s806_s3 + $0x88] sm:$0xff] }
   0xe   :  { %82 = vmatpush.msra.mxu0 %v49_v12  ;;  %159 = vmatpush.msra.mxu2 %v139_v28  ;;  %v43_v38 = vld [vmem:[%s805_s1 + $0x18] sm:$0xff]  ;;  %v133_v40 = vld [vmem:[%s806_s3 + $0x80] sm:$0xff]  ;;  %v42_v42 = vld [vmem:[%s805_s1 + $0x10] sm:$0xff] }
   0xf   :  { %102 = vmatpush.msra.mxu1 %v65_v13  ;;  %179 = vmatpush.msra.mxu3 %v140_v29  ;;  %v59_v39 = vld [vmem:[%s805_s1 + $0x98] sm:$0xff]  ;;  %v58_v43 = vld [vmem:[%s805_s1 + $0x90] sm:$0xff]  ;;  %v41_v46 = vld [vmem:[%s805_s1 + $0x8] sm:$0xff] }
  0x10   :  { %83 = vmatpush.msra.mxu0 %v48_v14  ;;  %160 = vmatpush.msra.mxu2 %v137_v32  ;;  %v131_v44 = vld [vmem:[%s806_s3 + $0x70] sm:$0xff]  ;;  %v132_v45 = vld [vmem:[%s806_s3 + $0x78] sm:$0xff]  ;;  %v57_v47 = vld [vmem:[%s805_s1 + $0x88] sm:$0xff] }
  0x11   :  { %103 = vmatpush.msra.mxu1 %v64_v17  ;;  %180 = vmatpush.msra.mxu3 %v138_v33  ;;  %v129_v48 = vld [vmem:[%s806_s3 + $0x60] sm:$0xff]  ;;  %v130_v49 = vld [vmem:[%s806_s3 + $0x68] sm:$0xff]  ;;  %v127_v54 = vld [vmem:[%s806_s3 + $0x50] sm:$0xff] }
  0x12   :  { %84 = vmatpush.msra.mxu0 %v47_v22  ;;  %161 = vmatpush.msra.mxu2 %v135_v36  ;;  %v40_v50 = vld [vmem:[%s805_s1] sm:$0xff]  ;;  %v39_v53 = vld [vmem:[%s808_s0 + $0x8] sm:$0x3f]  ;;  %v128_v55 = vld [vmem:[%s806_s3 + $0x58] sm:$0xff] }
  0x13   :  { %104 = vmatpush.msra.mxu1 %v63_v23  ;;  %181 = vmatpush.msra.mxu3 %v136_v37  ;;  %v56_v51 = vld [vmem:[%s805_s1 + $0x80] sm:$0xff]  ;;  %v126_v57 = vld [vmem:[%s806_s3 + $0x48] sm:$0xff]  ;;  %v123_v58 = vld [vmem:[%s806_s3 + $0x30] sm:$0xff] }
  0x14   :  { %85 = vmatpush.msra.mxu0 %v46_v26  ;;  %162 = vmatpush.msra.mxu2 %v133_v40  ;;  %v38_v52 = vld [vmem:[%s808_s0] sm:$0x3f]  ;;  %v124_v59 = vld [vmem:[%s806_s3 + $0x38] sm:$0xff]  ;;  %v122_v61 = vld [vmem:[%s806_s3 + $0x28] sm:$0xff] }
  0x15   :  { %105 = vmatpush.msra.mxu1 %v62_v27  ;;  %182 = vmatpush.msra.mxu3 %v134_v41  ;;  %v125_v56 = vld [vmem:[%s806_s3 + $0x40] sm:$0xff]  ;;  %v119_v62 = vld [vmem:[%s806_s3 + $0x10] sm:$0xff]  ;;  %v120_v63 = vld [vmem:[%s806_s3 + $0x18] sm:$0xff] }
  0x16   :  { %86 = vmatpush.msra.mxu0 %v45_v30  ;;  %163 = vmatpush.msra.mxu2 %v131_v44  ;;  %v121_v60 = vld [vmem:[%s806_s3 + $0x20] sm:$0xff]  ;;  %v118_v1 = vld [vmem:[%s806_s3 + $0x8] sm:$0xff]  ;;  %v212_v2 = vld [vmem:[%s809_s5 + $0x78] sm:$0xff] }
  0x17   :  { %106 = vmatpush.msra.mxu1 %v61_v31  ;;  %183 = vmatpush.msra.mxu3 %v132_v45  ;;  %v117_v0 = vld [vmem:[%s806_s3] sm:$0xff]  ;;  %v228_v3 = vld [vmem:[%s809_s5 + $0xf8] sm:$0xff]  ;;  %v211_v4 = vld [vmem:[%s809_s5 + $0x70] sm:$0xff] }
  0x18   :  { %87 = vmatpush.msra.mxu0 %v44_v34  ;;  %164 = vmatpush.msra.mxu2 %v129_v48  ;;  %v227_v5 = vld [vmem:[%s809_s5 + $0xf0] sm:$0xff]  ;;  %v210_v6 = vld [vmem:[%s809_s5 + $0x68] sm:$0xff]  ;;  %v209_v8 = vld [vmem:[%s809_s5 + $0x60] sm:$0xff] }
  0x19   :  { %107 = vmatpush.msra.mxu1 %v60_v35  ;;  %184 = vmatpush.msra.mxu3 %v130_v49  ;;  %v226_v7 = vld [vmem:[%s809_s5 + $0xe8] sm:$0xff]  ;;  %v225_v9 = vld [vmem:[%s809_s5 + $0xe0] sm:$0xff]  ;;  %v208_v10 = vld [vmem:[%s809_s5 + $0x58] sm:$0xff] }
  0x1a   :  { %88 = vmatpush.msra.mxu0 %v43_v38  ;;  %165 = vmatpush.msra.mxu2 %v127_v54  ;;  %v224_v11 = vld [vmem:[%s809_s5 + $0xd8] sm:$0xff]  ;;  %v207_v12 = vld [vmem:[%s809_s5 + $0x50] sm:$0xff]  ;;  %v206_v14 = vld [vmem:[%s809_s5 + $0x48] sm:$0xff] }
  0x1b   :  { %108 = vmatpush.msra.mxu1 %v59_v39  ;;  %185 = vmatpush.msra.mxu3 %v128_v55  ;;  %v223_v13 = vld [vmem:[%s809_s5 + $0xd0] sm:$0xff]  ;;  %v222_v15 = vld [vmem:[%s809_s5 + $0xc8] sm:$0xff]  ;;  %v205_v16 = vld [vmem:[%s809_s5 + $0x40] sm:$0xff] }
  0x1c   :  { %89 = vmatpush.msra.mxu0 %v42_v42  ;;  %166 = vmatpush.msra.mxu2 %v125_v56  ;;  %v221_v17 = vld [vmem:[%s809_s5 + $0xc0] sm:$0xff]  ;;  %v204_v18 = vld [vmem:[%s809_s5 + $0x38] sm:$0xff]  ;;  %v203_v20 = vld [vmem:[%s809_s5 + $0x30] sm:$0xff] }
  0x1d   :  { %109 = vmatpush.msra.mxu1 %v58_v43  ;;  %186 = vmatpush.msra.mxu3 %v126_v57  ;;  %v220_v19 = vld [vmem:[%s809_s5 + $0xb8] sm:$0xff]  ;;  %v219_v21 = vld [vmem:[%s809_s5 + $0xb0] sm:$0xff]  ;;  %v202_v22 = vld [vmem:[%s809_s5 + $0x28] sm:$0xff] }
  0x1e   :  { %90 = vmatpush.msra.mxu0 %v41_v46  ;;  %167 = vmatpush.msra.mxu2 %v123_v58  ;;  %v218_v23 = vld [vmem:[%s809_s5 + $0xa8] sm:$0xff]  ;;  %v201_v24 = vld [vmem:[%s809_s5 + $0x20] sm:$0xff]  ;;  %v200_v27 = vld [vmem:[%s809_s5 + $0x18] sm:$0xff] }
  0x1f   :  { %110 = vmatpush.msra.mxu1 %v57_v47  ;;  %187 = vmatpush.msra.mxu3 %v124_v59  ;;  %v217_v25 = vld [vmem:[%s809_s5 + $0xa0] sm:$0xff]  ;;  %v216_v28 = vld [vmem:[%s809_s5 + $0x98] sm:$0xff]  ;;  %v199_v34 = vld [vmem:[%s809_s5 + $0x10] sm:$0xff] }
  0x20   :  { %91 = vmatpush.msra.mxu0 %v40_v50  ;;  %168 = vmatpush.msra.mxu2 %v121_v60  ;;  %v357_v26 = vld [vmem:[%s807_s2] ss:$0 sm:$0xff]  ;;  %v215_v35 = vld [vmem:[%s809_s5 + $0x90] sm:$0xff]  ;;  %v198_v36 = vld [vmem:[%s809_s5 + $0x8] sm:$0xff] }
  0x21   :  { %111 = vmatpush.msra.mxu1 %v56_v51  ;;  %92 = vmatmul.f32.vlgmr.msra.gmra.mxu0 %v38_v52  ;;  %v214_v37 = vld [vmem:[%s809_s5 + $0x88] sm:$0xff]  ;;  %v197_v38 = vld [vmem:[%s809_s5] sm:$0xff]  ;;  %v289_v40 = vld [vmem:[%s811_s7 + $0x78] sm:$0xff] }
  0x22   :  { %112 = vmatmul.f32.vlgmr.msra.gmra.mxu1 %v39_v53  ;;  %188 = vmatpush.msra.mxu3 %v122_v61  ;;  %v213_v39 = vld [vmem:[%s809_s5 + $0x80] sm:$0xff]  ;;  %v288_v41 = vld [vmem:[%s811_s7 + $0x70] sm:$0xff]  ;;  %v287_v42 = vld [vmem:[%s811_s7 + $0x68] sm:$0xff] }
  0x23   :  { %169 = vmatpush.msra.mxu2 %v119_v62  ;;  %233 = vmatpush.msrb.mxu0 %v212_v2  ;;  %v286_v43 = vld [vmem:[%s811_s7 + $0x60] sm:$0xff]  ;;  %v285_v44 = vld [vmem:[%s811_s7 + $0x58] sm:$0xff]  ;;  %v284_v45 = vld [vmem:[%s811_s7 + $0x50] sm:$0xff] }
  0x24   :  { %189 = vmatpush.msra.mxu3 %v120_v63  ;;  %253 = vmatpush.msrb.mxu1 %v228_v3  ;;  %v283_v46 = vld [vmem:[%s811_s7 + $0x48] sm:$0xff]  ;;  %v282_v47 = vld [vmem:[%s811_s7 + $0x40] sm:$0xff]  ;;  %v281_v48 = vld [vmem:[%s811_s7 + $0x38] sm:$0xff] }
  0x25   :  { %170 = vmatpush.msra.mxu2 %v117_v0  ;;  %234 = vmatpush.msrb.mxu0 %v211_v4  ;;  %v280_v49 = vld [vmem:[%s811_s7 + $0x30] sm:$0xff]  ;;  %v279_v50 = vld [vmem:[%s811_s7 + $0x28] sm:$0xff]  ;;  %v278_v51 = vld [vmem:[%s811_s7 + $0x20] sm:$0xff] }
  0x26   :  { %190 = vmatpush.msra.mxu3 %v118_v1  ;;  %254 = vmatpush.msrb.mxu1 %v227_v5  ;;  %v149_v52 = vld [vmem:[%s812_s4] sm:$0x3]  ;;  %v277_v61 = vld [vmem:[%s811_s7 + $0x18] sm:$0xff]  ;;  %v276_v62 = vld [vmem:[%s811_s7 + $0x10] sm:$0xff] }
  0x27   :  { %235 = vmatpush.msrb.mxu0 %v210_v6  ;;  %294 = vmatpush.msrb.mxu2 %v289_v40  ;;  %v151_v53 = vperm.slane %v149_v52, 0  ;;  %v152_v54 = vperm.slane %v149_v52, 1  ;;  %v275_v63 = vld [vmem:[%s811_s7 + $0x8] sm:$0xff]  ;;  %v274_v0 = vld [vmem:[%s811_s7] sm:$0xff]  ;;  %v321_v1 = vld [vmem:[%s814_s9 + $0x38] sm:$0xff] }
  0x28   :  { %255 = vmatpush.msrb.mxu1 %v226_v7  ;;  %v320_v2 = vld [vmem:[%s814_s9 + $0x30] sm:$0xff]  ;;  %338 = vmatpush.msrb.mxu3 %v321_v1  ;;  %v319_v3 = vld [vmem:[%s814_s9 + $0x28] sm:$0xff]  ;;  %v318_v4 = vld [vmem:[%s814_s9 + $0x20] sm:$0xff] }
  0x29   :  { %236 = vmatpush.msrb.mxu0 %v209_v8  ;;  %295 = vmatpush.msrb.mxu2 %v288_v41  ;;  %v317_v5 = vld [vmem:[%s814_s9 + $0x18] sm:$0xff]  ;;  %v316_v6 = vld [vmem:[%s814_s9 + $0x10] sm:$0xff]  ;;  %v358_v7 = vld [vmem:[%s810_s6] ss:$0 sm:$0xff] }
  0x2a   :  { %256 = vmatpush.msrb.mxu1 %v225_v9  ;;  %339 = vmatpush.msrb.mxu3 %v320_v2 }
  0x2b   :  { %237 = vmatpush.msrb.mxu0 %v208_v10  ;;  %296 = vmatpush.msrb.mxu2 %v287_v42 }
  0x2c   :  { %257 = vmatpush.msrb.mxu1 %v224_v11  ;;  %340 = vmatpush.msrb.mxu3 %v319_v3 }
  0x2d   :  { %238 = vmatpush.msrb.mxu0 %v207_v12  ;;  %297 = vmatpush.msrb.mxu2 %v286_v43 }
  0x2e   :  { %258 = vmatpush.msrb.mxu1 %v223_v13  ;;  %341 = vmatpush.msrb.mxu3 %v318_v4  ;;  %v315_v13 = vld [vmem:[%s814_s9 + $0x8] sm:$0xff] }
  0x2f   :  { %239 = vmatpush.msrb.mxu0 %v206_v14  ;;  %298 = vmatpush.msrb.mxu2 %v285_v44  ;;  %v314_v14 = vld [vmem:[%s814_s9] sm:$0xff] }
  0x30   :  { %259 = vmatpush.msrb.mxu1 %v222_v15  ;;  %342 = vmatpush.msrb.mxu3 %v317_v5  ;;  %v359_v15 = vld [vmem:[%s813_s8] ss:$0 sm:$0xff] }
  0x31   :  { %240 = vmatpush.msrb.mxu0 %v205_v16  ;;  %299 = vmatpush.msrb.mxu2 %v284_v45 }
  0x32   :  { %260 = vmatpush.msrb.mxu1 %v221_v17  ;;  %343 = vmatpush.msrb.mxu3 %v316_v6 }
  0x33   :  { %241 = vmatpush.msrb.mxu0 %v204_v18  ;;  %300 = vmatpush.msrb.mxu2 %v283_v46  ;;  %v360_v18 = vld [vmem:[%s815_s10] ss:$0 sm:$0xff] }
  0x34   :  { %261 = vmatpush.msrb.mxu1 %v220_v19  ;;  %344 = vmatpush.msrb.mxu3 %v315_v13 }
  0x35   :  { %242 = vmatpush.msrb.mxu0 %v203_v20  ;;  %301 = vmatpush.msrb.mxu2 %v282_v47 }
  0x36   :  { %262 = vmatpush.msrb.mxu1 %v219_v21  ;;  %345 = vmatpush.msrb.mxu3 %v314_v14 }
  0x37   :  { %243 = vmatpush.msrb.mxu0 %v202_v22  ;;  %302 = vmatpush.msrb.mxu2 %v281_v48 }
  0x38   :  { %263 = vmatpush.msrb.mxu1 %v218_v23 }
  0x39   :  { %244 = vmatpush.msrb.mxu0 %v201_v24  ;;  %303 = vmatpush.msrb.mxu2 %v280_v49 }
  0x3a   :  { %264 = vmatpush.msrb.mxu1 %v217_v25 }
  0x3b   :  { %245 = vmatpush.msrb.mxu0 %v200_v27  ;;  %304 = vmatpush.msrb.mxu2 %v279_v50 }
  0x3c   :  { %265 = vmatpush.msrb.mxu1 %v216_v28 }
  0x3d   :  { %246 = vmatpush.msrb.mxu0 %v199_v34  ;;  %305 = vmatpush.msrb.mxu2 %v278_v51 }
  0x3e   :  { %266 = vmatpush.msrb.mxu1 %v215_v35 }
  0x3f   :  { %247 = vmatpush.msrb.mxu0 %v198_v36  ;;  %306 = vmatpush.msrb.mxu2 %v277_v61 }
  0x40   :  { %267 = vmatpush.msrb.mxu1 %v214_v37 }
  0x41   :  { %248 = vmatpush.msrb.mxu0 %v197_v38  ;;  %307 = vmatpush.msrb.mxu2 %v276_v62 }
  0x42   :  { %268 = vmatpush.msrb.mxu1 %v213_v39 }
  0x43   :  { %308 = vmatpush.msrb.mxu2 %v275_v63 }
  0x45   :  { %309 = vmatpush.msrb.mxu2 %v274_v0 }
  0x9e   :  { %v93_v29 = vpop.f32.mrf.mxu0 }
  0x9f   :  { %v113_v30 = vpop.f32.mrf.mxu1  ;;  %v94_v31 = vadd.f32 %v357_v26, %v93_v29 }
  0xa1   :  { %v114_v32 = vadd.f32 %v113_v30, %v94_v31 }
  0xa3   :  { %v116_v33 = vmax.f32 %v114_v32, 0.0 }
  0xa5   :  { %171 = vmatmul.f32.vlgmr.msra.gmra.mxu2 %v116_v33  ;;  %191 = vmatmul.f32.vlgmr.msra.gmra.mxu3 %v116_v33 }
 0x128   :  { %v172_v55 = vpop.f32.mrf.mxu2  ;;  %v192_v56 = vpop.f32.mrf.mxu3 }
 0x129   :  { %v173_v57 = vadd.f32 %v172_v55, %v151_v53  ;;  %v193_v58 = vadd.f32 %v192_v56, %v152_v54 }
 0x12b   :  { %v195_v59 = vmax.f32 %v173_v57, 0.0  ;;  %v196_v60 = vmax.f32 %v193_v58, 0.0 }
 0x12d   :  { %249 = vmatmul.f32.vlgmr.msrb.gmra.mxu0 %v195_v59  ;;  %269 = vmatmul.f32.vlgmr.msrb.gmra.mxu1 %v196_v60 }
 0x1aa   :  { %v250_v8 = vpop.f32.mrf.mxu0  ;;  %v270_v10 = vpop.f32.mrf.mxu1 }
 0x1ab   :  { %v251_v9 = vadd.f32 %v358_v7, %v250_v8 }
 0x1ad   :  { %v271_v11 = vadd.f32 %v270_v10, %v251_v9 }
 0x1af   :  { %v273_v12 = vmax.f32 %v271_v11, 0.0 }
 0x1b1   :  { %310 = vmatmul.f32.vlgmr.msrb.gmra.mxu2 %v273_v12 }
 0x234   :  { %v311_v16 = vpop.f32.mrf.mxu2 }
 0x235   :  { %v312_v17 = vadd.f32 %v359_v15, %v311_v16 }
 0x237   :  { %356 = vmatmul.msk.f32.vlgmr.msrb.gmra.mxu3 %vm326_vm0, %v312_v17 }
 0x2ba   :  { %v347_v19 = vpop.f32.mrf.mxu3 }
 0x2bb   :  { %v348_v20 = vadd.f32 %v360_v18, %v347_v19 }
 0x2bd   :  { %351 = vst.msk [vmem:[%s816_s11] sm:$0x3f] %vm350_vm1, %v348_v20 }

// kernel: model_forward.10
= control target key start
LH: loop header
LB: loop body
LE: loop exit
PB: predicated region body
PF: predicated region fallthrough
CT: control target
= control target key end

     0   :  { %vm56_vm0 = vcmask 261120   ;;  %s3408_s22 = smov 64   ;;  %s3410_s23 = smov 24   ;;  %vm410_vm1 = vcmask 64512   ;;  %vm494_vm9 = vcmask 392192   ;;  %s5508_s4 = inlined_call_operand.vmem [shape: f32[32,256], index: 4, kind: input, shape index: {}]   ;;  %s5509_s0 = inlined_call_operand.vmem [shape: f32[48,32], index: 0, kind: input, shape index: {}]   ;;  %s5510_s5 = inlined_call_operand.vmem [shape: f32[1,256], index: 5, kind: input, shape index: {}]   ;;  %s5511_s3 = inlined_call_operand.<no memory space> [shape: f32[1], index: 3, kind: input, shape index: {}]   ;;  %s5512_s1 = inlined_call_operand.vmem [shape: f32[48,48], index: 1, kind: input, shape index: {}]   ;;  %s5513_s2 = inlined_call_operand.vmem [shape: f32[48,48], index: 2, kind: input, shape index: {}]   ;;  %s5514_s6 = inlined_call_operand.vmem [shape: f32[64,64], index: 6, kind: input, shape index: {}]   ;;  %s5515_s7 = inlined_call_operand.vmem [shape: f32[1,64], index: 7, kind: input, shape index: {}]   ;;  %s5516_s8 = inlined_call_operand.vmem [shape: f32[64,128], index: 8, kind: input, shape index: {}]   ;;  %s5517_s9 = inlined_call_operand.vmem [shape: f32[1,128], index: 9, kind: input, shape index: {}]   ;;  %s5518_s10 = inlined_call_operand.vmem [shape: f32[48,32], index: 10, kind: output, shape index: {}]  }
   0x1   :  { %v48_v0 = vld [vmem:[%s5508_s4 + $0x30] sm:$0xff]  ;;  %v46_v1 = vld [vmem:[%s5508_s4 + $0x20] sm:$0xff]  ;;  %v39_v5 = vld [vmem:[%s5509_s0 + $0x18] sm:$0xff]  ;;  %s3411_s24 = smov 8   ;;  %s3412_s25 = smov 48  }
   0x2   :  { %87 = vmatpush.msra.mxu0 %v48_v0  ;;  %3029 = vmatpush.msra.mxu1 %v48_v0  ;;  %v44_v2 = vld [vmem:[%s5508_s4 + $0x10] sm:$0xff]  ;;  %v42_v3 = vld [vmem:[%s5508_s4] sm:$0xff]  ;;  %v49_v6 = vld [vmem:[%s5508_s4 + $0x38] sm:$0xff]  ;;  %s3413_s26 = smov 56   ;;  %s3414_s27 = smov 16  }
   0x3   :  { %v36_v4 = vld [vmem:[%s5509_s0] sm:$0xff]  ;;  %v47_v7 = vld [vmem:[%s5508_s4 + $0x28] sm:$0xff]  ;;  %v38_v10 = vld [vmem:[%s5509_s0 + $0x10] sm:$0xff]  ;;  %s3415_s28 = smov 40   ;;  %s3416_s29 = smov 88  }
   0x4   :  { %88 = vmatpush.msra.mxu0 %v46_v1  ;;  %3030 = vmatpush.msra.mxu1 %v46_v1  ;;  %v37_v8 = vld [vmem:[%s5509_s0 + $0x8] sm:$0xff]  ;;  %v40_v9 = vld [vmem:[%s5509_s0 + $0x20] sm:$0xff]  ;;  %v45_v12 = vld [vmem:[%s5508_s4 + $0x18] sm:$0xff]  ;;  %s3417_s30 = smov 80   ;;  %s3418_s11 = smov 72  }
   0x5   :  { %v41_v11 = vld [vmem:[%s5509_s0 + $0x28] sm:$0xff]  ;;  %v3531_v14 = vld [vmem:[%s5510_s5] sm:$0x3]  ;;  %s3409_s5 = smov 32   ;;  %s3419_s12 = smov 120  }
   0x6   :  { %89 = vmatpush.msra.mxu0 %v44_v2  ;;  %3031 = vmatpush.msra.mxu1 %v44_v2  ;;  %v43_v13 = vld [vmem:[%s5508_s4 + $0x8] sm:$0xff]  ;;  %v52_v15 = vperm.slane %v3531_v14, 0  ;;  %s3407_s4 = smov 96   ;;  %v53_v35 = vperm.slane %v3531_v14, 1  ;;  %s3420_s13 = smov 104  }
   0x7   :  { %s3421_s14 = smov 112  }
   0x8   :  { %90 = vmatpush.msra.mxu0 %v42_v3  ;;  %3032 = vmatpush.msra.mxu1 %v42_v3 }
   0x9   :  { %2843 = vmatmul.msk.f32.vlgmr.msra.gmra.mxu0 %vm56_vm0, %v36_v4  ;;  %2846 = vmatmul.msk.f32.vlgmr.msra.gmra.mxu1 %vm56_vm0, %v39_v5 }
   0xa   :  { %122 = vmatpush.msrb.mxu1 %v49_v6 }
   0xc   :  { %123 = vmatpush.msrb.mxu1 %v47_v7 }
   0xe   :  { %124 = vmatpush.msrb.mxu1 %v45_v12 }
  0x10   :  { %125 = vmatpush.msrb.mxu1 %v43_v13 }
  0x11   :  { %2844 = vmatmul.msk.f32.gmra.mxu0 %vm56_vm0, %v37_v8  ;;  %2847 = vmatmul.msk.f32.gmra.mxu1 %vm56_vm0, %v40_v9 }
  0x19   :  { %2845 = vmatmul.msk.f32.gmra.mxu0 %vm56_vm0, %v38_v10  ;;  %2848 = vmatmul.msk.f32.gmra.mxu1 %vm56_vm0, %v41_v11 }
  0x21   :  { %2849 = vmatmul.msk.f32.vlgmr.msrb.gmra.mxu1 %vm56_vm0, %v36_v4 }
  0x29   :  { %2850 = vmatmul.msk.f32.gmra.mxu1 %vm56_vm0, %v37_v8 }
  0x31   :  { %2851 = vmatmul.msk.f32.gmra.mxu1 %vm56_vm0, %v38_v10 }
  0x39   :  { %2852 = vmatmul.msk.f32.gmra.mxu1 %vm56_vm0, %v39_v5 }
  0x41   :  { %2853 = vmatmul.msk.f32.gmra.mxu1 %vm56_vm0, %v40_v9 }
  0x49   :  { %2854 = vmatmul.msk.f32.gmra.mxu1 %vm56_vm0, %v41_v11 }
  0x86   :  { %v92_v16 = vpop.f32.mrf.mxu0  ;;  %v101_v17 = vpop.f32.mrf.mxu1 }
  0x87   :  { %v3535_v18 = vadd.f32 %v92_v16, %v52_v15  ;;  %v3537_v19 = vadd.f32 %v101_v17, %v52_v15 }
  0x89   :  { %159 = vrot.lane.b32.xlu1 %v3537_v19, %s3407_s4  ;;  %386 = vrot.lane.b32.xlu0 %v3535_v18, %s3408_s22 }
  0x8a   :  { %153 = vrot.lane.b32.xlu2 %v3535_v18, %s3407_s4 }
  0x8e   :  { %v104_v20 = vpop.f32.mrf.mxu1  ;;  %v95_v21 = vpop.f32.mrf.mxu0 }
  0x8f   :  { %v3571_v22 = vadd.f32 %v104_v20, %v52_v15  ;;  %v3573_v23 = vadd.f32 %v95_v21, %v52_v15 }
  0x91   :  { %404 = vrot.lane.b32.xlu1 %v3537_v19, %s3409_s5  ;;  %392 = vrot.lane.b32.xlu0 %v3537_v19, %s3408_s22 }
  0x92   :  { %632 = vrot.lane.b32.xlu2 %v3537_v19, %s3410_s23 }
  0x96   :  { %v98_v24 = vpop.f32.mrf.mxu0  ;;  %v107_v26 = vpop.f32.mrf.mxu1 }
  0x97   :  { %v3611_v25 = vadd.f32 %v98_v24, %v52_v15  ;;  %v3621_v28 = vadd.f32 %v107_v26, %v52_v15 }
  0x99   :  { %1102 = vrot.lane.b32.xlu0 %v3537_v19, %s3411_s24  ;;  %398 = vrot.lane.b32.xlu1 %v3535_v18, %s3409_s5 }
  0x9a   :  { %626 = vrot.lane.b32.xlu2 %v3535_v18, %s3410_s23 }
  0x9e   :  { %v127_v31 = vpop.f32.mrf.mxu1 }
  0x9f   :  { %v3664_v40 = vadd.f32 %v127_v31, %v53_v35 }
  0xa1   :  { %852 = vrot.lane.b32.xlu0 %v3535_v18, %s3412_s25  ;;  %614 = vrot.lane.b32.xlu1 %v3535_v18, %s3413_s26 }
  0xa2   :  { %870 = vrot.lane.b32.xlu2 %v3537_v19, %s3414_s27 }
  0xa6   :  { %v130_v36 = vpop.f32.mrf.mxu1 }
  0xa7   :  { %v3678_v45 = vadd.f32 %v130_v36, %v53_v35 }
  0xa9   :  { %858 = vrot.lane.b32.xlu0 %v3537_v19, %s3412_s25  ;;  %620 = vrot.lane.b32.xlu1 %v3537_v19, %s3413_s26 }
  0xaa   :  { %1096 = vrot.lane.b32.xlu2 %v3535_v18, %s3411_s24 }
  0xae   :  { %v133_v41 = vpop.f32.mrf.mxu1 }
  0xaf   :  { %v3704_v54 = vadd.f32 %v133_v41, %v53_v35 }
  0xb1   :  { %161 = vrot.lane.b32.xlu0 %v3571_v22, %s3407_s4  ;;  %864 = vrot.lane.b32.xlu1 %v3535_v18, %s3414_s27 }
  0xb2   :  { %155 = vrot.lane.b32.xlu2 %v3573_v23, %s3407_s4 }
  0xb6   :  { %v136_v46 = vpop.f32.mrf.mxu1 }
  0xb7   :  { %v3729_v61 = vadd.f32 %v136_v46, %v53_v35 }
  0xb9   :  { %634 = vrot.lane.b32.xlu0 %v3571_v22, %s3410_s23  ;;  %1084 = vrot.lane.b32.xlu1 %v3535_v18, %s3415_s28  ;;  %v3924_v46 = vpack.i.bf16 %v3704_v54, %v3729_v61 }
  0xba   :  { %406 = vrot.lane.b32.xlu2 %v3571_v22, %s3409_s5 }
  0xbe   :  { %v139_v53 = vpop.f32.mrf.mxu1 }
  0xbf   :  { %v3721_v60 = vadd.f32 %v139_v53, %v53_v35 }
  0xc1   :  { %628 = vrot.lane.b32.xlu0 %v3573_v23, %s3410_s23  ;;  %1090 = vrot.lane.b32.xlu1 %v3537_v19, %s3415_s28 }
  0xc2   :  { %400 = vrot.lane.b32.xlu2 %v3573_v23, %s3409_s5 }
  0xc6   :  { %v142_v58 = vpop.f32.mrf.mxu1 }
  0xc7   :  { %v3718_v59 = vadd.f32 %v142_v58, %v53_v35 }
  0xc9   :  { %616 = vrot.lane.b32.xlu0 %v3573_v23, %s3413_s26  ;;  %872 = vrot.lane.b32.xlu1 %v3571_v22, %s3414_s27 }
  0xca   :  { %388 = vrot.lane.b32.xlu2 %v3573_v23, %s3408_s22  ;;  %589 = vmatpush.msrb.mxu0 %v3718_v59 }
  0xcc   :  { %590 = vmatpush.msrb.mxu0 %v3721_v60 }
  0xce   :  { %591 = vmatpush.msrb.mxu0 %v3729_v61 }
  0xd0   :  { %592 = vmatpush.msrb.mxu0 %v3704_v54 }
  0xd1   :  { %394 = vrot.lane.b32.xlu0 %v3571_v22, %s3408_s22  ;;  %622 = vrot.lane.b32.xlu1 %v3571_v22, %s3413_s26 }
  0xd2   :  { %1104 = vrot.lane.b32.xlu2 %v3571_v22, %s3411_s24  ;;  %593 = vmatpush.msrb.mxu0 %v3678_v45 }
  0xd4   :  { %594 = vmatpush.msrb.mxu0 %v3664_v40 }
  0xd9   :  { %1098 = vrot.lane.b32.xlu0 %v3573_v23, %s3411_s24  ;;  %1092 = vrot.lane.b32.xlu1 %v3571_v22, %s3415_s28 }
  0xda   :  { %866 = vrot.lane.b32.xlu2 %v3573_v23, %s3414_s27 }
  0xe1   :  { %1086 = vrot.lane.b32.xlu0 %v3573_v23, %s3415_s28  ;;  %157 = vrot.lane.b32.xlu1 %v3611_v25, %s3407_s4 }
  0xe2   :  { %854 = vrot.lane.b32.xlu2 %v3573_v23, %s3412_s25 }
  0xe4   :  { %v3619_v27 = vpop.permute.xlu2 %153 }
  0xe9   :  { %860 = vrot.lane.b32.xlu0 %v3571_v22, %s3412_s25  ;;  %636 = vrot.lane.b32.xlu1 %v3621_v28, %s3410_s23 }
  0xea   :  { %618 = vrot.lane.b32.xlu2 %v3611_v25, %s3413_s26 }
  0xec   :  { %v3629_v29 = vpop.permute.xlu2 %632 }
  0xf1   :  { %163 = vrot.lane.b32.xlu0 %v3621_v28, %s3407_s4  ;;  %630 = vrot.lane.b32.xlu1 %v3611_v25, %s3410_s23 }
  0xf2   :  { %874 = vrot.lane.b32.xlu2 %v3621_v28, %s3414_s27 }
  0xf4   :  { %v3637_v30 = vpop.permute.xlu2 %626 }
  0xf9   :  { %408 = vrot.lane.b32.xlu0 %v3621_v28, %s3409_s5  ;;  %390 = vrot.lane.b32.xlu1 %v3611_v25, %s3408_s22 }
  0xfa   :  { %1100 = vrot.lane.b32.xlu2 %v3611_v25, %s3411_s24 }
  0xfb   :  { %v3645_v32 = vpop.permute.xlu1 %159  ;;  %v3647_v33 = vpop.permute.xlu0 %386 }
  0xfc   :  { %v3649_v34 = vpop.permute.xlu2 %870 }
 0x101   :  { %402 = vrot.lane.b32.xlu0 %v3611_v25, %s3409_s5  ;;  %868 = vrot.lane.b32.xlu1 %v3611_v25, %s3414_s27 }
 0x102   :  { %1088 = vrot.lane.b32.xlu2 %v3611_v25, %s3415_s28 }
 0x103   :  { %v3658_v37 = vpop.permute.xlu1 %404  ;;  %v3660_v38 = vpop.permute.xlu0 %392 }
 0x104   :  { %v3662_v39 = vpop.permute.xlu2 %1096 }
 0x109   :  { %1106 = vrot.lane.b32.xlu0 %v3621_v28, %s3411_s24  ;;  %624 = vrot.lane.b32.xlu1 %v3621_v28, %s3413_s26 }
 0x10a   :  { %1658 = vrot.lane.b32.xlu2 %v3664_v40, %s3413_s26 }
 0x10b   :  { %v3672_v42 = vpop.permute.xlu0 %1102  ;;  %v3674_v43 = vpop.permute.xlu1 %398 }
 0x10c   :  { %v3676_v44 = vpop.permute.xlu2 %155 }
 0x111   :  { %396 = vrot.lane.b32.xlu0 %v3621_v28, %s3408_s22  ;;  %856 = vrot.lane.b32.xlu1 %v3611_v25, %s3412_s25 }
 0x112   :  { %1422 = vrot.lane.b32.xlu2 %v3678_v45, %s3408_s22 }
 0x113   :  { %v3686_v47 = vpop.permute.xlu0 %852  ;;  %v3688_v48 = vpop.permute.xlu1 %614 }
 0x114   :  { %v3690_v49 = vpop.permute.xlu2 %406 }
 0x119   :  { %862 = vrot.lane.b32.xlu0 %v3621_v28, %s3412_s25  ;;  %1094 = vrot.lane.b32.xlu1 %v3621_v28, %s3415_s28 }
 0x11a   :  { %1410 = vrot.lane.b32.xlu2 %v3678_v45, %s3407_s4 }
 0x11b   :  { %v3698_v50 = vpop.permute.xlu0 %858  ;;  %v3700_v51 = vpop.permute.xlu1 %620 }
 0x11c   :  { %v3702_v52 = vpop.permute.xlu2 %400 }
 0x121   :  { %1408 = vrot.lane.b32.xlu0 %v3664_v40, %s3407_s4  ;;  %1420 = vrot.lane.b32.xlu1 %v3664_v40, %s3408_s22 }
 0x122   :  { %1662 = vrot.lane.b32.xlu2 %v3704_v54, %s3413_s26 }
 0x123   :  { %v3712_v55 = vpop.permute.xlu0 %161  ;;  %v3714_v56 = vpop.permute.xlu1 %864 }
 0x124   :  { %v3716_v57 = vpop.permute.xlu2 %388 }
 0x129   :  { %1660 = vrot.lane.b32.xlu0 %v3678_v45, %s3413_s26  ;;  %1646 = vrot.lane.b32.xlu1 %v3664_v40, %s3416_s29 }
 0x12a   :  { %1650 = vrot.lane.b32.xlu2 %v3704_v54, %s3416_s29 }
 0x12b   :  { %v635_v62 = vpop.permute.xlu0 %634  ;;  %v3732_v63 = vpop.permute.xlu1 %1084 }
 0x12c   :  { %v3734_v0 = vpop.permute.xlu2 %1104 }
 0x131   :  { %1648 = vrot.lane.b32.xlu0 %v3678_v45, %s3416_s29  ;;  %1424 = vrot.lane.b32.xlu1 %v3704_v54, %s3408_s22 }
 0x132   :  { %1426 = vrot.lane.b32.xlu2 %v3729_v61, %s3408_s22 }
 0x133   :  { %v629_v1 = vpop.permute.xlu0 %628  ;;  %v3746_v2 = vpop.permute.xlu1 %1090 }
 0x134   :  { %v3748_v3 = vpop.permute.xlu2 %866 }
 0x139   :  { %1664 = vrot.lane.b32.xlu0 %v3729_v61, %s3413_s26  ;;  %1412 = vrot.lane.b32.xlu1 %v3704_v54, %s3407_s4 }
 0x13a   :  { %1666 = vrot.lane.b32.xlu2 %v3721_v60, %s3413_s26 }
 0x13b   :  { %v3756_v4 = vpop.permute.xlu0 %616  ;;  %v3758_v5 = vpop.permute.xlu1 %872 }
 0x13c   :  { %v3760_v6 = vpop.permute.xlu2 %854 }
 0x141   :  { %1414 = vrot.lane.b32.xlu0 %v3729_v61, %s3407_s4  ;;  %1652 = vrot.lane.b32.xlu1 %v3729_v61, %s3416_s29 }
 0x142   :  { %2130 = vrot.lane.b32.xlu2 %v3721_v60, %s3415_s28 }
 0x143   :  { %v3768_v7 = vpop.permute.xlu0 %394  ;;  %v3770_v8 = vpop.permute.xlu1 %622 }
 0x144   :  { %v3772_v9 = vpop.permute.xlu2 %618 }
 0x149   :  { %1668 = vrot.lane.b32.xlu0 %v3718_v59, %s3413_s26  ;;  %1428 = vrot.lane.b32.xlu1 %v3721_v60, %s3408_s22 }
 0x14a   :  { %1430 = vrot.lane.b32.xlu2 %v3718_v59, %s3408_s22 }
 0x14b   :  { %v3780_v10 = vpop.permute.xlu0 %1098  ;;  %v3782_v11 = vpop.permute.xlu1 %1092 }
 0x14c   :  { %v3784_v12 = vpop.permute.xlu2 %874 }
 0x151   :  { %2132 = vrot.lane.b32.xlu0 %v3718_v59, %s3415_s28  ;;  %1898 = vrot.lane.b32.xlu1 %v3721_v60, %s3412_s25 }
 0x152   :  { %1900 = vrot.lane.b32.xlu2 %v3718_v59, %s3412_s25 }
 0x153   :  { %v3792_v13 = vpop.permute.xlu0 %1086  ;;  %v158_v14 = vpop.permute.xlu1 %157 }
 0x154   :  { %v3794_v15 = vpop.permute.xlu2 %1100 }
 0x159   :  { %1416 = vrot.lane.b32.xlu0 %v3721_v60, %s3407_s4  ;;  %1654 = vrot.lane.b32.xlu1 %v3721_v60, %s3416_s29 }
 0x15a   :  { %1896 = vrot.lane.b32.xlu2 %v3729_v61, %s3412_s25 }
 0x15b   :  { %v3802_v16 = vpop.permute.xlu0 %860  ;;  %v637_v17 = vpop.permute.xlu1 %636 }
 0x15c   :  { %v3804_v20 = vpop.permute.xlu2 %1088  ;;  %2891 = vmatpush.xpose.msk.msra.mxu1 %vm410_vm1, %v637_v17 }
 0x160   :  { %2892 = vmatpush.xpose.msk.msra.mxu1 %vm410_vm1, %v635_v62 }
 0x161   :  { %2128 = vrot.lane.b32.xlu0 %v3729_v61, %s3415_s28  ;;  %1894 = vrot.lane.b32.xlu1 %v3704_v54, %s3412_s25 }
 0x162   :  { %2126 = vrot.lane.b32.xlu2 %v3704_v54, %s3415_s28 }
 0x163   :  { %v164_v21 = vpop.permute.xlu0 %163  ;;  %v631_v24 = vpop.permute.xlu1 %630 }
 0x164   :  { %v3814_v26 = vpop.permute.xlu2 %1658  ;;  %2855 = vmatpush.xpose.msk.msra.mxu2 %vm56_vm0, %v164_v21  ;;  %2893 = vmatpush.xpose.msk.msra.mxu1 %vm410_vm1, %v3629_v29 }
 0x168   :  { %2856 = vmatpush.xpose.msk.msra.mxu2 %vm56_vm0, %v3712_v55  ;;  %2894 = vmatpush.xpose.msk.msra.mxu1 %vm410_vm1, %v631_v24 }
 0x169   :  { %1418 = vrot.lane.b32.xlu0 %v3718_v59, %s3407_s4  ;;  %1656 = vrot.lane.b32.xlu1 %v3718_v59, %s3416_s29 }
 0x16a   :  { %1892 = vrot.lane.b32.xlu2 %v3678_v45, %s3412_s25 }
 0x16b   :  { %v409_v31 = vpop.permute.xlu0 %408  ;;  %v3828_v35 = vpop.permute.xlu1 %390 }
 0x16c   :  { %v3830_v36 = vpop.permute.xlu2 %1422  ;;  %2857 = vmatpush.xpose.msk.msra.mxu2 %vm56_vm0, %v3645_v32  ;;  %2873 = vmatpush.xpose.msk.msra.mxu3 %vm410_vm1, %v409_v31 }
 0x16d   :  { %2895 = vmatpush.xpose.msk.msra.mxu1 %vm410_vm1, %v629_v1 }
 0x170   :  { %2858 = vmatpush.xpose.msk.msra.mxu2 %vm56_vm0, %v158_v14  ;;  %2874 = vmatpush.xpose.msk.msra.mxu3 %vm410_vm1, %v3690_v49 }
 0x171   :  { %2896 = vmatpush.xpose.msk.msra.mxu1 %vm410_vm1, %v3637_v30  ;;  %2124 = vrot.lane.b32.xlu0 %v3678_v45, %s3415_s28 }
 0x172   :  { %1890 = vrot.lane.b32.xlu1 %v3664_v40, %s3412_s25  ;;  %2122 = vrot.lane.b32.xlu2 %v3664_v40, %s3415_s28 }
 0x173   :  { %v403_v29 = vpop.permute.xlu0 %402  ;;  %v869_v32 = vpop.permute.xlu1 %868 }
 0x174   :  { %2897 = vmatmul.msk.f32.vlgmr.msra.gmra.mxu1 %vm410_vm1, %v3688_v48  ;;  %v3849_v41 = vpop.permute.xlu2 %1410  ;;  %2859 = vmatpush.xpose.msk.msra.mxu2 %vm56_vm0, %v3676_v44  ;;  %v3948_v48 = vpack.i.bf16 %v3721_v60, %v3718_v59 }
 0x175   :  { %2875 = vmatpush.xpose.msk.msra.mxu3 %vm410_vm1, %v3658_v37 }
 0x178   :  { %2860 = vmatpush.xpose.msk.msra.mxu2 %vm56_vm0, %v3619_v27 }
 0x179   :  { %2876 = vmatpush.xpose.msk.msra.mxu3 %vm410_vm1, %v403_v29  ;;  %1878 = vrot.lane.b32.xlu0 %v3664_v40, %s3417_s30 }
 0x17a   :  { %2110 = vrot.lane.b32.xlu1 %v3664_v40, %s3418_s11  ;;  %1880 = vrot.lane.b32.xlu2 %v3678_v45, %s3417_s30 }
 0x17b   :  { %v1107_v30 = vpop.permute.xlu0 %1106  ;;  %v625_v44 = vpop.permute.xlu1 %624  ;;  %2861 = vmatmul.msk.f32.vlgmr.msra.gmra.mxu2 %vm56_vm0, %v3535_v18 }
 0x17c   :  { %2898 = vmatmul.msk.f32.gmra.mxu1 %vm410_vm1, %v3756_v4  ;;  %v3868_v27 = vpop.permute.xlu2 %1662 }
 0x17d   :  { %2877 = vmatpush.xpose.msk.msra.mxu3 %vm410_vm1, %v3702_v52  ;;  %2927 = vmatpush.xpose.msk.msrb.mxu1 %vm410_vm1, %v1107_v30 }
 0x181   :  { %2878 = vmatpush.xpose.msk.msra.mxu3 %vm410_vm1, %v3674_v43  ;;  %2928 = vmatpush.xpose.msk.msrb.mxu1 %vm410_vm1, %v3734_v0 }
 0x182   :  { %2112 = vrot.lane.b32.xlu0 %v3678_v45, %s3418_s11  ;;  %1882 = vrot.lane.b32.xlu1 %v3704_v54, %s3417_s30 }
 0x183   :  { %2114 = vrot.lane.b32.xlu2 %v3704_v54, %s3418_s11  ;;  %v397_v18 = vpop.permute.xlu0 %396  ;;  %v3885_v37 = vpop.permute.xlu1 %856  ;;  %2862 = vmatmul.msk.f32.gmra.mxu2 %vm56_vm0, %v3573_v23 }
 0x184   :  { %2879 = vmatmul.msk.f32.vlgmr.msra.gmra.mxu3 %vm410_vm1, %v3647_v33  ;;  %v3891_v43 = vpop.permute.xlu2 %1650  ;;  %2899 = vmatmul.msk.f32.gmra.mxu1 %vm410_vm1, %v3772_v9 }
 0x185   :  { %2909 = vmatpush.xpose.msk.msrb.mxu3 %vm410_vm1, %v3784_v12  ;;  %2929 = vmatpush.xpose.msk.msrb.mxu1 %vm410_vm1, %v3672_v42 }
 0x189   :  { %2910 = vmatpush.xpose.msk.msrb.mxu3 %vm410_vm1, %v3758_v5  ;;  %2930 = vmatpush.xpose.msk.msrb.mxu1 %vm410_vm1, %v3794_v15 }
 0x18a   :  { %1884 = vrot.lane.b32.xlu0 %v3729_v61, %s3417_s30  ;;  %2118 = vrot.lane.b32.xlu1 %v3721_v60, %s3418_s11 }
 0x18b   :  { %2116 = vrot.lane.b32.xlu2 %v3729_v61, %s3418_s11  ;;  %v3907_v23 = vpop.permute.xlu0 %862  ;;  %v3909_v33 = vpop.permute.xlu1 %1094  ;;  %2863 = vmatmul.msk.f32.gmra.mxu2 %vm56_vm0, %v3611_v25 }
 0x18c   :  { %v1427_v42 = vpop.permute.xlu2 %1426  ;;  %2880 = vmatmul.msk.f32.gmra.mxu3 %vm410_vm1, %v3716_v57  ;;  %2900 = vmatmul.msk.f32.gmra.mxu1 %vm410_vm1, %v3700_v51 }
 0x18d   :  { %2911 = vmatpush.xpose.msk.msrb.mxu3 %vm410_vm1, %v3649_v34  ;;  %2931 = vmatpush.xpose.msk.msrb.mxu1 %vm410_vm1, %v3780_v10 }
 0x191   :  { %2912 = vmatpush.xpose.msk.msrb.mxu3 %vm410_vm1, %v869_v32  ;;  %2932 = vmatpush.xpose.msk.msrb.mxu1 %vm410_vm1, %v3662_v39 }
 0x192   :  { %2120 = vrot.lane.b32.xlu0 %v3718_v59, %s3418_s11  ;;  %3054 = vrot.lane.b32.xlu1 %v3924_v46, %s3419_s12 }
 0x193   :  { %1886 = vrot.lane.b32.xlu2 %v3721_v60, %s3417_s30  ;;  %v3934_v25 = vpop.permute.xlu0 %1408  ;;  %v1421_v34 = vpop.permute.xlu1 %1420  ;;  %2864 = vmatmul.msk.f32.gmra.mxu2 %vm56_vm0, %v3537_v19 }
 0x194   :  { %v1667_v39 = vpop.permute.xlu2 %1666  ;;  %2881 = vmatmul.msk.f32.gmra.mxu3 %vm410_vm1, %v3828_v35  ;;  %2901 = vmatmul.msk.f32.gmra.mxu1 %vm410_vm1, %v3770_v8 }
 0x195   :  { %2913 = vmatpush.xpose.msk.msrb.mxu3 %vm410_vm1, %v3748_v3 }
 0x199   :  { %2914 = vmatpush.xpose.msk.msrb.mxu3 %vm410_vm1, %v3714_v56 }
 0x19a   :  { %3069 = vrot.lane.b32.xlu0 %v3924_v46, %s3420_s13  ;;  %3074 = vrot.lane.b32.xlu1 %v3948_v48, %s3421_s14 }
 0x19b   :  { %1888 = vrot.lane.b32.xlu2 %v3718_v59, %s3417_s30  ;;  %v1661_v19 = vpop.permute.xlu0 %1660  ;;  %v1647_v49 = vpop.permute.xlu1 %1646  ;;  %2865 = vmatmul.msk.f32.gmra.mxu2 %vm56_vm0, %v3571_v22  ;;  %v3972_v22 = vpack.i.bf16 %v3664_v40, %v3678_v45 }
 0x19c   :  { %v2131_v51 = vpop.permute.xlu2 %2130  ;;  %2882 = vmatmul.msk.f32.gmra.mxu3 %vm410_vm1, %v3660_v38  ;;  %2902 = vmatmul.msk.f32.gmra.mxu1 %vm410_vm1, %v625_v44 }
 0x1a3   :  { %3049 = vrot.lane.b32.xlu2 %v3948_v48, %s3419_s12  ;;  %v1649_v52 = vpop.permute.xlu0 %1648  ;;  %v1425_v53 = vpop.permute.xlu1 %1424  ;;  %2866 = vmatmul.msk.f32.gmra.mxu2 %vm56_vm0, %v3621_v28 }
 0x1a4   :  { %v1431_v54 = vpop.permute.xlu2 %1430  ;;  %2883 = vmatmul.msk.f32.gmra.mxu3 %vm410_vm1, %v3768_v7  ;;  %2933 = vmatmul.msk.f32.vlgmr.msrb.gmra.mxu1 %vm410_vm1, %v3732_v63 }
 0x1a5   :  { %2945 = vmatpush.xpose.msk.msra.mxu3 %vm410_vm1, %v1431_v54 }
 0x1ab   :  { %3059 = vrot.lane.b32.xlu2 %v3972_v22, %s3419_s12  ;;  %v1665_v38 = vpop.permute.xlu0 %1664  ;;  %v3976_v55 = vpop.permute.xlu1 %1412 }
 0x1ac   :  { %v1901_v28 = vpop.permute.xlu2 %1900  ;;  %2884 = vmatmul.msk.f32.gmra.mxu3 %vm410_vm1, %v397_v18  ;;  %2934 = vmatmul.msk.f32.gmra.mxu1 %vm410_vm1, %v3792_v13 }
 0x1b3   :  { %3064 = vrot.lane.b32.xlu2 %v3948_v48, %s3420_s13  ;;  %v3983_v56 = vpop.permute.xlu0 %1414  ;;  %v1653_v57 = vpop.permute.xlu1 %1652 }
 0x1b4   :  { %v1897_v40 = vpop.permute.xlu2 %1896  ;;  %2915 = vmatmul.msk.f32.vlgmr.msrb.gmra.mxu3 %vm410_vm1, %v3686_v47  ;;  %2935 = vmatmul.msk.f32.gmra.mxu1 %vm410_vm1, %v3804_v20  ;;  %v4070_v20 = vstv %s5511_s3 }
 0x1bb   :  { %v1669_v45 = vpop.permute.xlu0 %1668  ;;  %v1429_v58 = vpop.permute.xlu1 %1428 }
 0x1bc   :  { %v2127_v59 = vpop.permute.xlu2 %2126  ;;  %2946 = vmatpush.xpose.msk.msra.mxu3 %vm410_vm1, %v1429_v58  ;;  %2963 = vmatpush.xpose.msk.msra.mxu1 %vm410_vm1, %v1669_v45 }
 0x1bd   :  { %2916 = vmatmul.msk.f32.gmra.mxu3 %vm410_vm1, %v3760_v6  ;;  %2936 = vmatmul.msk.f32.gmra.mxu1 %vm410_vm1, %v3746_v2 }
 0x1c0   :  { %2947 = vmatpush.xpose.msk.msra.mxu3 %vm410_vm1, %v1427_v42  ;;  %2964 = vmatpush.xpose.msk.msra.mxu1 %vm410_vm1, %v1667_v39 }
 0x1c3   :  { %v2133_v47 = vpop.permute.xlu0 %2132  ;;  %v1899_v60 = vpop.permute.xlu1 %1898 }
 0x1c4   :  { %v1893_v61 = vpop.permute.xlu2 %1892  ;;  %2948 = vmatpush.xpose.msk.msra.mxu3 %vm410_vm1, %v1425_v53  ;;  %2965 = vmatpush.xpose.msk.msra.mxu1 %vm410_vm1, %v1665_v38 }
 0x1c5   :  { %2917 = vmatmul.msk.f32.gmra.mxu3 %vm410_vm1, %v3885_v37  ;;  %2937 = vmatmul.msk.f32.gmra.mxu1 %vm410_vm1, %v3782_v11 }
 0x1c8   :  { %2949 = vmatpush.xpose.msk.msra.mxu3 %vm410_vm1, %v3830_v36  ;;  %2966 = vmatpush.xpose.msk.msra.mxu1 %vm410_vm1, %v3868_v27 }
 0x1cb   :  { %v4007_v62 = vpop.permute.xlu0 %1416  ;;  %v1655_v63 = vpop.permute.xlu1 %1654 }
 0x1cc   :  { %v2123_v0 = vpop.permute.xlu2 %2122  ;;  %2950 = vmatpush.xpose.msk.msra.mxu3 %vm410_vm1, %v1421_v34  ;;  %2967 = vmatpush.xpose.msk.msra.mxu1 %vm410_vm1, %v1661_v19 }
 0x1cd   :  { %2918 = vmatmul.msk.f32.gmra.mxu3 %vm410_vm1, %v3698_v50  ;;  %2938 = vmatmul.msk.f32.gmra.mxu1 %vm410_vm1, %v3909_v33 }
 0x1d0   :  { %2981 = vmatpush.xpose.msk.msrb.mxu3 %vm410_vm1, %v1901_v28  ;;  %2968 = vmatpush.xpose.msk.msra.mxu1 %vm410_vm1, %v3814_v26 }
 0x1d3   :  { %v2129_v1 = vpop.permute.xlu0 %2128  ;;  %v1895_v2 = vpop.permute.xlu1 %1894 }
 0x1d4   :  { %2999 = vmatpush.xpose.msk.msrb.mxu1 %vm410_vm1, %v2133_v47  ;;  %2982 = vmatpush.xpose.msk.msrb.mxu3 %vm410_vm1, %v1899_v60  ;;  %v4020_v3 = vpop.permute.xlu2 %1880 }
 0x1d5   :  { %2919 = vmatmul.msk.f32.gmra.mxu3 %vm410_vm1, %v3802_v16  ;;  %2969 = vmatmul.msk.f32.vlgmr.msra.gmra.mxu1 %vm410_vm1, %v1647_v49 }
 0x1d8   :  { %2983 = vmatpush.xpose.msk.msrb.mxu3 %vm410_vm1, %v1897_v40  ;;  %3000 = vmatpush.xpose.msk.msrb.mxu1 %vm410_vm1, %v2131_v51 }
 0x1db   :  { %v4029_v50 = vpop.permute.xlu0 %1418  ;;  %v1657_v4 = vpop.permute.xlu1 %1656 }
 0x1dc   :  { %2984 = vmatpush.xpose.msk.msrb.mxu3 %vm410_vm1, %v1895_v2  ;;  %3001 = vmatpush.xpose.msk.msrb.mxu1 %vm410_vm1, %v2129_v1 }
 0x1dd   :  { %2920 = vmatmul.msk.f32.gmra.mxu3 %vm410_vm1, %v3907_v23  ;;  %2970 = vmatmul.msk.f32.gmra.mxu1 %vm410_vm1, %v1649_v52  ;;  %v4034_v5 = vpop.permute.xlu2 %2114 }
 0x1e0   :  { %2985 = vmatpush.xpose.msk.msrb.mxu3 %vm410_vm1, %v1893_v61  ;;  %3002 = vmatpush.xpose.msk.msrb.mxu1 %vm410_vm1, %v2127_v59 }
 0x1e3   :  { %v2125_v6 = vpop.permute.xlu0 %2124 }
 0x1e4   :  { %v1891_v7 = vpop.permute.xlu1 %1890  ;;  %3003 = vmatpush.xpose.msk.msrb.mxu1 %vm410_vm1, %v2125_v6 }
 0x1e5   :  { %2951 = vmatmul.msk.f32.vlgmr.msra.gmra.mxu3 %vm410_vm1, %v3934_v25  ;;  %2971 = vmatmul.msk.f32.gmra.mxu1 %vm410_vm1, %v3891_v43  ;;  %v4043_v8 = vpop.permute.xlu2 %2116 }
 0x1e6   :  { %2986 = vmatpush.xpose.msk.msrb.mxu3 %vm410_vm1, %v1891_v7 }
 0x1e8   :  { %3004 = vmatpush.xpose.msk.msrb.mxu1 %vm410_vm1, %v2123_v0 }
 0x1eb   :  { %v4047_v9 = vpop.permute.xlu0 %1878 }
 0x1ec   :  { %v2111_v10 = vpop.permute.xlu1 %2110 }
 0x1ed   :  { %2952 = vmatmul.msk.f32.gmra.mxu3 %vm410_vm1, %v3849_v41  ;;  %2972 = vmatmul.msk.f32.gmra.mxu1 %vm410_vm1, %v1653_v57  ;;  %v4052_v11 = vpop.permute.xlu2 %1886 }
 0x1f1   :  { %v4054_v12 = vpop.f32.mrf.mxu1 }
 0x1f4   :  { %v2113_v13 = vpop.permute.xlu0 %2112  ;;  %v4056_v14 = vpop.permute.xlu1 %1882 }
 0x1f5   :  { %2953 = vmatmul.msk.f32.gmra.mxu3 %vm410_vm1, %v3976_v55  ;;  %2973 = vmatmul.msk.f32.gmra.mxu1 %vm410_vm1, %v1655_v63  ;;  %v4061_v15 = vpop.permute.xlu2 %1888 }
 0x1f9   :  { %v4063_v16 = vpop.f32.mrf.mxu1 }
 0x1fc   :  { %v4065_v17 = vpop.permute.xlu0 %1884  ;;  %v4072_v21 = vpop.permute.xlu1 %2118 }
 0x1fd   :  { %2954 = vmatmul.msk.f32.gmra.mxu3 %vm410_vm1, %v3983_v56  ;;  %2974 = vmatmul.msk.f32.gmra.mxu1 %vm410_vm1, %v1657_v4  ;;  %v3050_v24 = vpop.permute.xlu2 %3049 }
 0x1fe   :  { %v206_v26 = vpop.f32.mrf.mxu2  ;;  %v3051_v31 = vunpack.i.l.bf16 %v3050_v24  ;;  %v3052_v36 = vunpack.i.h.bf16 %v3050_v24 }
 0x1ff   :  { %v207_v35 = vadd.f32 %v206_v26, %v4070_v20 }
 0x200   :  { %827 = vmatpush.msrb.mxu2 %v3051_v31 }
 0x201   :  { %v2867_v29 = vmul.f32 -1.442695, %v207_v35  ;;  %v4078_v32 = vpop.f32.mrf.mxu1 }
 0x202   :  { %828 = vmatpush.msrb.mxu2 %v3052_v36  ;;  %v338_v36 = vld [vmem:[%s5512_s1] sm:$0xff] }
 0x203   :  { %3155 = vpow2.f32 %v2867_v29  ;;  %v4118_v29 = vld [vmem:[%s5513_s2] sm:$0xff] }
 0x204   :  { %v3055_v41 = vpop.permute.xlu1 %3054  ;;  %v4083_v44 = vpop.permute.xlu0 %2120  ;;  %vm482_vm7 = vcmp.eq.f32.partialorder %v4118_v29, 0.0 }
 0x205   :  { %2955 = vmatmul.msk.f32.gmra.mxu3 %vm410_vm1, %v4007_v62  ;;  %3005 = vmatmul.msk.f32.vlgmr.msrb.gmra.mxu1 %vm410_vm1, %v2111_v10  ;;  %v3060_v30 = vpop.permute.xlu2 %3059  ;;  %v3056_v27 = vunpack.i.l.bf16 %v3055_v41  ;;  %v3057_v23 = vunpack.i.h.bf16 %v3055_v41 }
 0x206   :  { %v209_v18 = vpop.f32.mrf.mxu2  ;;  %v3061_v39 = vunpack.i.l.bf16 %v3060_v30  ;;  %v3062_v19 = vunpack.i.h.bf16 %v3060_v30 }
 0x207   :  { %v4085_v37 = vpop.f32.mrf.mxu3  ;;  %v210_v43 = vadd.f32 %v209_v18, %v4070_v20  ;;  %829 = vmatpush.msrb.mxu2 %v3056_v27 }
 0x209   :  { %v3156_v33 = vpop.eup %3155  ;;  %v2868_v25 = vmul.f32 -1.442695, %v210_v43  ;;  %v4088_v34 = vpop.f32.mrf.mxu1  ;;  %830 = vmatpush.msrb.mxu2 %v3057_v23 }
 0x20a   :  { %v242_v42 = vadd.f32 1.0, %v3156_v33 }
 0x20b   :  { %831 = vmatpush.msrb.mxu2 %v3061_v39 }
 0x20c   :  { %3157 = vrcp.f32 %v242_v42  ;;  %v3075_v49 = vpop.permute.xlu1 %3074  ;;  %v3070_v38 = vpop.permute.xlu0 %3069  ;;  %v259_v0 = vand.u32 2147483648, %v242_v42  ;;  %v257_v2 = vand.u32 2147483647, %v242_v42  ;;  %vm253_vm3 = vweird.f32 %v242_v42 }
 0x20d   :  { %3159 = vpow2.f32 %v2868_v25  ;;  %2956 = vmatmul.msk.f32.gmra.mxu3 %vm410_vm1, %v4029_v50  ;;  %3006 = vmatmul.msk.f32.gmra.mxu1 %vm410_vm1, %v2113_v13  ;;  %v3065_v51 = vpop.permute.xlu2 %3064  ;;  %v3076_v52 = vunpack.i.l.bf16 %v3075_v49  ;;  %v3077_v55 = vunpack.i.h.bf16 %v3075_v49  ;;  %v3071_v60 = vunpack.i.l.bf16 %v3070_v38 }
 0x20e   :  { %832 = vmatpush.msrb.mxu2 %v3062_v19  ;;  %v3066_v53 = vunpack.i.l.bf16 %v3065_v51  ;;  %v212_v54 = vpop.f32.mrf.mxu2  ;;  %v3067_v57 = vunpack.i.h.bf16 %v3065_v51  ;;  %v3072_v63 = vunpack.i.h.bf16 %v3070_v38  ;;  %vm258_vm5 = vcmp.eq.f32.partialorder %v257_v2, 8.507059e+37 }
 0x20f   :  { %v213_v28 = vadd.f32 %v212_v54, %v4070_v20  ;;  %v4094_v56 = vpop.f32.mrf.mxu3  ;;  %1059 = vmatpush.msra.mxu0 %v3076_v52 }
 0x210   :  { %1291 = vmatpush.msra.mxu2 %v3066_v53 }
 0x211   :  { %v2869_v45 = vmul.f32 -1.442695, %v213_v28  ;;  %v4096_v58 = vpop.f32.mrf.mxu1  ;;  %1060 = vmatpush.msra.mxu0 %v3077_v55 }
 0x212   :  { %v3158_v40 = vpop.eup %3157  ;;  %1292 = vmatpush.msra.mxu2 %v3067_v57 }
 0x213   :  { %v3160_v59 = vpop.eup %3159  ;;  %v249_v47 = vmul.f32 %v3158_v40, %v242_v42  ;;  %3161 = vpow2.f32 %v2869_v45  ;;  %vm254_vm2 = vweird.f32 %v3158_v40 }
 0x214   :  { %v4098_v61 = vadd.f32 1.0, %v3160_v59  ;;  %1293 = vmatpush.msra.mxu2 %v3071_v60  ;;  %vm255_vm4 = vmor %vm253_vm3, %vm254_vm2 }
 0x215   :  { %v250_v62 = vsub.f32 1.0, %v249_v47  ;;  %2987 = vmatmul.msk.f32.vlgmr.msrb.gmra.mxu3 %vm410_vm1, %v4047_v9  ;;  %3007 = vmatmul.msk.f32.gmra.mxu1 %vm410_vm1, %v4034_v5  ;;  %v260_v9 = vor.u32 1.1754944e-38, %v259_v0  ;;  %v4161_v47 = vld [vmem:[%s5512_s1 + $0x8] sm:$0xff] }
 0x216   :  { %3163 = vrcp.f32 %v4098_v61  ;;  %1294 = vmatpush.msra.mxu2 %v3072_v63  ;;  %v215_v50 = vpop.f32.mrf.mxu2  ;;  %v272_v23 = vand.u32 2147483647, %v4098_v61  ;;  %v274_v33 = vand.u32 2147483648, %v4098_v61  ;;  %vm268_vm12 = vweird.f32 %v4098_v61 }
 0x217   :  { %v251_v1 = vmul.f32 %v3158_v40, %v250_v62  ;;  %v216_v4 = vadd.f32 %v215_v50, %v4070_v20  ;;  %v4106_v6 = vpop.f32.mrf.mxu3 }
 0x218   :  { %vm273_vm14 = vcmp.eq.f32.partialorder %v272_v23, 8.507059e+37 }
 0x219   :  { %v252_v7 = vadd.f32 %v3158_v40, %v251_v1  ;;  %v3162_v10 = vpop.eup %3161  ;;  %v2870_v13 = vmul.f32 -1.442695, %v216_v4  ;;  %v4108_v24 = vpop.f32.mrf.mxu1 }
 0x21a   :  { %v4110_v5 = vadd.f32 1.0, %v3162_v10 }
 0x21b   :  { %v256_v26 = vsel %vm255_vm4, %v3158_v40, %v252_v7  ;;  %3165 = vpow2.f32 %v2870_v13  ;;  %v275_v40 = vor.u32 1.1754944e-38, %v274_v33  ;;  %v4217_v33 = vld [vmem:[%s5513_s2 + $0x10] sm:$0xff] }
 0x21c   :  { %v3164_v31 = vpop.eup %3163  ;;  %v261_v35 = vsel %vm258_vm5, %v260_v9, %v256_v26  ;;  %3167 = vrcp.f32 %v4110_v5  ;;  %vm283_vm3 = vweird.f32 %v4110_v5  ;;  %v4189_v26 = vld [vmem:[%s5513_s2 + $0x8] sm:$0xff] }
 0x21d   :  { %v264_v41 = vmul.f32 %v3164_v31, %v4098_v61  ;;  %vm350_vm6 = vcmp.gt.f32.partialorder %v261_v35, 0.5  ;;  %2988 = vmatmul.msk.f32.gmra.mxu3 %vm410_vm1, %v4020_v3  ;;  %3008 = vmatmul.msk.f32.gmra.mxu1 %vm410_vm1, %v4043_v8  ;;  %vm368_vm8 = vcmp.le.f32.partialorder %v261_v35, 0.5  ;;  %vm269_vm11 = vweird.f32 %v3164_v31 }
 0x21e   :  { %v356_v30 = vsel %vm350_vm6, %v261_v35, 0.0  ;;  %v218_v43 = vpop.f32.mrf.mxu2  ;;  %v374_v8 = vsel %vm368_vm8, %v261_v35, 0.0  ;;  %vm270_vm13 = vmor %vm268_vm12, %vm269_vm11  ;;  %v289_v61 = vand.u32 2147483648, %v4110_v5  ;;  %vm483_vm8 = vcmp.eq.f32.partialorder %v4189_v26, 0.0 }
 0x21f   :  { %v265_v27 = vsub.f32 1.0, %v264_v41  ;;  %v4126_v18 = vmul.f32 %v356_v30, %v338_v36  ;;  %v219_v42 = vadd.f32 %v218_v43, %v4070_v20  ;;  %v4132_v25 = vpop.f32.mrf.mxu3  ;;  %v4139_v52 = vmul.f32 %v374_v8, %v338_v36 }
 0x221   :  { %v266_v3 = vmul.f32 %v3164_v31, %v265_v27  ;;  %vm470_vm10 = vcmp.eq.f32.partialorder %v4126_v18, 0.0  ;;  %v3166_v39 = vpop.eup %3165  ;;  %v2871_v19 = vmul.f32 -1.442695, %v219_v42  ;;  %v1149_v49 = vpop.f32.mrf.mxu1  ;;  %v4204_v27 = vld [vmem:[%s5512_s1 + $0x10] sm:$0xff] }
 0x222   :  { %v697_v51 = vsel %vm470_vm10, -1e+09, %v4054_v12  ;;  %v3168_v53 = vpop.eup %3167  ;;  %v476_v54 = vsel %vm470_vm10, -1e+09, %v4085_v37  ;;  %v4144_v55 = vadd.f32 1.0, %v3166_v39 }
 0x223   :  { %v267_v38 = vadd.f32 %v3164_v31, %v266_v3  ;;  %v4148_v28 = vsel %vm482_vm7, -1e+30, %v697_v51  ;;  %v279_v57 = vmul.f32 %v3168_v53, %v4110_v5  ;;  %3169 = vpow2.f32 %v2871_v19 }
 0x224   :  { %v709_v12 = vsel %vm494_vm9, %v4148_v28, -inf  ;;  %3171 = vrcp.f32 %v4144_v55  ;;  %v4167_v60 = vsel %vm482_vm7, -1e+30, %v476_v54  ;;  %vm284_vm2 = vweird.f32 %v3168_v53 }
 0x225   :  { %v271_v45 = vsel %vm270_vm13, %v3164_v31, %v267_v38  ;;  %2989 = vmatmul.msk.f32.gmra.mxu3 %vm410_vm1, %v4056_v14  ;;  %710 = vmax.xlane.f32.xlu1 %v709_v12  ;;  %v280_v37 = vsub.f32 1.0, %v279_v57  ;;  %v287_v14 = vand.u32 2147483647, %v4110_v5  ;;  %v495_v62 = vsel %vm494_vm9, %v4167_v60, -inf  ;;  %vm285_vm4 = vmor %vm283_vm3, %vm284_vm2 }
 0x226   :  { %v4156_v59 = vsel %vm273_vm14, %v275_v40, %v271_v45  ;;  %3009 = vmatmul.msk.f32.gmra.mxu1 %vm410_vm1, %v4072_v21  ;;  %v221_v63 = vpop.f32.mrf.mxu2  ;;  %496 = vmax.xlane.f32.xlu0 %v495_v62  ;;  %v1167_v4 = vsel %vm470_vm10, -1e+09, %v1149_v49  ;;  %v290_v31 = vor.u32 1.1754944e-38, %v289_v61  ;;  %v302_v23 = vand.u32 2147483647, %v4144_v55 }
 0x227   :  { %vm351_vm15 = vcmp.gt.f32.partialorder %v4156_v59, 0.5  ;;  %v281_v0 = vmul.f32 %v3168_v53, %v280_v37  ;;  %v222_v21 = vadd.f32 %v221_v63, %v4070_v20  ;;  %v4176_v2 = vpop.f32.mrf.mxu3  ;;  %vm288_vm5 = vcmp.eq.f32.partialorder %v287_v14, 8.507059e+37 }
 0x228   :  { %v357_v1 = vsel %vm351_vm15, %v4156_v59, 0.0  ;;  %v4197_v5 = vsel %vm482_vm7, -1e+30, %v1167_v4  ;;  %vm484_vm13 = vcmp.eq.f32.partialorder %v4217_v33, 0.0  ;;  %vm298_vm15 = vweird.f32 %v4144_v55 }
 0x229   :  { %v4179_v50 = vmul.f32 %v357_v1, %v4161_v47  ;;  %v3170_v7 = vpop.eup %3169  ;;  %v282_v10 = vadd.f32 %v3168_v53, %v281_v0  ;;  %v2872_v9 = vmul.f32 -1.442695, %v222_v21  ;;  %v4184_v13 = vpop.f32.mrf.mxu1  ;;  %v1179_v8 = vsel %vm494_vm9, %v4197_v5, -inf }
 0x22a   :  { %v3172_v20 = vpop.eup %3171  ;;  %v4191_v35 = vadd.f32 1.0, %v3170_v7  ;;  %vm303_vm3 = vcmp.eq.f32.partialorder %v302_v23, 8.507059e+37  ;;  %v341_v7 = vld [vmem:[%s5512_s1 + $0x18] sm:$0xff] }
 0x22b   :  { %vm471_vm6 = vcmp.eq.f32.partialorder %v4179_v50, 0.0  ;;  %v294_v36 = vmul.f32 %v3172_v20, %v4144_v55  ;;  %v286_v41 = vsel %vm285_vm4, %v3168_v53, %v282_v10  ;;  %vm299_vm12 = vweird.f32 %v3172_v20 }
 0x22c   :  { %v4199_v30 = vsel %vm288_vm5, %v290_v31, %v286_v41  ;;  %3173 = vrcp.f32 %v4191_v35  ;;  %v698_v3 = vsel %vm471_vm6, -1e+09, %v4063_v16  ;;  %v477_v51 = vsel %vm471_vm6, -1e+09, %v4094_v56  ;;  %vm300_vm2 = vmor %vm298_vm15, %vm299_vm12  ;;  %v4283_v41 = vld [vmem:[%s5513_s2 + $0x20] sm:$0xff] }
 0x22d   :  { %2990 = vmatmul.msk.f32.gmra.mxu3 %vm410_vm1, %v4065_v17  ;;  %v295_v43 = vsub.f32 1.0, %v294_v36  ;;  %vm352_vm11 = vcmp.gt.f32.partialorder %v4199_v30, 0.5  ;;  %3175 = vpow2.f32 %v2872_v9  ;;  %v304_v17 = vand.u32 2147483648, %v4144_v55 }
 0x22e   :  { %3010 = vmatmul.msk.f32.gmra.mxu1 %vm410_vm1, %v4083_v44  ;;  %v358_v42 = vsel %vm352_vm11, %v4199_v30, 0.0  ;;  %v4231_v44 = vsel %vm483_vm8, -1e+30, %v698_v3  ;;  %1180 = vmax.xlane.f32.xlu0 %v1179_v8  ;;  %v4253_v55 = vsel %vm483_vm8, -1e+30, %v477_v51  ;;  %v319_v0 = vand.u32 2147483648, %v4191_v35 }
 0x22f   :  { %v296_v39 = vmul.f32 %v3172_v20, %v295_v43  ;;  %v4227_v19 = vmul.f32 %v358_v42, %v4204_v27  ;;  %v4233_v49 = vpop.f32.mrf.mxu3  ;;  %v712_v16 = vsel %vm494_vm9, %v4231_v44, -inf  ;;  %v305_v56 = vor.u32 1.1754944e-38, %v304_v17  ;;  %v342_v8 = vld [vmem:[%s5512_s1 + $0x20] sm:$0xff] }
 0x230   :  { %713 = vmax.xlane.f32.xlu2 %v712_v16  ;;  %v317_v63 = vand.u32 2147483647, %v4191_v35  ;;  %v498_v21 = vsel %vm494_vm9, %v4253_v55, -inf  ;;  %vm313_vm11 = vweird.f32 %v4191_v35  ;;  %v320_v43 = vor.u32 1.1754944e-38, %v319_v0 }
 0x231   :  { %vm472_vm14 = vcmp.eq.f32.partialorder %v4227_v19, 0.0  ;;  %v297_v53 = vadd.f32 %v3172_v20, %v296_v39  ;;  %v1155_v54 = vpop.f32.mrf.mxu1 }
 0x232   :  { %v3174_v38 = vpop.eup %3173  ;;  %v478_v57 = vsel %vm472_vm14, -1e+09, %v4106_v6  ;;  %v1169_v1 = vsel %vm472_vm14, -1e+09, %v1155_v54  ;;  %vm318_vm15 = vcmp.eq.f32.partialorder %v317_v63, 8.507059e+37 }
 0x233   :  { %v3176_v40 = vpop.eup %3175  ;;  %v309_v12 = vmul.f32 %v3174_v38, %v4191_v35  ;;  %v301_v45 = vsel %vm300_vm2, %v3172_v20, %v297_v53  ;;  %v4249_v37 = vsel %vm484_vm13, -1e+30, %v478_v57  ;;  %vm314_vm5 = vweird.f32 %v3174_v38 }
 0x234   :  { %v306_v14 = vsel %vm303_vm3, %v305_v56, %v301_v45  ;;  %v4255_v61 = vadd.f32 1.0, %v3176_v40  ;;  %v501_v6 = vsel %vm494_vm9, %v4249_v37, -inf  ;;  %v4278_v36 = vsel %vm484_vm13, -1e+30, %v1169_v1  ;;  %vm315_vm12 = vmor %vm313_vm11, %vm314_vm5 }
 0x235   :  { %2991 = vmatmul.msk.f32.gmra.mxu3 %vm410_vm1, %v4052_v11  ;;  %v310_v62 = vsub.f32 1.0, %v309_v12  ;;  %vm353_vm4 = vcmp.gt.f32.partialorder %v306_v14, 0.5  ;;  %502 = vmax.xlane.f32.xlu1 %v501_v6  ;;  %vm370_vm2 = vcmp.le.f32.partialorder %v4199_v30, 0.5  ;;  %v1185_v39 = vsel %vm494_vm9, %v4278_v36, -inf }
 0x236   :  { %3177 = vrcp.f32 %v4255_v61  ;;  %499 = vmax.xlane.f32.xlu0 %v498_v21  ;;  %v359_v10 = vsel %vm353_vm4, %v306_v14, 0.0  ;;  %v376_v42 = vsel %vm370_vm2, %v4199_v30, 0.0  ;;  %v1168_v30 = vsel %vm471_vm6, -1e+09, %v4184_v13  ;;  %v4318_v13 = vld [vmem:[%s5513_s2 + $0x18] sm:$0xff] }
 0x237   :  { %v311_v4 = vmul.f32 %v3174_v38, %v310_v62  ;;  %v917_v11 = vpop.f32.mrf.mxu3  ;;  %v4286_v18 = vmul.f32 %v359_v10, %v341_v7  ;;  %v4302_v51 = vmul.f32 %v376_v42, %v4204_v27  ;;  %v332_v53 = vand.u32 2147483647, %v4255_v61 }
 0x238   :  { %v935_v9 = vsel %vm470_vm10, -1e+09, %v917_v11  ;;  %vm486_vm10 = vcmp.eq.f32.partialorder %v4283_v41, 0.0  ;;  %vm371_vm4 = vcmp.le.f32.partialorder %v306_v14, 0.5  ;;  %vm485_vm2 = vcmp.eq.f32.partialorder %v4318_v13, 0.0 }
 0x239   :  { %v312_v20 = vadd.f32 %v3174_v38, %v311_v4  ;;  %v4290_v35 = vsel %vm482_vm7, -1e+30, %v935_v9  ;;  %vm473_vm5 = vcmp.eq.f32.partialorder %v4286_v18, 0.0  ;;  %v377_v40 = vsel %vm371_vm4, %v306_v14, 0.0 }
 0x23a   :  { %v4274_v31 = vpop.f32.mrf.mxu1  ;;  %v4322_v45 = vmul.f32 %v377_v40, %v341_v7  ;;  %v4335_v1 = vsel %vm483_vm8, -1e+30, %v1168_v30  ;;  %vm333_vm4 = vcmp.eq.f32.partialorder %v332_v53, 8.507059e+37 }
 0x23b   :  { %v316_v23 = vsel %vm315_vm12, %v3174_v38, %v312_v20  ;;  %v947_v38 = vsel %vm494_vm9, %v4290_v35, -inf }
 0x23c   :  { %v3178_v17 = vpop.eup %3177  ;;  %v321_v3 = vsel %vm318_vm15, %v320_v43, %v316_v23  ;;  %v1182_v43 = vsel %vm494_vm9, %v4335_v1, -inf }
 0x23d   :  { %2992 = vmatmul.msk.f32.gmra.mxu3 %vm410_vm1, %v4061_v15  ;;  %v324_v16 = vmul.f32 %v3178_v17, %v4255_v61  ;;  %vm354_vm3 = vcmp.gt.f32.partialorder %v321_v3, 0.5  ;;  %1186 = vmax.xlane.f32.xlu1 %v1185_v39  ;;  %v334_v15 = vand.u32 2147483648, %v4255_v61  ;;  %vm329_vm11 = vweird.f32 %v3178_v17 }
 0x23e   :  { %v360_v54 = vsel %vm354_vm3, %v321_v3, 0.0  ;;  %948 = vmax.xlane.f32.xlu0 %v947_v38  ;;  %vm372_vm12 = vcmp.le.f32.partialorder %v321_v3, 0.5  ;;  %vm328_vm3 = vweird.f32 %v4255_v61  ;;  %v700_v61 = vsel %vm473_vm5, -1e+09, %v4088_v34 }
 0x23f   :  { %v325_v27 = vsub.f32 1.0, %v324_v16  ;;  %v4313_v57 = vmul.f32 %v360_v54, %v342_v8  ;;  %v378_v63 = vsel %vm372_vm12, %v321_v3, 0.0  ;;  %v335_v4 = vor.u32 1.1754944e-38, %v334_v15  ;;  %v4370_v16 = vld [vmem:[%s5513_s2 + $0x28] sm:$0xff] }
 0x240   :  { %v920_v56 = vpop.f32.mrf.mxu3  ;;  %v4348_v7 = vmul.f32 %v378_v63, %v342_v8  ;;  %v4362_v42 = vsel %vm485_vm2, -1e+30, %v700_v61  ;;  %v699_v3 = vsel %vm472_vm14, -1e+09, %v4078_v32 }
 0x241   :  { %v936_v12 = vsel %vm471_vm6, -1e+09, %v920_v56  ;;  %v326_v6 = vmul.f32 %v3178_v17, %v325_v27  ;;  %vm474_vm15 = vcmp.eq.f32.partialorder %v4313_v57, 0.0  ;;  %vm330_vm6 = vmor %vm328_vm3, %vm329_vm11  ;;  %v718_v30 = vsel %vm494_vm9, %v4362_v42, -inf }
 0x242   :  { %v4327_v62 = vsel %vm483_vm8, -1e+30, %v936_v12  ;;  %v1161_v50 = vpop.f32.mrf.mxu1  ;;  %v701_v21 = vsel %vm474_vm15, -1e+09, %v4096_v58  ;;  %v343_v58 = vld [vmem:[%s5512_s1 + $0x28] sm:$0xff] }
 0x243   :  { %v950_v0 = vsel %vm494_vm9, %v4327_v62, -inf  ;;  %v327_v14 = vadd.f32 %v3178_v17, %v326_v6  ;;  %v4343_v11 = vsel %vm486_vm10, -1e+30, %v701_v21  ;;  %v480_v34 = vsel %vm474_vm15, -1e+09, %v4176_v2 }
 0x244   :  { %951 = vmax.xlane.f32.xlu2 %v950_v0  ;;  %v721_v9 = vsel %vm494_vm9, %v4343_v11, -inf  ;;  %v4378_v53 = vsel %vm486_vm10, -1e+30, %v480_v34  ;;  %v4382_v32 = vsel %vm484_vm13, -1e+30, %v699_v3 }
 0x245   :  { %v331_v10 = vsel %vm330_vm6, %v3178_v17, %v327_v14  ;;  %722 = vmax.xlane.f32.xlu1 %v721_v9  ;;  %vm487_vm6 = vcmp.eq.f32.partialorder %v4370_v16, 0.0  ;;  %v507_v38 = vsel %vm494_vm9, %v4378_v53, -inf  ;;  %v715_v27 = vsel %vm494_vm9, %v4382_v32, -inf }
 0x246   :  { %v336_v20 = vsel %vm333_vm4, %v335_v4, %v331_v10  ;;  %1183 = vmax.xlane.f32.xlu0 %v1182_v43  ;;  %v1171_v56 = vsel %vm474_vm15, -1e+09, %v1161_v50  ;;  %vm369_vm4 = vcmp.le.f32.partialorder %v4156_v59, 0.5 }
 0x247   :  { %vm355_vm11 = vcmp.gt.f32.partialorder %v336_v20, 0.5  ;;  %vm373_vm12 = vcmp.le.f32.partialorder %v336_v20, 0.5  ;;  %v4404_v63 = vsel %vm486_vm10, -1e+30, %v1171_v56  ;;  %v375_v43 = vsel %vm369_vm4, %v4156_v59, 0.0 }
 0x248   :  { %v923_v23 = vpop.f32.mrf.mxu3  ;;  %v361_v17 = vsel %vm355_vm11, %v336_v20, 0.0  ;;  %v379_v8 = vsel %vm373_vm12, %v336_v20, 0.0  ;;  %v1191_v50 = vsel %vm494_vm9, %v4404_v63, -inf  ;;  %vm1495_vm11 = vcmp.eq.f32.partialorder %v4348_v7, 0.0 }
 0x249   :  { %v367_v39 = vmul.f32 %v361_v17, %v343_v58  ;;  %v4372_v2 = vmul.f32 %v379_v8, %v343_v58  ;;  %v937_v9 = vsel %vm472_vm14, -1e+09, %v923_v23  ;;  %v4442_v17 = vmul.f32 %v375_v43, %v4161_v47 }
 0x24a   :  { %v1164_v15 = vpop.f32.mrf.mxu1  ;;  %v1170_v8 = vsel %vm473_vm5, -1e+09, %v4274_v31 }
 0x24b   :  { %vm475_vm3 = vcmp.eq.f32.partialorder %v367_v39, 0.0  ;;  %vm1492_vm14 = vcmp.eq.f32.partialorder %v4442_v17, 0.0  ;;  %v4461_v31 = vsel %vm485_vm2, -1e+30, %v1170_v8  ;;  %vm1496_vm12 = vcmp.eq.f32.partialorder %v4372_v2, 0.0 }
 0x24c   :  { %719 = vmax.xlane.f32.xlu2 %v718_v30  ;;  %v702_v54 = vsel %vm475_vm3, -1e+09, %v4108_v24  ;;  %v479_v24 = vsel %vm473_vm5, -1e+09, %v4132_v25  ;;  %v1172_v14 = vsel %vm475_vm3, -1e+09, %v1164_v15 }
 0x24d   :  { %508 = vmax.xlane.f32.xlu1 %v507_v38  ;;  %v4395_v12 = vsel %vm487_vm6, -1e+30, %v702_v54  ;;  %v4408_v0 = vsel %vm485_vm2, -1e+30, %v479_v24  ;;  %v481_v21 = vsel %vm475_vm3, -1e+09, %v4233_v49 }
 0x24e   :  { %716 = vmax.xlane.f32.xlu0 %v715_v27  ;;  %v724_v6 = vsel %vm494_vm9, %v4395_v12, -inf  ;;  %v504_v25 = vsel %vm494_vm9, %v4408_v0, -inf  ;;  %v4419_v10 = vsel %vm487_vm6, -1e+30, %v1172_v14  ;;  %v4428_v58 = vsel %vm487_vm6, -1e+30, %v481_v21 }
 0x24f   :  { %v1194_v20 = vsel %vm494_vm9, %v4419_v10, -inf  ;;  %v4432_v49 = vsel %vm484_vm13, -1e+30, %v937_v9  ;;  %v510_v19 = vsel %vm494_vm9, %v4428_v58, -inf  ;;  %v1188_v38 = vsel %vm494_vm9, %v4461_v31, -inf }
 0x250   :  { %v926_v40 = vpop.f32.mrf.mxu3  ;;  %v953_v34 = vsel %vm494_vm9, %v4432_v49, -inf }
 0x251   :  { %v938_v24 = vsel %vm473_vm5, -1e+09, %v926_v40  ;;  %vm1493_vm5 = vcmp.eq.f32.partialorder %v4302_v51, 0.0 }
 0x252   :  { %v1711_v4 = vpop.f32.mrf.mxu1 }
 0x254   :  { %725 = vmax.xlane.f32.xlu2 %v724_v6 }
 0x255   :  { %1192 = vmax.xlane.f32.xlu1 %v1191_v50 }
 0x256   :  { %505 = vmax.xlane.f32.xlu0 %v504_v25  ;;  %v4486_v25 = vsel %vm485_vm2, -1e+30, %v938_v24 }
 0x257   :  { %v956_v18 = vsel %vm494_vm9, %v4486_v25, -inf }
 0x258   :  { %v929_v61 = vpop.f32.mrf.mxu3 }
 0x259   :  { %v939_v23 = vsel %vm474_vm15, -1e+09, %v929_v61  ;;  %vm1491_vm15 = vcmp.eq.f32.partialorder %v4139_v52, 0.0 }
 0x25a   :  { %v1714_v30 = vpop.f32.mrf.mxu1  ;;  %v4456_v47 = vsel %vm486_vm10, -1e+30, %v939_v23  ;;  %v1729_v61 = vsel %vm1491_vm15, -1e+09, %v1711_v4 }
 0x25b   :  { %v1730_v39 = vsel %vm1492_vm14, -1e+09, %v1714_v30  ;;  %v959_v15 = vsel %vm494_vm9, %v4456_v47, -inf }
 0x25c   :  { %1195 = vmax.xlane.f32.xlu2 %v1194_v20  ;;  %v4472_v56 = vsel %vm483_vm8, -1e+30, %v1730_v39 }
 0x25d   :  { %511 = vmax.xlane.f32.xlu1 %v510_v19  ;;  %v1744_v14 = vsel %vm494_vm9, %v4472_v56, -inf  ;;  %v4504_v19 = vsel %vm482_vm7, -1e+30, %v1729_v61 }
 0x25e   :  { %954 = vmax.xlane.f32.xlu0 %v953_v34  ;;  %v1741_v23 = vsel %vm494_vm9, %v4504_v19, -inf }
 0x260   :  { %v932_v3 = vpop.f32.mrf.mxu3 }
 0x261   :  { %v940_v59 = vsel %vm475_vm3, -1e+09, %v932_v3  ;;  %vm1494_vm3 = vcmp.eq.f32.partialorder %v4322_v45, 0.0 }
 0x262   :  { %v4450_v54 = vsel %vm487_vm6, -1e+30, %v940_v59  ;;  %v1717_v34 = vpop.f32.mrf.mxu1 }
 0x263   :  { %v962_v57 = vsel %vm494_vm9, %v4450_v54, -inf  ;;  %v1731_v4 = vsel %vm1493_vm5, -1e+09, %v1717_v34 }
 0x264   :  { %963 = vmax.xlane.f32.xlu2 %v962_v57  ;;  %v4513_v3 = vsel %vm484_vm13, -1e+30, %v1731_v4 }
 0x265   :  { %960 = vmax.xlane.f32.xlu1 %v959_v15  ;;  %v1747_v8 = vsel %vm494_vm9, %v4513_v3, -inf }
 0x266   :  { %1189 = vmax.xlane.f32.xlu0 %v1188_v38 }
 0x268   :  { %v1473_v27 = vpop.f32.mrf.mxu3 }
 0x269   :  { %v1497_v6 = vsel %vm1491_vm15, -1e+09, %v1473_v27 }
 0x26a   :  { %v4482_v50 = vsel %vm482_vm7, -1e+30, %v1497_v6 }
 0x26b   :  { %v1509_v21 = vsel %vm494_vm9, %v4482_v50, -inf }
 0x26c   :  { %1745 = vmax.xlane.f32.xlu2 %v1744_v14 }
 0x26d   :  { %1510 = vmax.xlane.f32.xlu1 %v1509_v21 }
 0x26e   :  { %957 = vmax.xlane.f32.xlu0 %v956_v18 }
 0x270   :  { %v1476_v40 = vpop.f32.mrf.mxu3 }
 0x271   :  { %v1498_v9 = vsel %vm1492_vm14, -1e+09, %v1476_v40 }
 0x272   :  { %v4498_v20 = vsel %vm483_vm8, -1e+30, %v1498_v9 }
 0x273   :  { %v1512_v43 = vsel %vm494_vm9, %v4498_v20, -inf }
 0x274   :  { %1513 = vmax.xlane.f32.xlu2 %v1512_v43 }
 0x276   :  { %1742 = vmax.xlane.f32.xlu0 %v1741_v23 }
 0x278   :  { %v1479_v43 = vpop.f32.mrf.mxu3 }
 0x279   :  { %v1499_v23 = vsel %vm1493_vm5, -1e+09, %v1479_v43 }
 0x27e   :  { %1748 = vmax.xlane.f32.xlu0 %v1747_v8 }
 0x286   :  { %3079 = vrot.lane.b32.xlu1 %v3972_v22, %s3420_s13 }
 0x28c   :  { %3089 = vrot.lane.b32.xlu2 %v3972_v22, %s3421_s14 }
 0x28e   :  { %3084 = vrot.lane.b32.xlu1 %v3924_v46, %s3421_s14 }
 0x298   :  { %v711_v15 = vpop.xlane.xlu1 %710 }
 0x299   :  { %v497_v59 = vpop.xlane.xlu0 %496  ;;  %v727_v34 = vsub.f32 %v4148_v28, %v711_v15 }
 0x29a   :  { %v513_v30 = vsub.f32 %v4167_v60, %v497_v59 }
 0x29b   :  { %v733_v59 = vmul.f32 1.442695, %v727_v34 }
 0x29c   :  { %v519_v57 = vmul.f32 1.442695, %v513_v30 }
 0x29e   :  { %3179 = vpow2.f32 %v519_v57 }
 0x2a1   :  { %v1181_v39 = vpop.xlane.xlu0 %1180 }
 0x2a2   :  { %v1197_v38 = vsub.f32 %v4197_v5, %v1181_v39 }
 0x2a3   :  { %v714_v27 = vpop.xlane.xlu2 %713 }
 0x2a4   :  { %v4525_v24 = vpop.eup %3179  ;;  %v1203_v6 = vmul.f32 1.442695, %v1197_v38  ;;  %v728_v14 = vsub.f32 %v4231_v44, %v714_v27 }
 0x2a5   :  { %v531_v21 = vsel %vm494_vm9, %v4525_v24, 0.0 }
 0x2a6   :  { %3181 = vpow2.f32 %v1203_v6  ;;  %532 = vadd.xlane.f32.xlu0 %v531_v21  ;;  %v735_v18 = vmul.f32 1.442695, %v728_v14 }
 0x2a8   :  { %v503_v60 = vpop.xlane.xlu1 %502  ;;  %3183 = vpow2.f32 %v735_v18 }
 0x2a9   :  { %v500_v40 = vpop.xlane.xlu0 %499 }
 0x2aa   :  { %v514_v9 = vsub.f32 %v4253_v55, %v500_v40  ;;  %v4545_v55 = vsel %vm484_vm13, -1e+30, %v1499_v23 }
 0x2ab   :  { %v1515_v15 = vsel %vm494_vm9, %v4545_v55, -inf }
 0x2ac   :  { %v4530_v61 = vpop.eup %3181  ;;  %v521_v44 = vmul.f32 1.442695, %v514_v9 }
 0x2ad   :  { %v1215_v5 = vsel %vm494_vm9, %v4530_v61, 0.0 }
 0x2ae   :  { %1216 = vadd.xlane.f32.xlu0 %v1215_v5  ;;  %v4538_v8 = vpop.eup %3183  ;;  %3185 = vpow2.f32 %v521_v44 }
 0x2af   :  { %v748_v28 = vsel %vm494_vm9, %v4538_v8, 0.0  ;;  %3187 = vpow2.f32 %v733_v59 }
 0x2b0   :  { %v4541_v57 = vpop.xlane.xlu1 %1186 }
 0x2b1   :  { %v949_v4 = vpop.xlane.xlu0 %948 }
 0x2b2   :  { %v965_v30 = vsub.f32 %v4290_v35, %v949_v4  ;;  %v4553_v35 = vpop.f32.mrf.mxu1 }
 0x2b4   :  { %v971_v38 = vmul.f32 1.442695, %v965_v30  ;;  %v4551_v6 = vpop.eup %3185 }
 0x2b5   :  { %v4556_v21 = vpop.eup %3187  ;;  %v534_v40 = vsel %vm494_vm9, %v4551_v6, 0.0 }
 0x2b6   :  { %749 = vadd.xlane.f32.xlu0 %v748_v28  ;;  %3189 = vpow2.f32 %v971_v38  ;;  %v745_v34 = vsel %vm494_vm9, %v4556_v21, 0.0  ;;  %v515_v28 = vsub.f32 %v4249_v37, %v503_v60  ;;  %v4582_v60 = vpop.f32.mrf.mxu3 }
 0x2b7   :  { %v952_v39 = vpop.xlane.xlu2 %951 }
 0x2b8   :  { %1516 = vmax.xlane.f32.xlu1 %v1515_v15  ;;  %v4560_v5 = vpop.xlane.xlu1 %722 }
 0x2b9   :  { %v1184_v27 = vpop.xlane.xlu0 %1183 }
 0x2ba   :  { %v1198_v14 = vsub.f32 %v4335_v1, %v1184_v27  ;;  %v1723_v30 = vpop.f32.mrf.mxu1 }
 0x2bb   :  { %v1733_v37 = vsel %vm1495_vm11, -1e+09, %v1723_v30 }
 0x2bc   :  { %v1205_v18 = vmul.f32 1.442695, %v1198_v14  ;;  %v4565_v23 = vpop.eup %3189  ;;  %v523_v14 = vmul.f32 1.442695, %v515_v28 }
 0x2bd   :  { %5524 = vst [vmem:[#allocation3_spill] sm:$0xff] %v4565_v23 }
 0x2be   :  { %3191 = vpow2.f32 %v1205_v18  ;;  %535 = vadd.xlane.f32.xlu0 %v534_v40 }
 0x2bf   :  { %v720_v9 = vpop.xlane.xlu2 %719 }
 0x2c0   :  { %v730_v43 = vsub.f32 %v4362_v42, %v720_v9  ;;  %746 = vadd.xlane.f32.xlu1 %v745_v34  ;;  %v983_v42 = vsel %vm494_vm9, %v4565_v23, 0.0  ;;  %v4591_v34 = vsel %vm486_vm10, -1e+30, %v1733_v37 }
 0x2c1   :  { %v717_v1 = vpop.xlane.xlu0 %716 }
 0x2c2   :  { %v739_v44 = vmul.f32 1.442695, %v730_v43  ;;  %v729_v4 = vsub.f32 %v4382_v32, %v717_v1  ;;  %v4578_v32 = vpop.xlane.xlu1 %508  ;;  %v1726_v30 = vpop.f32.mrf.mxu1 }
 0x2c4   :  { %3193 = vpow2.f32 %v739_v44  ;;  %v4568_v59 = vpop.eup %3191  ;;  %v737_v15 = vmul.f32 1.442695, %v729_v4  ;;  %v966_v44 = vsub.f32 %v4327_v62, %v952_v39 }
 0x2c5   :  { %5525 = vst [vmem:[#allocation4_spill] sm:$0xff] %v4568_v59  ;;  %v1218_v38 = vsel %vm494_vm9, %v4568_v59, 0.0 }
 0x2c6   :  { %3195 = vpow2.f32 %v737_v15  ;;  %984 = vadd.xlane.f32.xlu0 %v983_v42  ;;  %v973_v28 = vmul.f32 1.442695, %v966_v44  ;;  %v1734_v42 = vsel %vm1496_vm12, -1e+09, %v1726_v30 }
 0x2c7   :  { %3197 = vpow2.f32 %v523_v14  ;;  %v726_v15 = vpop.xlane.xlu2 %725  ;;  %v1485_v14 = vpop.f32.mrf.mxu3 }
 0x2c8   :  { %1219 = vadd.xlane.f32.xlu1 %v1218_v38 }
 0x2c9   :  { %v506_v18 = vpop.xlane.xlu0 %505 }
 0x2ca   :  { %v4575_v27 = vpop.eup %3193  ;;  %v516_v9 = vsub.f32 %v4408_v0, %v506_v18  ;;  %v1753_v0 = vsel %vm494_vm9, %v4591_v34, -inf  ;;  %v1193_v39 = vpop.xlane.xlu1 %1192  ;;  %v4609_v18 = vsel %vm487_vm6, -1e+30, %v1734_v42 }
 0x2cb   :  { %v754_v40 = vsel %vm494_vm9, %v4575_v27, 0.0 }
 0x2cc   :  { %755 = vadd.xlane.f32.xlu2 %v754_v40  ;;  %v4587_v43 = vpop.eup %3195  ;;  %v525_v1 = vmul.f32 1.442695, %v516_v9  ;;  %v1199_v40 = vsub.f32 %v4278_v36, %v4541_v57 }
 0x2cd   :  { %v751_v4 = vsel %vm494_vm9, %v4587_v43, 0.0  ;;  %v4603_v62 = vpop.eup %3197 }
 0x2ce   :  { %3199 = vpow2.f32 %v525_v1  ;;  %752 = vadd.xlane.f32.xlu0 %v751_v4  ;;  %v537_v9 = vsel %vm494_vm9, %v4603_v62, 0.0  ;;  %v1732_v1 = vsel %vm1494_vm3, -1e+09, %v4553_v35  ;;  %v1756_v4 = vsel %vm494_vm9, %v4609_v18, -inf }
 0x2cf   :  { %3201 = vpow2.f32 %v973_v28  ;;  %v1207_v30 = vmul.f32 1.442695, %v1199_v40  ;;  %v1196_v28 = vpop.xlane.xlu2 %1195  ;;  %v1488_v59 = vpop.f32.mrf.mxu3 }
 0x2d0   :  { %1754 = vmax.xlane.f32.xlu1 %v1753_v0  ;;  %v4627_v0 = vsel %vm485_vm2, -1e+30, %v1732_v1  ;;  %v1502_v1 = vsel %vm1496_vm12, -1e+09, %v1488_v59 }
 0x2d1   :  { %v4601_v38 = vpop.xlane.xlu0 %954  ;;  %3203 = vpow2.f32 %v1207_v30  ;;  %v732_v30 = vsub.f32 %v4395_v12, %v726_v15 }
 0x2d3   :  { %v743_v12 = vmul.f32 1.442695, %v732_v30 }
 0x2d4   :  { %v4605_v37 = vpop.eup %3199 }
 0x2d5   :  { %v540_v44 = vsel %vm494_vm9, %v4605_v37, 0.0  ;;  %v4623_v57 = vpop.eup %3201 }
 0x2d6   :  { %538 = vadd.xlane.f32.xlu0 %v537_v9  ;;  %541 = vadd.xlane.f32.xlu2 %v540_v44  ;;  %v1201_v9 = vsub.f32 %v4404_v63, %v1193_v39  ;;  %v512_v44 = vpop.xlane.xlu1 %511  ;;  %v986_v40 = vsel %vm494_vm9, %v4623_v57, 0.0  ;;  %v4641_v63 = vsel %vm487_vm6, -1e+30, %v1502_v1 }
 0x2d8   :  { %1757 = vmax.xlane.f32.xlu1 %v1756_v4  ;;  %v1750_v4 = vsel %vm494_vm9, %v4627_v0, -inf  ;;  %v1211_v23 = vmul.f32 1.442695, %v1201_v9  ;;  %v1524_v9 = vsel %vm494_vm9, %v4641_v63, -inf }
 0x2d9   :  { %v1190_v36 = vpop.xlane.xlu0 %1189 }
 0x2da   :  { %v1200_v42 = vsub.f32 %v4461_v31, %v1190_v36  ;;  %v4637_v31 = vpop.eup %3203  ;;  %v964_v36 = vpop.xlane.xlu2 %963 }
 0x2db   :  { %5526 = vst [vmem:[#allocation5_spill] sm:$0xff] %v4637_v31 }
 0x2dc   :  { %v1209_v35 = vmul.f32 1.442695, %v1200_v42 }
 0x2de   :  { %3205 = vpow2.f32 %v1209_v35  ;;  %987 = vadd.xlane.f32.xlu0 %v986_v40  ;;  %1751 = vmax.xlane.f32.xlu2 %v1750_v4  ;;  %v1221_v35 = vsel %vm494_vm9, %v4637_v31, 0.0  ;;  %v4650_v59 = vpop.xlane.xlu1 %960  ;;  %v1500_v40 = vsel %vm1494_vm3, -1e+09, %v4582_v60  ;;  %v518_v4 = vsub.f32 %v4428_v58, %v512_v44 }
 0x2df   :  { %3207 = vpow2.f32 %v1211_v23  ;;  %v4661_v15 = vsel %vm485_vm2, -1e+30, %v1500_v40  ;;  %v1501_v60 = vsel %vm1495_vm11, -1e+09, %v1485_v14  ;;  %v1202_v44 = vsub.f32 %v4419_v10, %v1196_v28 }
 0x2e0   :  { %3209 = vpow2.f32 %v743_v12  ;;  %v529_v30 = vmul.f32 1.442695, %v518_v4  ;;  %v4678_v58 = vsel %vm486_vm10, -1e+30, %v1501_v60  ;;  %v2175_v12 = vpop.f32.mrf.mxu1 }
 0x2e1   :  { %v2193_v4 = vsel %vm1491_vm15, -1e+09, %v2175_v12 }
 0x2e2   :  { %3211 = vpow2.f32 %v529_v30 }
 0x2e4   :  { %v4643_v39 = vpop.eup %3205 }
 0x2e5   :  { %5527 = vst [vmem:[#allocation6_spill] sm:$0xff] %v4643_v39  ;;  %v1224_v42 = vsel %vm494_vm9, %v4643_v39, 0.0  ;;  %v4657_v23 = vpop.eup %3207 }
 0x2e6   :  { %1225 = vadd.xlane.f32.xlu1 %v1224_v42  ;;  %1222 = vadd.xlane.f32.xlu0 %v1221_v35  ;;  %5528 = vst [vmem:[#allocation7_spill] sm:$0xff] %v4657_v23  ;;  %v1227_v1 = vsel %vm494_vm9, %v4657_v23, 0.0  ;;  %v1518_v42 = vsel %vm494_vm9, %v4661_v15, -inf  ;;  %v4668_v35 = vpop.xlane.xlu2 %1745  ;;  %v4674_v40 = vpop.eup %3209  ;;  %v967_v23 = vsub.f32 %v4432_v49, %v4601_v38  ;;  %v4695_v49 = vsel %vm482_vm7, -1e+30, %v2193_v4 }
 0x2e7   :  { %1525 = vmax.xlane.f32.xlu2 %v1524_v9  ;;  %v4672_v9 = vpop.xlane.xlu1 %1510  ;;  %v760_v14 = vsel %vm494_vm9, %v4674_v40, 0.0  ;;  %v731_v38 = vsub.f32 %v4343_v11, %v4560_v5  ;;  %v2205_v12 = vsel %vm494_vm9, %v4695_v49, -inf }
 0x2e8   :  { %v975_v60 = vmul.f32 1.442695, %v967_v23  ;;  %v4691_v31 = vpop.eup %3211  ;;  %v958_v23 = vpop.xlane.xlu0 %957 }
 0x2ee   :  { %1228 = vadd.xlane.f32.xlu1 %v1227_v1  ;;  %1519 = vmax.xlane.f32.xlu0 %v1518_v42  ;;  %v1521_v1 = vsel %vm494_vm9, %v4678_v58, -inf  ;;  %v1213_v42 = vmul.f32 1.442695, %v1202_v44  ;;  %v4689_v39 = vpop.xlane.xlu2 %1513  ;;  %v970_v44 = vsub.f32 %v4450_v54, %v964_v36 }
 0x2f0   :  { %3213 = vpow2.f32 %v1213_v42  ;;  %v981_v11 = vmul.f32 1.442695, %v970_v44  ;;  %v1743_v44 = vpop.xlane.xlu0 %1742 }
 0x2f1   :  { %3215 = vpow2.f32 %v975_v60  ;;  %v1759_v29 = vsub.f32 %v4504_v19, %v1743_v44 }
 0x2f6   :  { %1522 = vmax.xlane.f32.xlu0 %v1521_v1  ;;  %761 = vadd.xlane.f32.xlu1 %v760_v14  ;;  %v546_v1 = vsel %vm494_vm9, %v4691_v31, 0.0  ;;  %v741_v14 = vmul.f32 1.442695, %v731_v38  ;;  %v4706_v4 = vpop.eup %3213  ;;  %v3090_v36 = vpop.permute.xlu2 %3089 }
 0x2f7   :  { %v4708_v54 = vpop.eup %3215 }
 0x2f8   :  { %v3080_v10 = vpop.permute.xlu1 %3079  ;;  %3217 = vpow2.f32 %v741_v14  ;;  %v989_v38 = vsel %vm494_vm9, %v4708_v54, 0.0 }
 0x2f9   :  { %v3081_v28 = vunpack.i.l.bf16 %v3080_v10  ;;  %v3082_v30 = vunpack.i.h.bf16 %v3080_v10  ;;  %v517_v10 = vsub.f32 %v4378_v53, %v4578_v32  ;;  %3219 = vpow2.f32 %v981_v11  ;;  %v1943_v53 = vpop.f32.mrf.mxu3 }
 0x2fa   :  { %v968_v32 = vsub.f32 %v4486_v25, %v958_v23  ;;  %v969_v25 = vsub.f32 %v4456_v47, %v4650_v59  ;;  %v2178_v59 = vpop.f32.mrf.mxu1 }
 0x2fb   :  { %1295 = vmatpush.msra.mxu2 %v3081_v28  ;;  %v3091_v28 = vunpack.i.l.bf16 %v3090_v36 }
 0x2fc   :  { %v979_v52 = vmul.f32 1.442695, %v969_v25 }
 0x2fd   :  { %1296 = vmatpush.msra.mxu2 %v3082_v30  ;;  %v1230_v30 = vsel %vm494_vm9, %v4706_v4, 0.0 }
 0x2fe   :  { %2206 = vmax.xlane.f32.xlu0 %v2205_v12  ;;  %547 = vadd.xlane.f32.xlu1 %v546_v1  ;;  %v3092_v12 = vunpack.i.h.bf16 %v3090_v36  ;;  %v527_v1 = vmul.f32 1.442695, %v517_v10  ;;  %v4716_v14 = vpop.eup %3217  ;;  %v1961_v36 = vsel %vm1491_vm15, -1e+09, %v1943_v53  ;;  %v1749_v10 = vpop.xlane.xlu0 %1748 }
 0x2ff   :  { %3094 = vrot.lane.b32.xlu2 %v3948_v48, %s3410_s23  ;;  %v757_v11 = vsel %vm494_vm9, %v4716_v14, 0.0 }
 0x300   :  { %v3085_v5 = vpop.permute.xlu1 %3084  ;;  %3221 = vpow2.f32 %v527_v1 }
 0x301   :  { %v3086_v42 = vunpack.i.l.bf16 %v3085_v5  ;;  %v3087_v60 = vunpack.i.h.bf16 %v3085_v5  ;;  %v4718_v5 = vpop.eup %3219  ;;  %v1946_v25 = vpop.f32.mrf.mxu3 }
 0x303   :  { %1061 = vmatpush.msra.mxu0 %v3086_v42  ;;  %v998_v42 = vsel %vm494_vm9, %v4718_v5, 0.0 }
 0x305   :  { %1062 = vmatpush.msra.mxu0 %v3087_v60  ;;  %v977_v60 = vmul.f32 1.442695, %v968_v32  ;;  %v1765_v32 = vmul.f32 1.442695, %v1759_v29 }
 0x306   :  { %990 = vadd.xlane.f32.xlu0 %v989_v38  ;;  %1231 = vadd.xlane.f32.xlu1 %v1230_v30  ;;  %v4731_v38 = vsel %vm482_vm7, -1e+30, %v1961_v36  ;;  %vm1394_vm7 = vcmask 130048  }
 0x307   :  { %1063 = vmatpush.msra.mxu0 %v3091_v28  ;;  %v4727_v28 = vpop.eup %3221  ;;  %3223 = vpow2.f32 %v977_v60  ;;  %v1973_v30 = vsel %vm494_vm9, %v4731_v38, -inf }
 0x308   :  { %v543_v23 = vsel %vm494_vm9, %v4727_v28, 0.0 }
 0x309   :  { %1064 = vmatpush.msra.mxu0 %v3092_v12 }
 0x30d   :  { %v4739_v1 = vpop.eup %3223 }
 0x30e   :  { %758 = vadd.xlane.f32.xlu0 %v757_v11  ;;  %999 = vadd.xlane.f32.xlu1 %v998_v42  ;;  %v992_v47 = vsel %vm494_vm9, %v4739_v1, 0.0  ;;  %v2194_v11 = vsel %vm1492_vm14, -1e+09, %v2178_v59  ;;  %v2181_v59 = vpop.f32.mrf.mxu1 }
 0x30f   :  { %v4754_v19 = vsel %vm483_vm8, -1e+30, %v2194_v11  ;;  %v2195_v26 = vsel %vm1493_vm5, -1e+09, %v2181_v59 }
 0x316   :  { %544 = vadd.xlane.f32.xlu0 %v543_v23  ;;  %1974 = vmax.xlane.f32.xlu1 %v1973_v30  ;;  %v2208_v23 = vsel %vm494_vm9, %v4754_v19, -inf }
 0x319   :  { %v533_v12 = vpop.xlane.xlu0 %532 }
 0x31a   :  { %3225 = vrcp.f32 %v533_v12 }
 0x31b   :  { %3227 = vpow2.f32 %v979_v52 }
 0x31c   :  { %3229 = vpow2.f32 %v1765_v32 }
 0x31e   :  { %993 = vadd.xlane.f32.xlu0 %v992_v47 }
 0x320   :  { %v3226_v53 = vpop.eup %3225 }
 0x321   :  { %v4746_v42 = vpop.xlane.xlu0 %1216  ;;  %v555_v36 = vmul.f32 %v3226_v53, %v4525_v24  ;;  %v4749_v60 = vpop.eup %3227  ;;  %v1962_v24 = vsel %vm1492_vm14, -1e+09, %v1946_v25  ;;  %v1528_v53 = vsub.f32 %v4498_v20, %v4689_v39  ;;  %v1761_v20 = vsub.f32 %v4513_v3, %v1749_v10 }
 0x322   :  { %v995_v44 = vsel %vm494_vm9, %v4749_v60, 0.0  ;;  %v4762_v52 = vpop.eup %3229  ;;  %v4766_v29 = vsel %vm483_vm8, -1e+30, %v1962_v24  ;;  %vm1401_vm8 = vcmask 195584  }
 0x323   :  { %2885 = vmatmul.msk.f32.vlgmr.msrb.gmra.mxu0 %vm494_vm9, %v555_v36  ;;  %v1777_v47 = vsel %vm494_vm9, %v4762_v52, 0.0  ;;  %v1976_v17 = vsel %vm494_vm9, %v4766_v29, -inf  ;;  %v1535_v11 = vmul.f32 1.442695, %v1528_v53  ;;  %v1769_v59 = vmul.f32 1.442695, %v1761_v20 }
 0x326   :  { %996 = vadd.xlane.f32.xlu0 %v995_v44  ;;  %v4780_v44 = vsel %vm484_vm13, -1e+30, %v2195_v26 }
 0x327   :  { %v2211_v39 = vsel %vm494_vm9, %v4780_v44, -inf }
 0x328   :  { %2209 = vmax.xlane.f32.xlu2 %v2208_v23 }
 0x329   :  { %v750_v30 = vpop.xlane.xlu0 %749 }
 0x32b   :  { %v1517_v12 = vpop.xlane.xlu1 %1516 }
 0x32c   :  { %v1529_v10 = vsub.f32 %v4545_v55, %v1517_v12  ;;  %v4807_v12 = vpop.f32.mrf.mxu3 }
 0x32e   :  { %1778 = vadd.xlane.f32.xlu0 %v1777_v47 }
 0x32f   :  { %3104 = vrot.lane.b32.xlu1 %v3948_v48, %s3409_s5 }
 0x330   :  { %1977 = vmax.xlane.f32.xlu2 %v1976_v17 }
 0x331   :  { %v536_v32 = vpop.xlane.xlu0 %535 }
 0x332   :  { %3231 = vrcp.f32 %v536_v32 }
 0x333   :  { %v747_v36 = vpop.xlane.xlu1 %746 }
 0x334   :  { %3233 = vrcp.f32 %v747_v36 }
 0x335   :  { %3235 = vpow2.f32 %v1535_v11 }
 0x336   :  { %3237 = vrcp.f32 %v750_v30 }
 0x337   :  { %3109 = vrot.lane.b32.xlu1 %v3972_v22, %s3410_s23  ;;  %3239 = vpow2.f32 %v1769_v59  ;;  %v1952_v59 = vpop.f32.mrf.mxu3 }
 0x338   :  { %v3232_v25 = vpop.eup %3231  ;;  %2212 = vmax.xlane.f32.xlu2 %v2211_v39 }
 0x339   :  { %v4787_v23 = vpop.xlane.xlu0 %984  ;;  %v556_v24 = vmul.f32 %v3232_v25, %v4551_v6 }
 0x33a   :  { %v3234_v47 = vpop.eup %3233 }
 0x33b   :  { %2886 = vmatmul.msk.f32.gmra.mxu0 %vm494_vm9, %v556_v24  ;;  %v769_v53 = vmul.f32 %v3234_v47, %v4556_v21  ;;  %v4792_v3 = vpop.eup %3235  ;;  %v4800_v26 = vpop.xlane.xlu1 %1219  ;;  %v1537_v21 = vmul.f32 1.442695, %v1529_v10 }
 0x33c   :  { %v1548_v6 = vsel %vm494_vm9, %v4792_v3, 0.0  ;;  %v3238_v17 = vpop.eup %3237 }
 0x33d   :  { %2903 = vmatmul.msk.f32.vlgmr.msrb.gmra.mxu2 %vm494_vm9, %v769_v53  ;;  %v770_v11 = vmul.f32 %v3238_v17, %v4538_v8  ;;  %v4805_v55 = vpop.eup %3239  ;;  %v1964_v17 = vsel %vm1494_vm3, -1e+09, %v1952_v59 }
 0x33e   :  { %v1783_v36 = vsel %vm494_vm9, %v4805_v55, 0.0 }
 0x33f   :  { %3114 = vrot.lane.b32.xlu1 %v3924_v46, %s3409_s5  ;;  %v756_v30 = vpop.xlane.xlu2 %755 }
 0x340   :  { %1549 = vadd.xlane.f32.xlu2 %v1548_v6 }
 0x341   :  { %v753_v32 = vpop.xlane.xlu0 %752 }
 0x342   :  { %3241 = vrcp.f32 %v753_v32  ;;  %3099 = vrot.lane.b32.xlu0 %v3924_v46, %s3410_s23 }
 0x343   :  { %3243 = vpow2.f32 %v1537_v21  ;;  %v4812_v24 = vpop.xlane.xlu1 %1754 }
 0x344   :  { %3245 = vrcp.f32 %v756_v30 }
 0x345   :  { %2904 = vmatmul.msk.f32.gmra.mxu2 %vm494_vm9, %v770_v11  ;;  %v4829_v11 = vsel %vm485_vm2, -1e+30, %v1964_v17 }
 0x348   :  { %v3242_v20 = vpop.eup %3241  ;;  %1784 = vadd.xlane.f32.xlu2 %v1783_v36 }
 0x349   :  { %v539_v39 = vpop.xlane.xlu0 %538  ;;  %v542_v25 = vpop.xlane.xlu2 %541  ;;  %v771_v8 = vmul.f32 %v3242_v20, %v4587_v43 }
 0x34a   :  { %3247 = vrcp.f32 %v539_v39  ;;  %v4815_v47 = vpop.eup %3243  ;;  %v1760_v39 = vsub.f32 %v4472_v56, %v4668_v35 }
 0x34b   :  { %v3246_v53 = vpop.eup %3245  ;;  %v1551_v10 = vsel %vm494_vm9, %v4815_v47, 0.0  ;;  %3249 = vrcp.f32 %v542_v25  ;;  %v4831_v36 = vpop.xlane.xlu1 %1757  ;;  %v1982_v25 = vsel %vm494_vm9, %v4829_v11, -inf }
 0x34c   :  { %v772_v21 = vmul.f32 %v3246_v53, %v4575_v27  ;;  %v1767_v53 = vmul.f32 1.442695, %v1760_v39 }
 0x34d   :  { %2905 = vmatmul.msk.f32.gmra.mxu2 %vm494_vm9, %v771_v8  ;;  %v1527_v8 = vsub.f32 %v4482_v50, %v4672_v9  ;;  %v2184_v50 = vpop.f32.mrf.mxu1 }
 0x34e   :  { %3251 = vpow2.f32 %v1767_v53 }
 0x350   :  { %v3248_v6 = vpop.eup %3247  ;;  %1552 = vadd.xlane.f32.xlu2 %v1551_v10 }
 0x351   :  { %v4822_v30 = vpop.xlane.xlu0 %987  ;;  %v1752_v32 = vpop.xlane.xlu2 %1751  ;;  %v557_v43 = vmul.f32 %v3248_v6, %v4603_v62  ;;  %v1533_v6 = vmul.f32 1.442695, %v1527_v8  ;;  %v2196_v8 = vsel %vm1494_vm3, -1e+09, %v2184_v50 }
 0x352   :  { %v3250_v20 = vpop.eup %3249  ;;  %v1762_v9 = vsub.f32 %v4627_v0, %v1752_v32  ;;  %v1955_v0 = vpop.f32.mrf.mxu3 }
 0x353   :  { %2887 = vmatmul.msk.f32.gmra.mxu0 %vm494_vm9, %v557_v43  ;;  %v558_v27 = vmul.f32 %v3250_v20, %v4605_v37  ;;  %3253 = vpow2.f32 %v1533_v6  ;;  %v1965_v45 = vsel %vm1495_vm11, -1e+09, %v1955_v0 }
 0x354   :  { %v1771_v53 = vmul.f32 1.442695, %v1762_v9  ;;  %v4875_v13 = vsel %vm486_vm10, -1e+30, %v1965_v45 }
 0x355   :  { %2906 = vmatmul.msk.f32.gmra.mxu2 %vm494_vm9, %v772_v21 }
 0x358   :  { %1983 = vmax.xlane.f32.xlu2 %v1982_v25  ;;  %v4847_v25 = vpop.eup %3251 }
 0x359   :  { %v4838_v62 = vpop.xlane.xlu0 %1222  ;;  %v4844_v10 = vpop.xlane.xlu1 %1225 }
 0x35a   :  { %v1526_v59 = vpop.xlane.xlu2 %1525  ;;  %v4852_v39 = vpop.eup %3253 }
 0x35b   :  { %2888 = vmatmul.msk.f32.gmra.mxu0 %vm494_vm9, %v558_v27  ;;  %v1780_v27 = vsel %vm494_vm9, %v4847_v25, 0.0  ;;  %v1545_v6 = vsel %vm494_vm9, %v4852_v39, 0.0 }
 0x361   :  { %v1520_v56 = vpop.xlane.xlu0 %1519  ;;  %v4850_v20 = vpop.xlane.xlu1 %1228 }
 0x362   :  { %v1530_v35 = vsub.f32 %v4661_v15, %v1520_v56  ;;  %v3095_v17 = vpop.permute.xlu2 %3094 }
 0x363   :  { %v3096_v43 = vunpack.i.l.bf16 %v3095_v17  ;;  %v3097_v37 = vunpack.i.h.bf16 %v3095_v17 }
 0x364   :  { %v1539_v21 = vmul.f32 1.442695, %v1530_v35  ;;  %v4865_v35 = vsel %vm485_vm2, -1e+30, %v2196_v8  ;;  %v1763_v8 = vsub.f32 %v4591_v34, %v4812_v24 }
 0x365   :  { %1853 = vmatpush.msrb.mxu2 %v3096_v43 }
 0x366   :  { %3255 = vpow2.f32 %v1539_v21  ;;  %v2214_v21 = vsel %vm494_vm9, %v4865_v35, -inf }
 0x367   :  { %1854 = vmatpush.msrb.mxu2 %v3097_v37  ;;  %3257 = vpow2.f32 %v1771_v53 }
 0x369   :  { %v1523_v15 = vpop.xlane.xlu0 %1522  ;;  %1781 = vadd.xlane.f32.xlu1 %v1780_v27  ;;  %v762_v37 = vpop.xlane.xlu1 %761  ;;  %v1985_v27 = vsel %vm494_vm9, %v4875_v13, -inf }
 0x36a   :  { %v1531_v32 = vsub.f32 %v4678_v58, %v1523_v15  ;;  %v1532_v58 = vsub.f32 %v4641_v63, %v1526_v59  ;;  %v2187_v15 = vpop.f32.mrf.mxu1  ;;  %v1773_v59 = vmul.f32 1.442695, %v1763_v8 }
 0x36b   :  { %v2197_v63 = vsel %vm1495_vm11, -1e+09, %v2187_v15 }
 0x36c   :  { %v4860_v56 = vpop.eup %3255  ;;  %1546 = vadd.xlane.f32.xlu0 %v1545_v6  ;;  %v1541_v43 = vmul.f32 1.442695, %v1531_v32  ;;  %v1543_v53 = vmul.f32 1.442695, %v1532_v58  ;;  %v4894_v45 = vsel %vm486_vm10, -1e+30, %v2197_v63 }
 0x36d   :  { %v1554_v17 = vsel %vm494_vm9, %v4860_v56, 0.0  ;;  %v4878_v9 = vpop.eup %3257  ;;  %v2217_v24 = vsel %vm494_vm9, %v4894_v45, -inf }
 0x36e   :  { %1555 = vadd.xlane.f32.xlu2 %v1554_v17  ;;  %3259 = vpow2.f32 %v1541_v43  ;;  %v1786_v6 = vsel %vm494_vm9, %v4878_v9, 0.0 }
 0x36f   :  { %3261 = vpow2.f32 %v1543_v53 }
 0x370   :  { %3263 = vpow2.f32 %v1773_v59 }
 0x371   :  { %v2207_v50 = vpop.xlane.xlu0 %2206  ;;  %2215 = vmax.xlane.f32.xlu1 %v2214_v21  ;;  %v548_v17 = vpop.xlane.xlu1 %547 }
 0x374   :  { %v4888_v32 = vpop.eup %3259 }
 0x375   :  { %v1557_v34 = vsel %vm494_vm9, %v4888_v32, 0.0  ;;  %v4902_v43 = vpop.eup %3261 }
 0x376   :  { %1986 = vmax.xlane.f32.xlu2 %v1985_v27  ;;  %v4904_v21 = vpop.eup %3263  ;;  %v1560_v58 = vsel %vm494_vm9, %v4902_v43, 0.0  ;;  %v2190_v27 = vpop.f32.mrf.mxu1 }
 0x377   :  { %v1789_v8 = vsel %vm494_vm9, %v4904_v21, 0.0  ;;  %v2198_v63 = vsel %vm1496_vm12, -1e+09, %v2190_v27 }
 0x378   :  { %v4918_v59 = vsel %vm487_vm6, -1e+30, %v2198_v63 }
 0x379   :  { %v4886_v0 = vpop.xlane.xlu0 %990  ;;  %1787 = vadd.xlane.f32.xlu1 %v1786_v6  ;;  %v4906_v41 = vpop.xlane.xlu1 %1231 }
 0x37e   :  { %1558 = vadd.xlane.f32.xlu2 %v1557_v34 }
 0x380   :  { %3119 = vrot.lane.b32.xlu0 %v3972_v22, %s3409_s5 }
 0x381   :  { %v759_v7 = vpop.xlane.xlu0 %758  ;;  %2218 = vmax.xlane.f32.xlu1 %v2217_v24  ;;  %v1958_v24 = vpop.f32.mrf.mxu3 }
 0x382   :  { %3265 = vrcp.f32 %v759_v7  ;;  %v4922_v7 = vpop.xlane.xlu1 %999 }
 0x383   :  { %3267 = vrcp.f32 %v762_v37  ;;  %v2223_v37 = vsub.f32 %v4695_v49, %v2207_v50 }
 0x386   :  { %1561 = vadd.xlane.f32.xlu2 %v1560_v58 }
 0x388   :  { %v3266_v15 = vpop.eup %3265 }
 0x389   :  { %v545_v53 = vpop.xlane.xlu0 %544  ;;  %1790 = vadd.xlane.f32.xlu1 %v1789_v8  ;;  %v773_v6 = vmul.f32 %v3266_v15, %v4716_v14  ;;  %v3268_v34 = vpop.eup %3267  ;;  %v2220_v14 = vsel %vm494_vm9, %v4918_v59, -inf  ;;  %v1966_v8 = vsel %vm1496_vm12, -1e+09, %v1958_v24 }
 0x38a   :  { %3269 = vrcp.f32 %v545_v53  ;;  %v774_v15 = vmul.f32 %v3268_v34, %v4674_v40  ;;  %v2229_v53 = vmul.f32 1.442695, %v2223_v37  ;;  %v1764_v34 = vsub.f32 %v4609_v18, %v4831_v36 }
 0x38b   :  { %2907 = vmatmul.msk.f32.gmra.mxu2 %vm494_vm9, %v773_v6  ;;  %3271 = vrcp.f32 %v4746_v42  ;;  %v4934_v42 = vsel %vm487_vm6, -1e+30, %v1966_v8  ;;  %v1963_v18 = vsel %vm1493_vm5, -1e+09, %v4807_v12 }
 0x38c   :  { %3273 = vrcp.f32 %v548_v17  ;;  %v1988_v2 = vsel %vm494_vm9, %v4934_v42, -inf  ;;  %v4941_v17 = vpop.xlane.xlu1 %1974 }
 0x38d   :  { %3275 = vrcp.f32 %v4787_v23 }
 0x38e   :  { %3277 = vpow2.f32 %v2229_v53 }
 0x38f   :  { %3279 = vrcp.f32 %v4800_v26 }
 0x390   :  { %v3270_v58 = vpop.eup %3269  ;;  %3281 = vrcp.f32 %v4822_v30 }
 0x391   :  { %2221 = vmax.xlane.f32.xlu1 %v2220_v14  ;;  %v559_v27 = vmul.f32 %v3270_v58, %v4727_v28  ;;  %v3272_v49 = vpop.eup %3271  ;;  %v994_v40 = vpop.xlane.xlu0 %993  ;;  %3283 = vrcp.f32 %v4838_v62  ;;  %v5530_v58 = vld [vmem:[#allocation4_spill] sm:$0xff] }
 0x392   :  { %v3274_v50 = vpop.eup %3273  ;;  %v1239_v28 = vmul.f32 %v3272_v49, %v4530_v61  ;;  %v4969_v49 = vsel %vm484_vm13, -1e+30, %v1963_v18 }
 0x393   :  { %2889 = vmatmul.msk.f32.gmra.mxu0 %vm494_vm9, %v559_v27  ;;  %2908 = vmatmul.msk.f32.gmra.mxu2 %vm494_vm9, %v774_v15  ;;  %v560_v6 = vmul.f32 %v3274_v50, %v4691_v31  ;;  %v3276_v23 = vpop.eup %3275  ;;  %v5529_v31 = vld [vmem:[#allocation3_spill] sm:$0xff]  ;;  %v1775_v27 = vmul.f32 1.442695, %v1764_v34  ;;  %v1979_v12 = vsel %vm494_vm9, %v4969_v49, -inf }
 0x394   :  { %v4948_v63 = vpop.eup %3277  ;;  %v1007_v24 = vmul.f32 %v3276_v23, %v5529_v31 }
 0x395   :  { %v3280_v26 = vpop.eup %3279  ;;  %v2241_v61 = vsel %vm494_vm9, %v4948_v63, 0.0  ;;  %3285 = vpow2.f32 %v1775_v27 }
 0x396   :  { %v1240_v14 = vmul.f32 %v3280_v26, %v5530_v58  ;;  %v3282_v36 = vpop.eup %3281  ;;  %3287 = vrcp.f32 %v4844_v10 }
 0x397   :  { %v3284_v53 = vpop.eup %3283  ;;  %3289 = vrcp.f32 %v4886_v0  ;;  %v1008_v50 = vmul.f32 %v3282_v36, %v4623_v57 }
 0x398   :  { %3291 = vrcp.f32 %v4850_v20 }
 0x399   :  { %1989 = vmax.xlane.f32.xlu1 %v1988_v2  ;;  %v997_v15 = vpop.xlane.xlu0 %996  ;;  %v5531_v2 = vld [vmem:[#allocation5_spill] sm:$0xff]  ;;  %3293 = vrcp.f32 %v994_v40 }
 0x39a   :  { %3295 = vrcp.f32 %v4906_v41 }
 0x39b   :  { %v4944_v16 = vpop.xlane.xlu2 %2209  ;;  %2890 = vmatmul.msk.f32.gmra.mxu0 %vm494_vm9, %v560_v6  ;;  %2939 = vmatmul.msk.f32.vlgmr.msra.gmra.mxu2 %vm494_vm9, %v1239_v28  ;;  %v1241_v28 = vmul.f32 %v3284_v53, %v5531_v2  ;;  %v4981_v33 = vpop.eup %3285  ;;  %3297 = vrcp.f32 %v997_v15 }
 0x39c   :  { %v3288_v23 = vpop.eup %3287  ;;  %v1792_v26 = vsel %vm494_vm9, %v4981_v33, 0.0  ;;  %3299 = vrcp.f32 %v4922_v7 }
 0x39d   :  { %v3290_v10 = vpop.eup %3289 }
 0x39e   :  { %3129 = vrot.lane.b32.xlu2 %v3924_v46, %s3411_s24  ;;  %v1009_v34 = vmul.f32 %v3290_v10, %v4708_v54  ;;  %v3292_v20 = vpop.eup %3291  ;;  %v1991_v10 = vsub.f32 %v4731_v38, %v4941_v17 }
 0x39f   :  { %v3294_v40 = vpop.eup %3293 }
 0x3a0   :  { %v1010_v27 = vmul.f32 %v3294_v40, %v4739_v1  ;;  %v3296_v41 = vpop.eup %3295 }
 0x3a1   :  { %v3105_v37 = vpop.permute.xlu1 %3104  ;;  %2242 = vadd.xlane.f32.xlu1 %v2241_v61  ;;  %v1779_v6 = vpop.xlane.xlu0 %1778  ;;  %v5532_v61 = vld [vmem:[#allocation6_spill] sm:$0xff]  ;;  %v1244_v15 = vmul.f32 %v3296_v41, %v4706_v4 }
 0x3a2   :  { %v3106_v8 = vunpack.i.l.bf16 %v3105_v37  ;;  %v3107_v30 = vunpack.i.h.bf16 %v3105_v37  ;;  %v1242_v31 = vmul.f32 %v3288_v23, %v5532_v61  ;;  %v3298_v36 = vpop.eup %3297  ;;  %3301 = vrcp.f32 %v1779_v6 }
 0x3a3   :  { %2921 = vmatmul.msk.f32.vlgmr.msra.gmra.mxu0 %vm494_vm9, %v1007_v24  ;;  %2940 = vmatmul.msk.f32.gmra.mxu2 %vm494_vm9, %v1240_v14  ;;  %v4965_v62 = vpop.xlane.xlu2 %1977  ;;  %v1011_v1 = vmul.f32 %v3298_v36, %v4749_v60 }
 0x3a4   :  { %1621 = vmatpush.msrb.mxu0 %v3106_v8  ;;  %v5533_v8 = vld [vmem:[#allocation7_spill] sm:$0xff]  ;;  %v1992_v4 = vsub.f32 %v4766_v29, %v4965_v62 }
 0x3a5   :  { %v1243_v18 = vmul.f32 %v3292_v20, %v5533_v8 }
 0x3a6   :  { %3139 = vrot.lane.b32.xlu2 %v3972_v22, %s3411_s24  ;;  %1622 = vmatpush.msrb.mxu0 %v3107_v30  ;;  %v1999_v7 = vmul.f32 1.442695, %v1992_v4 }
 0x3a8   :  { %3303 = vpow2.f32 %v1999_v7 }
 0x3a9   :  { %v3110_v51 = vpop.permute.xlu1 %3109 }
 0x3aa   :  { %1980 = vmax.xlane.f32.xlu0 %v1979_v12  ;;  %v3111_v30 = vunpack.i.l.bf16 %v3110_v51  ;;  %v3300_v12 = vpop.eup %3299 }
 0x3ab   :  { %2922 = vmatmul.msk.f32.gmra.mxu0 %vm494_vm9, %v1008_v50  ;;  %2941 = vmatmul.msk.f32.gmra.mxu2 %vm494_vm9, %v1241_v28  ;;  %v4986_v0 = vpop.xlane.xlu2 %2212  ;;  %v3302_v50 = vpop.eup %3301  ;;  %v1012_v2 = vmul.f32 %v3300_v12, %v4718_v5  ;;  %v2224_v28 = vsub.f32 %v4754_v19, %v4944_v16  ;;  %v1997_v16 = vmul.f32 1.442695, %v1991_v10 }
 0x3ad   :  { %v2231_v6 = vmul.f32 1.442695, %v2224_v28 }
 0x3ae   :  { %3144 = vrot.lane.b32.xlu2 %v3924_v46, %s3414_s27  ;;  %v5023_v5 = vpop.eup %3303 }
 0x3af   :  { %3305 = vpow2.f32 %v2231_v6  ;;  %v2012_v62 = vsel %vm494_vm9, %v5023_v5, 0.0 }
 0x3b1   :  { %v3115_v57 = vpop.permute.xlu1 %3114 }
 0x3b2   :  { %v3116_v24 = vunpack.i.l.bf16 %v3115_v57  ;;  %1793 = vadd.xlane.f32.xlu0 %v1792_v26  ;;  %v3117_v46 = vunpack.i.h.bf16 %v3115_v57 }
 0x3b3   :  { %2923 = vmatmul.msk.f32.gmra.mxu0 %vm494_vm9, %v1009_v34  ;;  %2942 = vmatmul.msk.f32.gmra.mxu2 %vm494_vm9, %v1242_v31  ;;  %v4997_v14 = vpop.xlane.xlu2 %1549 }
 0x3b4   :  { %v3100_v37 = vpop.permute.xlu0 %3099  ;;  %1623 = vmatpush.msrb.mxu0 %v3116_v24 }
 0x3b5   :  { %v3101_v58 = vunpack.i.l.bf16 %v3100_v37  ;;  %v3102_v54 = vunpack.i.h.bf16 %v3100_v37  ;;  %v5029_v57 = vpop.eup %3305 }
 0x3b6   :  { %3149 = vrot.lane.b32.xlu2 %v3972_v22, %s3414_s27  ;;  %1624 = vmatpush.msrb.mxu0 %v3117_v46  ;;  %v3112_v22 = vunpack.i.h.bf16 %v3110_v51  ;;  %v1801_v51 = vmul.f32 %v3302_v50, %v4762_v52  ;;  %v2244_v34 = vsel %vm494_vm9, %v5029_v57, 0.0 }
 0x3b7   :  { %1855 = vmatpush.msrb.mxu2 %v3101_v58 }
 0x3b9   :  { %1856 = vmatpush.msrb.mxu2 %v3102_v54 }
 0x3ba   :  { %3134 = vrot.lane.b32.xlu1 %v3948_v48, %s3414_s27 }
 0x3bb   :  { %2924 = vmatmul.msk.f32.gmra.mxu0 %vm494_vm9, %v1010_v27  ;;  %2943 = vmatmul.msk.f32.gmra.mxu2 %vm494_vm9, %v1243_v18  ;;  %v1785_v53 = vpop.xlane.xlu2 %1784  ;;  %v5051_v27 = vpop.f32.mrf.mxu0 }
 0x3bc   :  { %1857 = vmatpush.msrb.mxu2 %v3111_v30 }
 0x3be   :  { %1858 = vmatpush.msrb.mxu2 %v3112_v22 }
 0x3c0   :  { %v5043_v24 = vpop.f32.mrf.mxu2 }
 0x3c3   :  { %2925 = vmatmul.msk.f32.gmra.mxu0 %vm494_vm9, %v1011_v1  ;;  %2944 = vmatmul.msk.f32.gmra.mxu2 %vm494_vm9, %v1244_v15  ;;  %v5018_v60 = vpop.xlane.xlu2 %1552  ;;  %v5068_v50 = vpop.f32.mrf.mxu0 }
 0x3c6   :  { %3124 = vrot.lane.b32.xlu0 %v3948_v48, %s3411_s24 }
 0x3c8   :  { %v5058_v30 = vpop.f32.mrf.mxu2 }
 0x3cb   :  { %2926 = vmatmul.msk.f32.gmra.mxu0 %vm494_vm9, %v1012_v2  ;;  %2975 = vmatmul.msk.f32.vlgmr.msrb.gmra.mxu2 %vm494_vm9, %v1801_v51  ;;  %v1984_v48 = vpop.xlane.xlu2 %1983 }
 0x3cc   :  { %v1994_v52 = vsub.f32 %v4829_v11, %v1984_v48  ;;  %v2225_v11 = vsub.f32 %v4780_v44, %v4986_v0 }
 0x3ce   :  { %v2003_v29 = vmul.f32 1.442695, %v1994_v52  ;;  %v2233_v61 = vmul.f32 1.442695, %v2225_v11 }
 0x3d0   :  { %v5078_v7 = vpop.f32.mrf.mxu0 }
 0x3dc   :  { %v1782_v23 = vpop.xlane.xlu1 %1781 }
 0x3dd   :  { %3307 = vrcp.f32 %v1782_v23 }
 0x3de   :  { %3309 = vpow2.f32 %v2003_v29 }
 0x3df   :  { %2013 = vadd.xlane.f32.xlu2 %v2012_v62  ;;  %3311 = vrcp.f32 %v1785_v53  ;;  %v1547_v37 = vpop.xlane.xlu0 %1546 }
 0x3e0   :  { %3313 = vpow2.f32 %v1997_v16 }
 0x3e1   :  { %v5031_v19 = vpop.xlane.xlu2 %1555  ;;  %3315 = vpow2.f32 %v2233_v61 }
 0x3e2   :  { %3317 = vrcp.f32 %v1547_v37 }
 0x3e3   :  { %v3308_v26 = vpop.eup %3307 }
 0x3e4   :  { %v5037_v38 = vpop.xlane.xlu1 %2215  ;;  %2245 = vadd.xlane.f32.xlu1 %v2244_v34  ;;  %v1802_v17 = vmul.f32 %v3308_v26, %v4847_v25  ;;  %v5041_v31 = vpop.eup %3309 }
 0x3e5   :  { %v3312_v46 = vpop.eup %3311  ;;  %v2018_v20 = vsel %vm494_vm9, %v5041_v31, 0.0 }
 0x3e6   :  { %2976 = vmatmul.msk.f32.gmra.mxu2 %vm494_vm9, %v1802_v17  ;;  %v5048_v58 = vpop.eup %3313  ;;  %v1803_v54 = vmul.f32 %v3312_v46, %v4805_v55 }
 0x3e7   :  { %v5056_v8 = vpop.eup %3315 }
 0x3e8   :  { %v3318_v18 = vpop.eup %3317  ;;  %v2247_v2 = vsel %vm494_vm9, %v5056_v8, 0.0 }
 0x3e9   :  { %v1987_v44 = vpop.xlane.xlu2 %1986  ;;  %v1569_v51 = vmul.f32 %v3318_v18, %v4852_v39 }
 0x3ea   :  { %v1995_v0 = vsub.f32 %v4875_v13, %v1987_v44  ;;  %v2009_v13 = vsel %vm494_vm9, %v5048_v58, 0.0 }
 0x3ec   :  { %v2005_v25 = vmul.f32 1.442695, %v1995_v0  ;;  %v1788_v40 = vpop.xlane.xlu1 %1787  ;;  %2019 = vadd.xlane.f32.xlu1 %v2018_v20 }
 0x3ed   :  { %3319 = vrcp.f32 %v1788_v40 }
 0x3ee   :  { %3321 = vpow2.f32 %v2005_v25  ;;  %2977 = vmatmul.msk.f32.gmra.mxu2 %vm494_vm9, %v1803_v54  ;;  %v2226_v54 = vsub.f32 %v4865_v35, %v5037_v38 }
 0x3ef   :  { %3323 = vrcp.f32 %v4997_v14  ;;  %v5076_v14 = vpop.f32.mrf.mxu2 }
 0x3f0   :  { %2010 = vadd.xlane.f32.xlu0 %v2009_v13  ;;  %3325 = vrcp.f32 %v5018_v60  ;;  %v2235_v18 = vmul.f32 1.442695, %v2226_v54 }
 0x3f1   :  { %v1559_v28 = vpop.xlane.xlu2 %1558 }
 0x3f2   :  { %v3120_v22 = vpop.permute.xlu0 %3119 }
 0x3f3   :  { %v3320_v41 = vpop.eup %3319  ;;  %v3121_v36 = vunpack.i.l.bf16 %v3120_v22  ;;  %v3122_v53 = vunpack.i.h.bf16 %v3120_v22 }
 0x3f4   :  { %v5060_v1 = vpop.eup %3321  ;;  %v5062_v55 = vpop.xlane.xlu1 %2218  ;;  %v1804_v15 = vmul.f32 %v3320_v41, %v4878_v9 }
 0x3f5   :  { %1625 = vmatpush.msrb.mxu0 %v3121_v36  ;;  %v2021_v12 = vsel %vm494_vm9, %v5060_v1, 0.0  ;;  %v3324_v9 = vpop.eup %3323 }
 0x3f6   :  { %2022 = vadd.xlane.f32.xlu1 %v2021_v12  ;;  %2978 = vmatmul.msk.f32.gmra.mxu2 %vm494_vm9, %v1804_v15  ;;  %v1570_v39 = vmul.f32 %v3324_v9, %v4792_v3  ;;  %v3326_v6 = vpop.eup %3325  ;;  %v5089_v3 = vpop.f32.mrf.mxu0 }
 0x3f7   :  { %1626 = vmatpush.msrb.mxu0 %v3122_v53  ;;  %v5085_v10 = vpop.f32.mrf.mxu2  ;;  %v1571_v29 = vmul.f32 %v3326_v6, %v4815_v47 }
 0x3f8   :  { %2248 = vadd.xlane.f32.xlu0 %v2247_v2  ;;  %2957 = vmatmul.msk.f32.vlgmr.msrb.gmra.mxu0 %vm494_vm9, %v1569_v51 }
 0x3f9   :  { %v1562_v16 = vpop.xlane.xlu2 %1561 }
 0x3fc   :  { %v1791_v4 = vpop.xlane.xlu1 %1790 }
 0x3fd   :  { %3327 = vrcp.f32 %v1791_v4 }
 0x3fe   :  { %3329 = vrcp.f32 %v5031_v19 }
 0x400   :  { %2958 = vmatmul.msk.f32.gmra.mxu0 %vm494_vm9, %v1570_v39 }
 0x401   :  { %v5104_v17 = vpop.permute.xlu2 %3129 }
 0x403   :  { %v3328_v48 = vpop.eup %3327 }
 0x404   :  { %v2222_v52 = vpop.xlane.xlu1 %2221  ;;  %v1805_v23 = vmul.f32 %v3328_v48, %v4904_v21  ;;  %v3330_v26 = vpop.eup %3329 }
 0x405   :  { %v2228_v60 = vsub.f32 %v4918_v59, %v2222_v52  ;;  %v1572_v19 = vmul.f32 %v3330_v26, %v4860_v56 }
 0x406   :  { %2979 = vmatmul.msk.f32.gmra.mxu2 %vm494_vm9, %v1805_v23 }
 0x407   :  { %v2239_v62 = vmul.f32 1.442695, %v2228_v60 }
 0x408   :  { %2959 = vmatmul.msk.f32.gmra.mxu0 %vm494_vm9, %v1571_v29 }
 0x409   :  { %3331 = vpow2.f32 %v2239_v62  ;;  %v5112_v0 = vpop.permute.xlu2 %3139 }
 0x40a   :  { %3333 = vrcp.f32 %v1559_v28 }
 0x40b   :  { %3335 = vrcp.f32 %v1562_v16 }
 0x40e   :  { %v5092_v21 = vpop.f32.mrf.mxu2 }
 0x40f   :  { %v5095_v59 = vpop.eup %3331  ;;  %1322 = vrot.lane.b32.xlu1 %v5043_v24, %s3411_s24  ;;  %v1990_v24 = vpop.xlane.xlu1 %1989 }
 0x410   :  { %v5099_v11 = vpop.f32.mrf.mxu0  ;;  %2960 = vmatmul.msk.f32.gmra.mxu0 %vm494_vm9, %v1572_v19  ;;  %v2256_v47 = vsel %vm494_vm9, %v5095_v59, 0.0  ;;  %v3334_v34 = vpop.eup %3333 }
 0x411   :  { %2257 = vadd.xlane.f32.xlu2 %v2256_v47  ;;  %v1573_v56 = vmul.f32 %v3334_v34, %v4888_v32  ;;  %v3336_v37 = vpop.eup %3335  ;;  %v3145_v35 = vpop.permute.xlu2 %3144  ;;  %v3131_v47 = vunpack.i.l.bf16 %v5104_v17 }
 0x412   :  { %v1574_v40 = vmul.f32 %v3336_v37, %v4902_v43  ;;  %v2227_v43 = vsub.f32 %v4894_v45, %v5062_v55  ;;  %v1996_v45 = vsub.f32 %v4934_v42, %v1990_v24  ;;  %v3146_v55 = vunpack.i.l.bf16 %v3145_v35 }
 0x413   :  { %v3147_v52 = vunpack.i.h.bf16 %v3145_v35  ;;  %v3132_v24 = vunpack.i.h.bf16 %v5104_v17 }
 0x414   :  { %v2237_v12 = vmul.f32 1.442695, %v2227_v43 }
 0x416   :  { %v5106_v61 = vpop.f32.mrf.mxu2 }
 0x417   :  { %v2243_v22 = vpop.xlane.xlu1 %2242 }
 0x418   :  { %v5109_v46 = vpop.f32.mrf.mxu0  ;;  %2961 = vmatmul.msk.f32.gmra.mxu0 %vm494_vm9, %v1573_v56 }
 0x419   :  { %v3150_v48 = vpop.permute.xlu2 %3149 }
 0x41a   :  { %v3151_v23 = vunpack.i.l.bf16 %v3150_v48  ;;  %v3152_v62 = vunpack.i.h.bf16 %v3150_v48 }
 0x41d   :  { %v1981_v44 = vpop.xlane.xlu0 %1980 }
 0x41e   :  { %v1993_v20 = vsub.f32 %v4969_v49, %v1981_v44  ;;  %v1298_v25 = vpop.f32.mrf.mxu2  ;;  %v3141_v44 = vunpack.i.l.bf16 %v5112_v0 }
 0x41f   :  { %1370 = vrot.lane.b32.xlu1 %v1298_v25, %s3410_s23  ;;  %v3142_v25 = vunpack.i.h.bf16 %v5112_v0 }
 0x420   :  { %v2001_v32 = vmul.f32 1.442695, %v1993_v20  ;;  %v5119_v13 = vpop.f32.mrf.mxu0  ;;  %2962 = vmatmul.msk.f32.gmra.mxu0 %vm494_vm9, %v1574_v40 }
 0x422   :  { %3337 = vpow2.f32 %v2001_v32 }
 0x425   :  { %v1794_v41 = vpop.xlane.xlu0 %1793 }
 0x426   :  { %3339 = vrcp.f32 %v1794_v41  ;;  %v1301_v36 = vpop.f32.mrf.mxu2 }
 0x427   :  { %1372 = vrot.lane.b32.xlu1 %v1301_v36, %s3410_s23  ;;  %3341 = vpow2.f32 %v2235_v18 }
 0x428   :  { %v5123_v49 = vpop.eup %3337  ;;  %v1069_v38 = vpop.f32.mrf.mxu0  ;;  %3343 = vpow2.f32 %v2237_v12 }
 0x429   :  { %1348 = vrot.lane.b32.xlu2 %v1069_v38, %s3414_s27  ;;  %v2015_v15 = vsel %vm494_vm9, %v5123_v49, 0.0 }
 0x42a   :  { %2016 = vadd.xlane.f32.xlu0 %v2015_v15 }
 0x42c   :  { %v3340_v53 = vpop.eup %3339  ;;  %v3135_v51 = vpop.permute.xlu1 %3134 }
 0x42d   :  { %v3136_v2 = vunpack.i.l.bf16 %v3135_v51  ;;  %v1806_v9 = vmul.f32 %v3340_v53, %v4981_v33  ;;  %v5131_v4 = vpop.eup %3341  ;;  %v3137_v28 = vunpack.i.h.bf16 %v3135_v51  ;;  %v2007_v33 = vmul.f32 1.442695, %v1996_v45 }
 0x42e   :  { %v5133_v39 = vpop.f32.mrf.mxu2  ;;  %v2250_v6 = vsel %vm494_vm9, %v5131_v4, 0.0  ;;  %v5139_v60 = vpop.eup %3343 }
 0x42f   :  { %2980 = vmatmul.msk.f32.gmra.mxu2 %vm494_vm9, %v1806_v9  ;;  %2085 = vmatpush.msra.mxu0 %v3136_v2  ;;  %3345 = vpow2.f32 %v2007_v33  ;;  %v2253_v26 = vsel %vm494_vm9, %v5139_v60, 0.0 }
 0x430   :  { %3347 = vrcp.f32 %v2243_v22  ;;  %v5175_v12 = vpop.f32.mrf.mxu0 }
 0x431   :  { %2086 = vmatpush.msra.mxu0 %v3137_v28 }
 0x432   :  { %2251 = vadd.xlane.f32.xlu0 %v2250_v6 }
 0x433   :  { %2087 = vmatpush.msra.mxu0 %v3146_v55 }
 0x435   :  { %2088 = vmatpush.msra.mxu0 %v3147_v52  ;;  %v5146_v34 = vpop.eup %3345 }
 0x436   :  { %v5141_v29 = vpop.f32.mrf.mxu2  ;;  %v3348_v37 = vpop.eup %3347  ;;  %v2024_v20 = vsel %vm494_vm9, %v5146_v34, 0.0 }
 0x437   :  { %2089 = vmatpush.msra.mxu0 %v3151_v23  ;;  %v2265_v40 = vmul.f32 %v3348_v37, %v4948_v63 }
 0x438   :  { %v3125_v42 = vpop.permute.xlu0 %3124  ;;  %v5178_v51 = vpop.f32.mrf.mxu0 }
 0x439   :  { %v3126_v16 = vunpack.i.l.bf16 %v3125_v42  ;;  %2090 = vmatpush.msra.mxu0 %v3152_v62  ;;  %v3127_v19 = vunpack.i.h.bf16 %v3125_v42 }
 0x43a   :  { %2254 = vadd.xlane.f32.xlu0 %v2253_v26 }
 0x43b   :  { %2317 = vmatpush.msra.mxu2 %v3126_v16 }
 0x43d   :  { %2318 = vmatpush.msra.mxu2 %v3127_v19 }
 0x43e   :  { %v5148_v56 = vpop.f32.mrf.mxu2 }
 0x43f   :  { %2319 = vmatpush.msra.mxu2 %v3131_v47 }
 0x440   :  { %v5180_v9 = vpop.f32.mrf.mxu0 }
 0x441   :  { %2320 = vmatpush.msra.mxu2 %v3132_v24 }
 0x442   :  { %2025 = vadd.xlane.f32.xlu0 %v2024_v20 }
 0x443   :  { %2321 = vmatpush.msra.mxu2 %v3141_v44 }
 0x445   :  { %2322 = vmatpush.msra.mxu2 %v3142_v25 }
 0x446   :  { %v5156_v54 = vpop.f32.mrf.mxu2  ;;  %3011 = vmatmul.msk.f32.vlgmr.msra.gmra.mxu2 %vm494_vm9, %v2265_v40 }
 0x448   :  { %v5184_v55 = vpop.f32.mrf.mxu0 }
 0x44e   :  { %v1860_v17 = vpop.f32.mrf.mxu2 }
 0x44f   :  { %2348 = vrot.lane.b32.xlu1 %v1860_v17, %s3411_s24 }
 0x452   :  { %v2014_v22 = vpop.xlane.xlu2 %2013 }
 0x456   :  { %1324 = vrot.lane.b32.xlu0 %v5058_v30, %s3411_s24 }
 0x457   :  { %v2246_v32 = vpop.xlane.xlu1 %2245 }
 0x458   :  { %3349 = vrcp.f32 %v2246_v32 }
 0x45e   :  { %v3350_v18 = vpop.eup %3349  ;;  %1346 = vrot.lane.b32.xlu0 %v5119_v13, %s3414_s27 }
 0x45f   :  { %v2266_v0 = vmul.f32 %v3350_v18, %v5029_v57 }
 0x461   :  { %3012 = vmatmul.msk.f32.gmra.mxu2 %vm494_vm9, %v2266_v0 }
 0x463   :  { %v2011_v63 = vpop.xlane.xlu0 %2010 }
 0x464   :  { %3351 = vrcp.f32 %v2011_v63 }
 0x465   :  { %3353 = vrcp.f32 %v2014_v22 }
 0x469   :  { %v1863_v41 = vpop.f32.mrf.mxu2 }
 0x46a   :  { %v3352_v36 = vpop.eup %3351  ;;  %2350 = vrot.lane.b32.xlu1 %v1863_v41, %s3411_s24 }
 0x46b   :  { %v2033_v30 = vmul.f32 %v3352_v36, %v5048_v58  ;;  %v2249_v43 = vpop.xlane.xlu0 %2248  ;;  %v3354_v35 = vpop.eup %3353 }
 0x46c   :  { %3355 = vrcp.f32 %v2249_v43  ;;  %v2034_v57 = vmul.f32 %v3354_v35, %v5023_v5  ;;  %v2020_v5 = vpop.xlane.xlu1 %2019 }
 0x46d   :  { %2993 = vmatmul.msk.f32.vlgmr.msra.gmra.mxu0 %vm494_vm9, %v2033_v30 }
 0x471   :  { %v1866_v13 = vpop.f32.mrf.mxu2 }
 0x472   :  { %v3356_v38 = vpop.eup %3355  ;;  %2352 = vrot.lane.b32.xlu1 %v1866_v13, %s3411_s24 }
 0x473   :  { %v2267_v15 = vmul.f32 %v3356_v38, %v5056_v8 }
 0x474   :  { %v2023_v6 = vpop.xlane.xlu1 %2022 }
 0x475   :  { %2994 = vmatmul.msk.f32.gmra.mxu0 %vm494_vm9, %v2034_v57  ;;  %3013 = vmatmul.msk.f32.gmra.mxu2 %vm494_vm9, %v2267_v15 }
 0x479   :  { %v1869_v53 = vpop.f32.mrf.mxu2 }
 0x47a   :  { %2354 = vrot.lane.b32.xlu1 %v1869_v53, %s3411_s24 }
 0x484   :  { %v2258_v42 = vpop.xlane.xlu2 %2257 }
 0x489   :  { %v1872_v58 = vpop.f32.mrf.mxu2 }
 0x48a   :  { %2356 = vrot.lane.b32.xlu1 %v1872_v58, %s3411_s24 }
 0x48c   :  { %v1349_v32 = vpop.permute.xlu2 %1348 }
 0x49d   :  { %v2017_v2 = vpop.xlane.xlu0 %2016 }
 0x49e   :  { %3357 = vrcp.f32 %v2017_v2 }
 0x49f   :  { %3359 = vrcp.f32 %v2020_v5 }
 0x4a4   :  { %v3358_v8 = vpop.eup %3357 }
 0x4a5   :  { %v2252_v28 = vpop.xlane.xlu0 %2251  ;;  %v2035_v45 = vmul.f32 %v3358_v8, %v5123_v49  ;;  %v3360_v48 = vpop.eup %3359 }
 0x4a6   :  { %3361 = vrcp.f32 %v2252_v28  ;;  %v2036_v23 = vmul.f32 %v3360_v48, %v5041_v31  ;;  %v5190_v49 = vpop.f32.mrf.mxu0 }
 0x4a7   :  { %2995 = vmatmul.msk.f32.gmra.mxu0 %vm494_vm9, %v2035_v45  ;;  %3363 = vrcp.f32 %v2023_v6 }
 0x4ac   :  { %v3362_v52 = vpop.eup %3361 }
 0x4ad   :  { %v2255_v33 = vpop.xlane.xlu0 %2254  ;;  %v2268_v62 = vmul.f32 %v3362_v52, %v5131_v4  ;;  %v3364_v16 = vpop.eup %3363 }
 0x4ae   :  { %3365 = vrcp.f32 %v2255_v33  ;;  %v2037_v24 = vmul.f32 %v3364_v16, %v5060_v1  ;;  %v1323_v4 = vpop.permute.xlu1 %1322  ;;  %v5197_v44 = vpop.f32.mrf.mxu0 }
 0x4af   :  { %2996 = vmatmul.msk.f32.gmra.mxu0 %vm494_vm9, %v2036_v23  ;;  %3014 = vmatmul.msk.f32.gmra.mxu2 %vm494_vm9, %v2268_v62  ;;  %3367 = vrcp.f32 %v2258_v42  ;;  %v1388_v41 = vsel %vm410_vm1, %v5051_v27, %v1323_v4  ;;  %v2464_v4 = vld [vmem:[%s5514_s6 + $0x10] sm:$0xff] }
 0x4b2   :  { %v1875_v26 = vpop.f32.mrf.mxu2 }
 0x4b3   :  { %2358 = vrot.lane.b32.xlu2 %v1875_v26, %s3411_s24 }
 0x4b4   :  { %v3366_v19 = vpop.eup %3365 }
 0x4b5   :  { %v2026_v47 = vpop.xlane.xlu0 %2025  ;;  %v2269_v31 = vmul.f32 %v3366_v19, %v5139_v60  ;;  %v3368_v37 = vpop.eup %3367 }
 0x4b6   :  { %3369 = vrcp.f32 %v2026_v47  ;;  %v2270_v40 = vmul.f32 %v3368_v37, %v5095_v59  ;;  %v1371_v1 = vpop.permute.xlu1 %1370  ;;  %v5203_v60 = vpop.f32.mrf.mxu0 }
 0x4b7   :  { %2997 = vmatmul.msk.f32.gmra.mxu0 %vm494_vm9, %v2037_v24  ;;  %3015 = vmatmul.msk.f32.gmra.mxu2 %vm494_vm9, %v2269_v31 }
 0x4bc   :  { %v3370_v20 = vpop.eup %3369 }
 0x4bd   :  { %v2038_v25 = vmul.f32 %v3370_v20, %v5146_v34  ;;  %v2463_v20 = vld [vmem:[%s5514_s6 + $0x8] sm:$0xff] }
 0x4be   :  { %v1373_v63 = vpop.permute.xlu1 %1372  ;;  %v5212_v22 = vpop.f32.mrf.mxu0 }
 0x4bf   :  { %2998 = vmatmul.msk.f32.gmra.mxu0 %vm494_vm9, %v2038_v25  ;;  %3016 = vmatmul.msk.f32.gmra.mxu2 %vm494_vm9, %v2270_v40  ;;  %vm2474_vm9 = vcmask 523264  }
 0x4c6   :  { %v2349_v45 = vpop.permute.xlu1 %2348 }
 0x4c7   :  { %v2414_v48 = vsel %vm410_vm1, %v5190_v49, %v2349_v45  ;;  %v2532_v45 = vld [vmem:[%s5516_s8 + $0x20] sm:$0xff] }
 0x4c8   :  { %v1325_v17 = vpop.permute.xlu0 %1324 }
 0x4c9   :  { %v1389_v18 = vsel %vm410_vm1, %v5068_v50, %v1325_v17  ;;  %v2324_v0 = vpop.f32.mrf.mxu2  ;;  %v5220_v50 = vpop.f32.mrf.mxu0 }
 0x4ca   :  { %v1396_v34 = vsel %vm1394_vm7, %v1389_v18, %v1349_v32  ;;  %2396 = vrot.lane.b32.xlu0 %v2324_v0, %s3410_s23 }
 0x4cb   :  { %v5210_v59 = vsel %vm1401_vm8, %v1396_v34, %v1373_v63 }
 0x4d0   :  { %v1347_v36 = vpop.permute.xlu0 %1346 }
 0x4d1   :  { %v1395_v30 = vsel %vm1394_vm7, %v1388_v41, %v1347_v36  ;;  %v1643_v35 = vpop.f32.mrf.mxu0 }
 0x4d2   :  { %v5218_v43 = vsel %vm1401_vm8, %v1395_v30, %v1371_v1  ;;  %v2462_v1 = vld [vmem:[%s5514_s6] sm:$0xff] }
 0x4dc   :  { %v2351_v42 = vpop.permute.xlu1 %2350 }
 0x4e4   :  { %v2327_v57 = vpop.f32.mrf.mxu2  ;;  %v2353_v24 = vpop.permute.xlu1 %2352 }
 0x4e5   :  { %v2416_v37 = vsel %vm410_vm1, %v5203_v60, %v2353_v24  ;;  %v2528_v24 = vld [vmem:[%s5516_s8] sm:$0xff] }
 0x4ea   :  { %v2092_v13 = vpop.f32.mrf.mxu0 }
 0x4eb   :  { %2372 = vrot.lane.b32.xlu2 %v2092_v13, %s3414_s27 }
 0x4ec   :  { %v2355_v17 = vpop.permute.xlu1 %2354 }
 0x4ed   :  { %v2417_v60 = vsel %vm410_vm1, %v5212_v22, %v2355_v17 }
 0x4f2   :  { %v2095_v38 = vpop.f32.mrf.mxu0 }
 0x4f3   :  { %1326 = vrot.lane.b32.xlu2 %v5076_v14, %s3411_s24  ;;  %2374 = vrot.lane.b32.xlu0 %v2095_v38, %s3414_s27 }
 0x4f8   :  { %v2330_v27 = vpop.f32.mrf.mxu2 }
 0x4fb   :  { %2398 = vrot.lane.b32.xlu2 %v2327_v57, %s3410_s23 }
 0x4fc   :  { %v2357_v34 = vpop.permute.xlu1 %2356 }
 0x4fd   :  { %v2418_v36 = vsel %vm410_vm1, %v5220_v50, %v2357_v34 }
 0x503   :  { %2400 = vrot.lane.b32.xlu2 %v2330_v27, %s3410_s23 }
 0x50d   :  { %v2359_v15 = vpop.permute.xlu2 %2358 }
 0x50e   :  { %v5229_v53 = vsel %vm410_vm1, %v1643_v35, %v2359_v15 }
 0x524   :  { %v2098_v58 = vpop.f32.mrf.mxu0 }
 0x525   :  { %2376 = vrot.lane.b32.xlu0 %v2098_v58, %s3414_s27 }
 0x52c   :  { %v2101_v2 = vpop.f32.mrf.mxu0 }
 0x52d   :  { %2378 = vrot.lane.b32.xlu0 %v2101_v2, %s3414_s27 }
 0x532   :  { %v2333_v5 = vpop.f32.mrf.mxu2 }
 0x533   :  { %2402 = vrot.lane.b32.xlu2 %v2333_v5, %s3410_s23 }
 0x534   :  { %v2104_v14 = vpop.f32.mrf.mxu0 }
 0x535   :  { %2380 = vrot.lane.b32.xlu0 %v2104_v14, %s3414_s27  ;;  %v2534_v14 = vld [vmem:[%s5516_s8 + $0x30] sm:$0xff] }
 0x53a   :  { %v2336_v8 = vpop.f32.mrf.mxu2 }
 0x53b   :  { %2404 = vrot.lane.b32.xlu2 %v2336_v8, %s3410_s23 }
 0x53c   :  { %v2107_v28 = vpop.f32.mrf.mxu0  ;;  %v2397_v33 = vpop.permute.xlu0 %2396 }
 0x53d   :  { %2382 = vrot.lane.b32.xlu0 %v2107_v28, %s3414_s27 }
 0x542   :  { %v2339_v6 = vpop.f32.mrf.mxu2 }
 0x543   :  { %2406 = vrot.lane.b32.xlu2 %v2339_v6, %s3410_s23  ;;  %v2531_v6 = vld [vmem:[%s5516_s8 + $0x18] sm:$0xff] }
 0x545   :  { %v2373_v52 = vpop.permute.xlu2 %2372  ;;  %1374 = vrot.lane.b32.xlu0 %v5133_v39, %s3410_s23  ;;  %v2415_v39 = vsel %vm410_vm1, %v5197_v44, %v2351_v42 }
 0x546   :  { %v2420_v23 = vsel %vm1394_vm7, %v2414_v48, %v2373_v52  ;;  %v2530_v52 = vld [vmem:[%s5516_s8 + $0x10] sm:$0xff] }
 0x547   :  { %v2426_v62 = vsel %vm1401_vm8, %v2420_v23, %v2397_v33 }
 0x548   :  { %2438 = vrot.lane.b32.xlu1 %v2426_v62, %s3409_s5 }
 0x54b   :  { %1376 = vrot.lane.b32.xlu2 %v5141_v29, %s3410_s23  ;;  %v2468_v29 = vld [vmem:[%s5514_s6 + $0x30] sm:$0xff] }
 0x54d   :  { %v5251_v49 = vpop.permute.xlu2 %1326 }
 0x550   :  { %1350 = vrot.lane.b32.xlu1 %v5175_v12, %s3414_s27  ;;  %v2467_v12 = vld [vmem:[%s5514_s6 + $0x28] sm:$0xff] }
 0x555   :  { %v2399_v26 = vpop.permute.xlu2 %2398 }
 0x558   :  { %1328 = vrot.lane.b32.xlu1 %v5085_v10, %s3411_s24  ;;  %v2469_v10 = vld [vmem:[%s5514_s6 + $0x38] sm:$0xff] }
 0x559   :  { %2501 = vmatpush.msra.mxu3 %v2469_v10 }
 0x55b   :  { %2502 = vmatpush.msra.mxu3 %v2468_v29 }
 0x55d   :  { %2503 = vmatpush.msra.mxu3 %v2467_v12  ;;  %v2401_v31 = vpop.permute.xlu2 %2400  ;;  %v2529_v12 = vld [vmem:[%s5516_s8 + $0x8] sm:$0xff] }
 0x565   :  { %v2375_v16 = vpop.permute.xlu0 %2374 }
 0x566   :  { %v2421_v19 = vsel %vm1394_vm7, %v2415_v39, %v2375_v16 }
 0x567   :  { %v2427_v47 = vsel %vm1401_vm8, %v2421_v19, %v2399_v26 }
 0x568   :  { %2440 = vrot.lane.b32.xlu0 %v2427_v47, %s3409_s5 }
 0x570   :  { %1352 = vrot.lane.b32.xlu0 %v5178_v51, %s3414_s27  ;;  %v2465_v51 = vld [vmem:[%s5514_s6 + $0x18] sm:$0xff] }
 0x578   :  { %1330 = vrot.lane.b32.xlu0 %v5092_v21, %s3411_s24  ;;  %v2466_v21 = vld [vmem:[%s5514_s6 + $0x20] sm:$0xff] }
 0x579   :  { %2504 = vmatpush.msra.mxu3 %v2466_v21 }
 0x57b   :  { %2505 = vmatpush.msra.mxu3 %v2465_v51 }
 0x57d   :  { %2506 = vmatpush.msra.mxu3 %v2464_v4 }
 0x57f   :  { %2507 = vmatpush.msra.mxu3 %v2463_v20  ;;  %v3153_v20 = vld [vmem:[%s5515_s7] ss:$0 sm:$0xff] }
 0x581   :  { %2508 = vmatpush.msra.mxu3 %v2462_v1 }
 0x58d   :  { %v2403_v32 = vpop.permute.xlu2 %2402 }
 0x595   :  { %v2405_v41 = vpop.permute.xlu2 %2404 }
 0x597   :  { %v2377_v44 = vpop.permute.xlu0 %2376 }
 0x598   :  { %v2422_v25 = vsel %vm1394_vm7, %v2416_v37, %v2377_v44 }
 0x599   :  { %v2428_v40 = vsel %vm1401_vm8, %v2422_v25, %v2401_v31 }
 0x59a   :  { %2442 = vrot.lane.b32.xlu2 %v2428_v40, %s3409_s5 }
 0x59f   :  { %v2379_v18 = vpop.permute.xlu0 %2378 }
 0x5a0   :  { %v2423_v0 = vsel %vm1394_vm7, %v2417_v60, %v2379_v18 }
 0x5a1   :  { %v2429_v63 = vsel %vm1401_vm8, %v2423_v0, %v2403_v32 }
 0x5a2   :  { %2444 = vrot.lane.b32.xlu1 %v2429_v63, %s3409_s5  ;;  %1354 = vrot.lane.b32.xlu2 %v5180_v9, %s3414_s27  ;;  %v2407_v9 = vpop.permute.xlu2 %2406 }
 0x5a7   :  { %v2381_v30 = vpop.permute.xlu0 %2380 }
 0x5a8   :  { %v2424_v35 = vsel %vm1394_vm7, %v2418_v36, %v2381_v30  ;;  %v3154_v36 = vld [vmem:[%s5517_s9] ss:$0 sm:$0xff] }
 0x5a9   :  { %v2430_v22 = vsel %vm1401_vm8, %v2424_v35, %v2405_v41 }
 0x5aa   :  { %1378 = vrot.lane.b32.xlu1 %v5148_v56, %s3410_s23  ;;  %2446 = vrot.lane.b32.xlu0 %v2430_v22, %s3409_s5 }
 0x5ab   :  { %1332 = vrot.lane.b32.xlu2 %v5106_v61, %s3411_s24 }
 0x5af   :  { %v2383_v13 = vpop.permute.xlu0 %2382 }
 0x5b0   :  { %v2425_v38 = vsel %vm1394_vm7, %v5229_v53, %v2383_v13 }
 0x5b1   :  { %v2431_v50 = vsel %vm1401_vm8, %v2425_v38, %v2407_v9 }
 0x5b2   :  { %1356 = vrot.lane.b32.xlu1 %v5184_v55, %s3414_s27  ;;  %1380 = vrot.lane.b32.xlu0 %v5156_v54, %s3410_s23  ;;  %v1377_v55 = vpop.permute.xlu2 %1376  ;;  %v1390_v54 = vsel %vm410_vm1, %v5078_v7, %v5251_v49  ;;  %v2533_v7 = vld [vmem:[%s5516_s8 + $0x28] sm:$0xff] }
 0x5b3   :  { %2448 = vrot.lane.b32.xlu2 %v2431_v50, %s3409_s5 }
 0x5b7   :  { %v1375_v57 = vpop.permute.xlu0 %1374 }
 0x5ba   :  { %v2439_v56 = vpop.permute.xlu1 %2438 }
 0x5bb   :  { %v2456_v61 = vsel %vm56_vm0, %v5218_v43, %v2439_v56 }
 0x5bc   :  { %3017 = vmatmul.msk.f32.vlgmr.msra.gmra.mxu3 %vm2474_vm9, %v2456_v61 }
 0x5c2   :  { %v1351_v53 = vpop.permute.xlu1 %1350 }
 0x5c3   :  { %v1397_v58 = vsel %vm1394_vm7, %v1390_v54, %v1351_v53 }
 0x5c4   :  { %v1404_v2 = vsel %vm1401_vm8, %v1397_v58, %v1375_v57 }
 0x5ca   :  { %v1329_v28 = vpop.permute.xlu1 %1328 }
 0x5cb   :  { %v1391_v48 = vsel %vm410_vm1, %v5089_v3, %v1329_v28 }
 0x5da   :  { %v2441_v27 = vpop.permute.xlu0 %2440 }
 0x5db   :  { %v2457_v15 = vsel %vm56_vm0, %v5210_v59, %v2441_v27  ;;  %v2535_v59 = vld [vmem:[%s5516_s8 + $0x38] sm:$0xff] }
 0x5dc   :  { %3018 = vmatmul.msk.f32.gmra.mxu3 %vm2474_vm9, %v2457_v15  ;;  %2566 = vmatpush.msrb.mxu0 %v2535_v59 }
 0x5de   :  { %2567 = vmatpush.msrb.mxu0 %v2534_v14 }
 0x5e0   :  { %2568 = vmatpush.msrb.mxu0 %v2533_v7 }
 0x5e2   :  { %v1353_v8 = vpop.permute.xlu0 %1352  ;;  %2569 = vmatpush.msrb.mxu0 %v2532_v45 }
 0x5e3   :  { %v1398_v33 = vsel %vm1394_vm7, %v1391_v48, %v1353_v8 }
 0x5e4   :  { %2570 = vmatpush.msrb.mxu0 %v2531_v6  ;;  %v1405_v42 = vsel %vm1401_vm8, %v1398_v33, %v1377_v55 }
 0x5e6   :  { %2571 = vmatpush.msrb.mxu0 %v2530_v52 }
 0x5e8   :  { %2572 = vmatpush.msrb.mxu0 %v2529_v12 }
 0x5ea   :  { %v1331_v62 = vpop.permute.xlu0 %1330  ;;  %2573 = vmatpush.msrb.mxu0 %v2528_v24 }
 0x5eb   :  { %v1392_v3 = vsel %vm410_vm1, %v5099_v11, %v1331_v62 }
 0x5f4   :  { %v2443_v43 = vpop.permute.xlu2 %2442 }
 0x5f5   :  { %v2458_v5 = vsel %vm56_vm0, %v1404_v2, %v2443_v43 }
 0x5f6   :  { %3019 = vmatmul.msk.f32.gmra.mxu3 %vm2474_vm9, %v2458_v5 }
 0x5fc   :  { %v1355_v23 = vpop.permute.xlu2 %1354 }
 0x5fd   :  { %v1399_v26 = vsel %vm1394_vm7, %v1392_v3, %v1355_v23 }
 0x605   :  { %v1333_v16 = vpop.permute.xlu2 %1332 }
 0x606   :  { %v1393_v11 = vsel %vm410_vm1, %v5109_v46, %v1333_v16 }
 0x60d   :  { %v2449_v4 = vpop.permute.xlu2 %2448 }
 0x614   :  { %v2445_v49 = vpop.permute.xlu1 %2444 }
 0x615   :  { %v2459_v39 = vsel %vm56_vm0, %v1405_v42, %v2445_v49 }
 0x616   :  { %3020 = vmatmul.msk.f32.gmra.mxu3 %vm2474_vm9, %v2459_v39 }
 0x61c   :  { %v1379_v19 = vpop.permute.xlu1 %1378  ;;  %v2447_v47 = vpop.permute.xlu0 %2446 }
 0x61d   :  { %v1406_v10 = vsel %vm1401_vm8, %v1399_v26, %v1379_v19 }
 0x61e   :  { %v2460_v29 = vsel %vm56_vm0, %v1406_v10, %v2447_v47 }
 0x61f   :  { %3021 = vmatmul.msk.f32.gmra.mxu3 %vm2474_vm9, %v2460_v29 }
 0x624   :  { %v1357_v21 = vpop.permute.xlu1 %1356  ;;  %v1381_v51 = vpop.permute.xlu0 %1380 }
 0x625   :  { %v1400_v31 = vsel %vm1394_vm7, %v1393_v11, %v1357_v21 }
 0x626   :  { %v1407_v37 = vsel %vm1401_vm8, %v1400_v31, %v1381_v51 }
 0x627   :  { %v2461_v44 = vsel %vm56_vm0, %v1407_v37, %v2449_v4 }
 0x628   :  { %3022 = vmatmul.msk.f32.gmra.mxu3 %vm2474_vm9, %v2461_v44 }
 0x63f   :  { %v2510_v25 = vpop.f32.mrf.mxu3 }
 0x640   :  { %v2511_v40 = vadd.f32 %v3153_v20, %v2510_v25 }
 0x642   :  { %3023 = vmatmul.msk.f32.vlgmr.msrb.gmra.mxu0 %vm2474_vm9, %v2511_v40 }
 0x65f   :  { %v2513_v46 = vpop.f32.mrf.mxu3 }
 0x660   :  { %v2514_v1 = vadd.f32 %v3153_v20, %v2513_v46 }
 0x662   :  { %3024 = vmatmul.msk.f32.gmra.mxu0 %vm2474_vm9, %v2514_v1 }
 0x679   :  { %v2516_v17 = vpop.f32.mrf.mxu3 }
 0x67a   :  { %v2517_v32 = vadd.f32 %v3153_v20, %v2516_v17 }
 0x67c   :  { %3025 = vmatmul.msk.f32.gmra.mxu0 %vm2474_vm9, %v2517_v32 }
 0x699   :  { %v2519_v60 = vpop.f32.mrf.mxu3 }
 0x69a   :  { %v2520_v18 = vadd.f32 %v3153_v20, %v2519_v60 }
 0x69c   :  { %3026 = vmatmul.msk.f32.gmra.mxu0 %vm2474_vm9, %v2520_v18 }
 0x6a2   :  { %v2522_v0 = vpop.f32.mrf.mxu3 }
 0x6a3   :  { %v2523_v63 = vadd.f32 %v3153_v20, %v2522_v0 }
 0x6a5   :  { %3027 = vmatmul.msk.f32.gmra.mxu0 %vm2474_vm9, %v2523_v63 }
 0x6ab   :  { %v2525_v34 = vpop.f32.mrf.mxu3 }
 0x6ac   :  { %v2526_v41 = vadd.f32 %v3153_v20, %v2525_v34 }
 0x6ae   :  { %3028 = vmatmul.msk.f32.gmra.mxu0 %vm2474_vm9, %v2526_v41 }
 0x6bf   :  { %v2575_v30 = vpop.f32.mrf.mxu0 }
 0x6c0   :  { %v5382_v35 = vadd.f32 %v3154_v36, %v2575_v30 }
 0x6c2   :  { %2599 = vrot.lane.b32.xlu1 %v5382_v35, %s3407_s4 }
 0x6df   :  { %v2578_v22 = vpop.f32.mrf.mxu0 }
 0x6e0   :  { %v5386_v13 = vadd.f32 %v3154_v36, %v2578_v22 }
 0x6e2   :  { %2601 = vrot.lane.b32.xlu0 %v5386_v13, %s3407_s4 }
 0x6f9   :  { %v2581_v9 = vpop.f32.mrf.mxu0 }
 0x6fa   :  { %v5390_v38 = vadd.f32 %v3154_v36, %v2581_v9 }
 0x6fc   :  { %2603 = vrot.lane.b32.xlu2 %v5390_v38, %s3407_s4 }
 0x719   :  { %v2584_v50 = vpop.f32.mrf.mxu0 }
 0x71a   :  { %v5394_v56 = vadd.f32 %v3154_v36, %v2584_v50 }
 0x71c   :  { %2605 = vrot.lane.b32.xlu1 %v5394_v56, %s3407_s4 }
 0x722   :  { %v2587_v61 = vpop.f32.mrf.mxu0 }
 0x723   :  { %v5398_v57 = vadd.f32 %v3154_v36, %v2587_v61 }
 0x725   :  { %2607 = vrot.lane.b32.xlu0 %v5398_v57, %s3407_s4 }
 0x72b   :  { %v2590_v27 = vpop.f32.mrf.mxu0 }
 0x72c   :  { %v5402_v15 = vadd.f32 %v3154_v36, %v2590_v27 }
 0x72e   :  { %2609 = vrot.lane.b32.xlu2 %v5402_v15, %s3407_s4 }
 0x734   :  { %v2600_v55 = vpop.permute.xlu1 %2599 }
 0x735   :  { %v5407_v53 = vmax.f32 %v5382_v35, %v2600_v55 }
 0x737   :  { %2647 = vrot.lane.b32.xlu1 %v5407_v53, %s3409_s5  ;;  %v2623_v46 = vsub.f32 %v5382_v35, %v5407_v53 }
 0x739   :  { %v2629_v1 = vmul.f32 1.442695, %v2623_v46 }
 0x754   :  { %v2602_v54 = vpop.permute.xlu0 %2601 }
 0x755   :  { %v5412_v58 = vmax.f32 %v5386_v13, %v2602_v54 }
 0x756   :  { %v2604_v2 = vpop.permute.xlu2 %2603 }
 0x757   :  { %v2619_v43 = vmax.f32 %v5390_v38, %v2604_v2  ;;  %2649 = vrot.lane.b32.xlu0 %v5412_v58, %s3409_s5  ;;  %v2624_v60 = vsub.f32 %v5386_v13, %v5412_v58 }
 0x759   :  { %2651 = vrot.lane.b32.xlu2 %v2619_v43, %s3409_s5  ;;  %v2625_v29 = vsub.f32 %v5390_v38, %v2619_v43  ;;  %v2631_v63 = vmul.f32 1.442695, %v2624_v60 }
 0x75b   :  { %v2633_v12 = vmul.f32 1.442695, %v2625_v29 }
 0x788   :  { %v2610_v5 = vpop.permute.xlu2 %2609 }
 0x789   :  { %v2622_v59 = vmax.f32 %v5402_v15, %v2610_v5 }
 0x78b   :  { %2657 = vrot.lane.b32.xlu2 %v2622_v59, %s3409_s5  ;;  %v2628_v24 = vsub.f32 %v5402_v15, %v2622_v59 }
 0x78d   :  { %v2639_v11 = vmul.f32 1.442695, %v2628_v24 }
 0x78e   :  { %v2606_v14 = vpop.permute.xlu1 %2605 }
 0x78f   :  { %v2620_v8 = vmax.f32 %v5394_v56, %v2606_v14 }
 0x791   :  { %2653 = vrot.lane.b32.xlu1 %v2620_v8, %s3409_s5  ;;  %v2626_v32 = vsub.f32 %v5394_v56, %v2620_v8 }
 0x793   :  { %v2635_v0 = vmul.f32 1.442695, %v2626_v32 }
 0x797   :  { %v2608_v7 = vpop.permute.xlu0 %2607 }
 0x798   :  { %v5423_v28 = vmax.f32 %v5398_v57, %v2608_v7 }
 0x79a   :  { %2655 = vrot.lane.b32.xlu0 %v5423_v28, %s3409_s5  ;;  %v2627_v41 = vsub.f32 %v5398_v57, %v5423_v28 }
 0x79c   :  { %v2637_v9 = vmul.f32 1.442695, %v2627_v41 }
 0x7a9   :  { %v2648_v45 = vpop.permute.xlu1 %2647 }
 0x7aa   :  { %v2665_v6 = vsub.f32 %v5382_v35, %v2648_v45 }
 0x7ac   :  { %v2671_v48 = vmul.f32 1.442695, %v2665_v6 }
 0x7ae   :  { %3371 = vpow2.f32 %v2671_v48 }
 0x7b3   :  { %v2652_v52 = vpop.permute.xlu2 %2651 }
 0x7b4   :  { %v3372_v33 = vpop.eup %3371  ;;  %v2667_v23 = vsub.f32 %v5390_v38, %v2652_v52 }
 0x7b5   :  { %2773 = vrot.lane.b32.xlu1 %v3372_v33, %s3407_s4 }
 0x7b6   :  { %v2675_v62 = vmul.f32 1.442695, %v2667_v23 }
 0x7b8   :  { %3373 = vpow2.f32 %v2675_v62 }
 0x7bd   :  { %2719 = vrot.lane.b32.xlu1 %v3372_v33, %s3408_s22 }
 0x7be   :  { %v3374_v49 = vpop.eup %3373 }
 0x7bf   :  { %2777 = vrot.lane.b32.xlu2 %v3374_v49, %s3407_s4 }
 0x7c7   :  { %2723 = vrot.lane.b32.xlu2 %v3374_v49, %s3408_s22 }
 0x7c9   :  { %v2650_v42 = vpop.permute.xlu0 %2649 }
 0x7ca   :  { %v2666_v39 = vsub.f32 %v5386_v13, %v2650_v42 }
 0x7cc   :  { %v2673_v3 = vmul.f32 1.442695, %v2666_v39 }
 0x7ce   :  { %3375 = vpow2.f32 %v2673_v3 }
 0x7d4   :  { %v3376_v16 = vpop.eup %3375 }
 0x7d5   :  { %2775 = vrot.lane.b32.xlu0 %v3376_v16, %s3407_s4 }
 0x7dd   :  { %2721 = vrot.lane.b32.xlu0 %v3376_v16, %s3408_s22 }
 0x7e5   :  { %v2658_v26 = vpop.permute.xlu2 %2657 }
 0x7e6   :  { %v2670_v19 = vsub.f32 %v5402_v15, %v2658_v26 }
 0x7e8   :  { %v2681_v47 = vmul.f32 1.442695, %v2670_v19 }
 0x7ea   :  { %3377 = vpow2.f32 %v2681_v47 }
 0x7eb   :  { %3379 = vpow2.f32 %v2633_v12 }
 0x7ec   :  { %3381 = vpow2.f32 %v2639_v11 }
 0x7f0   :  { %v3378_v10 = vpop.eup %3377 }
 0x7f1   :  { %2783 = vrot.lane.b32.xlu2 %v3378_v10, %s3407_s4  ;;  %v3380_v21 = vpop.eup %3379 }
 0x7f2   :  { %v3382_v37 = vpop.eup %3381 }
 0x7f9   :  { %2729 = vrot.lane.b32.xlu2 %v3378_v10, %s3408_s22 }
 0x801   :  { %2693 = vrot.lane.b32.xlu2 %v3380_v21, %s3408_s22 }
 0x803   :  { %v2654_v51 = vpop.permute.xlu1 %2653 }
 0x804   :  { %v2668_v31 = vsub.f32 %v5394_v56, %v2654_v51 }
 0x806   :  { %v2677_v4 = vmul.f32 1.442695, %v2668_v31 }
 0x808   :  { %3383 = vpow2.f32 %v2677_v4 }
 0x809   :  { %2699 = vrot.lane.b32.xlu2 %v3382_v37, %s3408_s22 }
 0x80c   :  { %v2656_v44 = vpop.permute.xlu0 %2655 }
 0x80d   :  { %v2669_v20 = vsub.f32 %v5398_v57, %v2656_v44 }
 0x80e   :  { %v3384_v25 = vpop.eup %3383 }
 0x80f   :  { %v2679_v40 = vmul.f32 1.442695, %v2669_v20  ;;  %2779 = vrot.lane.b32.xlu1 %v3384_v25, %s3407_s4 }
 0x811   :  { %3385 = vpow2.f32 %v2679_v40 }
 0x812   :  { %3387 = vpow2.f32 %v2629_v1 }
 0x813   :  { %3389 = vpow2.f32 %v2635_v0 }
 0x814   :  { %3391 = vpow2.f32 %v2631_v63 }
 0x817   :  { %v3386_v17 = vpop.eup %3385  ;;  %2725 = vrot.lane.b32.xlu1 %v3384_v25, %s3408_s22 }
 0x818   :  { %2781 = vrot.lane.b32.xlu0 %v3386_v17, %s3407_s4  ;;  %v3388_v34 = vpop.eup %3387 }
 0x819   :  { %v2778_v18 = vpop.permute.xlu2 %2777  ;;  %v3390_v50 = vpop.eup %3389 }
 0x81a   :  { %v2793_v36 = vadd.f32 %v3380_v21, %v2778_v18  ;;  %v3392_v61 = vpop.eup %3391 }
 0x81c   :  { %3393 = vrcp.f32 %v2793_v36 }
 0x81d   :  { %3395 = vpow2.f32 %v2637_v9 }
 0x81f   :  { %2689 = vrot.lane.b32.xlu1 %v3388_v34, %s3408_s22 }
 0x820   :  { %2727 = vrot.lane.b32.xlu0 %v3386_v17, %s3408_s22 }
 0x821   :  { %v2724_v30 = vpop.permute.xlu2 %2723 }
 0x822   :  { %v2739_v22 = vmul.f32 %v2724_v30, %v5390_v38  ;;  %v3394_v55 = vpop.eup %3393 }
 0x823   :  { %v3396_v53 = vpop.eup %3395 }
 0x824   :  { %2753 = vrot.lane.b32.xlu2 %v2739_v22, %s3407_s4 }
 0x827   :  { %2695 = vrot.lane.b32.xlu1 %v3390_v50, %s3408_s22  ;;  %v2774_v27 = vpop.permute.xlu1 %2773 }
 0x828   :  { %2691 = vrot.lane.b32.xlu0 %v3392_v61, %s3408_s22  ;;  %v2791_v54 = vadd.f32 %v3388_v34, %v2774_v27 }
 0x82a   :  { %3397 = vrcp.f32 %v2791_v54 }
 0x82c   :  { %2813 = vrot.lane.b32.xlu2 %v3394_v55, %s3408_s22 }
 0x82f   :  { %v2720_v58 = vpop.permute.xlu1 %2719 }
 0x830   :  { %v2737_v2 = vmul.f32 %v2720_v58, %v5382_v35  ;;  %2697 = vrot.lane.b32.xlu0 %v3396_v53, %s3408_s22  ;;  %v3398_v43 = vpop.eup %3397 }
 0x832   :  { %2749 = vrot.lane.b32.xlu1 %v2737_v2, %s3407_s4 }
 0x83a   :  { %2809 = vrot.lane.b32.xlu1 %v3398_v43, %s3408_s22 }
 0x847   :  { %v2776_v5 = vpop.permute.xlu0 %2775 }
 0x848   :  { %v2792_v14 = vadd.f32 %v3392_v61, %v2776_v5 }
 0x84a   :  { %3399 = vrcp.f32 %v2792_v14 }
 0x84b   :  { %v2784_v59 = vpop.permute.xlu2 %2783 }
 0x84c   :  { %v2796_v28 = vadd.f32 %v3382_v37, %v2784_v59 }
 0x84e   :  { %3401 = vrcp.f32 %v2796_v28 }
 0x84f   :  { %v2722_v8 = vpop.permute.xlu0 %2721 }
 0x850   :  { %v2738_v7 = vmul.f32 %v2722_v8, %v5386_v13  ;;  %v3400_v48 = vpop.eup %3399 }
 0x852   :  { %2751 = vrot.lane.b32.xlu0 %v2738_v7, %s3407_s4 }
 0x853   :  { %v2730_v45 = vpop.permute.xlu2 %2729 }
 0x854   :  { %v2742_v6 = vmul.f32 %v2730_v45, %v5402_v15  ;;  %v3402_v52 = vpop.eup %3401 }
 0x856   :  { %2759 = vrot.lane.b32.xlu2 %v2742_v6, %s3407_s4 }
 0x85a   :  { %2811 = vrot.lane.b32.xlu0 %v3400_v48, %s3408_s22 }
 0x85b   :  { %v2694_v33 = vpop.permute.xlu2 %2693 }
 0x85c   :  { %v2709_v42 = vmul.f32 %v2694_v33, %v5390_v38 }
 0x85e   :  { %2819 = vrot.lane.b32.xlu2 %v3402_v52, %s3408_s22 }
 0x863   :  { %v2700_v23 = vpop.permute.xlu2 %2699 }
 0x864   :  { %v2712_v46 = vmul.f32 %v2700_v23, %v5402_v15 }
 0x87e   :  { %v2754_v62 = vpop.permute.xlu2 %2753 }
 0x87f   :  { %v2769_v39 = vadd.f32 %v2754_v62, %v2709_v42 }
 0x881   :  { %v2780_v49 = vpop.permute.xlu1 %2779 }
 0x882   :  { %v2794_v26 = vadd.f32 %v3390_v50, %v2780_v49 }
 0x884   :  { %3403 = vrcp.f32 %v2794_v26 }
 0x886   :  { %v2814_v3 = vpop.permute.xlu2 %2813 }
 0x887   :  { %v2829_v16 = vmul.f32 %v2814_v3, %v2769_v39 }
 0x889   :  { %2835 = vst.msk [vmem:[%s5518_s10 + $0x10] sm:$0xff] %vm56_vm0, %v2829_v16  ;;  %v2726_v19 = vpop.permute.xlu1 %2725 }
 0x88a   :  { %v2740_v47 = vmul.f32 %v2726_v19, %v5394_v56  ;;  %v2782_v10 = vpop.permute.xlu0 %2781  ;;  %v3404_v38 = vpop.eup %3403 }
 0x88b   :  { %v2795_v29 = vadd.f32 %v3396_v53, %v2782_v10 }
 0x88c   :  { %2755 = vrot.lane.b32.xlu1 %v2740_v47, %s3407_s4 }
 0x88d   :  { %3405 = vrcp.f32 %v2795_v29 }
 0x891   :  { %v2690_v12 = vpop.permute.xlu1 %2689 }
 0x892   :  { %v2728_v24 = vpop.permute.xlu0 %2727  ;;  %v2707_v4 = vmul.f32 %v2690_v12, %v5382_v35 }
 0x893   :  { %v2741_v11 = vmul.f32 %v2728_v24, %v5398_v57  ;;  %v3406_v21 = vpop.eup %3405 }
 0x894   :  { %2815 = vrot.lane.b32.xlu1 %v3404_v38, %s3408_s22 }
 0x895   :  { %2757 = vrot.lane.b32.xlu0 %v2741_v11, %s3407_s4 }
 0x899   :  { %v2696_v51 = vpop.permute.xlu1 %2695 }
 0x89a   :  { %v2692_v40 = vpop.permute.xlu0 %2691  ;;  %v2710_v41 = vmul.f32 %v2696_v51, %v5394_v56 }
 0x89b   :  { %v2708_v18 = vmul.f32 %v2692_v40, %v5386_v13 }
 0x89d   :  { %2817 = vrot.lane.b32.xlu0 %v3406_v21, %s3408_s22 }
 0x8a2   :  { %v2698_v35 = vpop.permute.xlu0 %2697 }
 0x8a3   :  { %v2711_v13 = vmul.f32 %v2698_v35, %v5398_v57 }
 0x8a4   :  { %v2750_v31 = vpop.permute.xlu1 %2749 }
 0x8a5   :  { %v2767_v37 = vadd.f32 %v2750_v31, %v2707_v4 }
 0x8ac   :  { %v2810_v44 = vpop.permute.xlu1 %2809 }
 0x8ad   :  { %v2827_v20 = vmul.f32 %v2810_v44, %v2767_v37 }
 0x8af   :  { %2833 = vst.msk [vmem:[%s5518_s10] sm:$0xff] %vm56_vm0, %v2827_v20 }
 0x8b0   :  { %v2760_v25 = vpop.permute.xlu2 %2759 }
 0x8b1   :  { %v2772_v1 = vadd.f32 %v2760_v25, %v2712_v46 }
 0x8b8   :  { %v2820_v17 = vpop.permute.xlu2 %2819 }
 0x8b9   :  { %v2832_v32 = vmul.f32 %v2820_v17, %v2772_v1 }
 0x8bb   :  { %2838 = vst.msk [vmem:[%s5518_s10 + $0x28] sm:$0xff] %vm56_vm0, %v2832_v32 }
 0x8c4   :  { %v2752_v60 = vpop.permute.xlu0 %2751 }
 0x8c5   :  { %v2768_v0 = vadd.f32 %v2752_v60, %v2708_v18 }
 0x8cc   :  { %v2812_v63 = vpop.permute.xlu0 %2811 }
 0x8cd   :  { %v2828_v34 = vmul.f32 %v2812_v63, %v2768_v0 }
 0x8cf   :  { %2834 = vst.msk [vmem:[%s5518_s10 + $0x8] sm:$0xff] %vm56_vm0, %v2828_v34 }
 0x8fe   :  { %v2756_v15 = vpop.permute.xlu1 %2755 }
 0x8ff   :  { %v2770_v36 = vadd.f32 %v2756_v15, %v2710_v41 }
 0x906   :  { %v2816_v30 = vpop.permute.xlu1 %2815 }
 0x907   :  { %v2830_v22 = vmul.f32 %v2816_v30, %v2770_v36  ;;  %v2758_v9 = vpop.permute.xlu0 %2757 }
 0x908   :  { %v2771_v50 = vadd.f32 %v2758_v9, %v2711_v13 }
 0x909   :  { %2836 = vst.msk [vmem:[%s5518_s10 + $0x18] sm:$0xff] %vm56_vm0, %v2830_v22 }
 0x90f   :  { %v2818_v61 = vpop.permute.xlu0 %2817 }
 0x910   :  { %v2831_v27 = vmul.f32 %v2818_v61, %v2771_v50 }
 0x912   :  { %2837 = vst.msk [vmem:[%s5518_s10 + $0x20] sm:$0xff] %vm56_vm0, %v2831_v27 }

// kernel: model_forward.17
= control target key start
LH: loop header
LB: loop body
LE: loop exit
PB: predicated region body
PF: predicated region fallthrough
CT: control target
= control target key end

     0   :  { %vm50_vm0 = vcmask 1041408   ;;  %vm46_vm1 = vcmask 146432   ;;  %vm284_vm2 = vcmask 523264   ;;  %vm308_vm3 = vcmask 177152   ;;  %s675_s1 = inlined_call_operand.vmem [shape: f32[18,128], index: 1, kind: input, shape index: {}]   ;;  %s676_s3 = inlined_call_operand.vmem [shape: f32[128,256], index: 3, kind: input, shape index: {}]   ;;  %s677_s0 = inlined_call_operand.vmem [shape: f32[6,18], index: 0, kind: input, shape index: {}]   ;;  %s678_s2 = inlined_call_operand.vmem [shape: f32[1,128], index: 2, kind: input, shape index: {}]   ;;  %s679_s5 = inlined_call_operand.vmem [shape: f32[256,128], index: 5, kind: input, shape index: {}]   ;;  %s680_s6 = inlined_call_operand.vmem [shape: f32[1,128], index: 6, kind: input, shape index: {}]   ;;  %s681_s7 = inlined_call_operand.vmem [shape: f32[128,64], index: 7, kind: input, shape index: {}]   ;;  %s682_s4 = inlined_call_operand.vmem [shape: f32[1,256], index: 4, kind: input, shape index: {}]   ;;  %s683_s8 = inlined_call_operand.vmem [shape: f32[1,64], index: 8, kind: input, shape index: {}]   ;;  %s684_s9 = inlined_call_operand.vmem [shape: f32[64,22], index: 9, kind: input, shape index: {}]   ;;  %s685_s10 = inlined_call_operand.vmem [shape: f32[1,22], index: 10, kind: input, shape index: {}]   ;;  %s686_s11 = inlined_call_operand.vmem [shape: f32[6,22], index: 11, kind: output, shape index: {}]  }
   0x1   :  { %v41_v0 = vld [vmem:[%s675_s1 + $0x10] sm:$0x3]  ;;  %v40_v1 = vld [vmem:[%s675_s1 + $0x8] sm:$0xff]  ;;  %v106_v3 = vld [vmem:[%s676_s3 + $0xf8] sm:$0xff] }
   0x2   :  { %314 = vmatpush.msk.msra.mxu0 %vm50_vm0, %v41_v0  ;;  %v105_v2 = vld [vmem:[%s676_s3 + $0xf0] sm:$0xff]  ;;  %v39_v4 = vld [vmem:[%s675_s1] sm:$0xff]  ;;  %133 = vmatpush.msra.mxu2 %v106_v3  ;;  %v104_v6 = vld [vmem:[%s676_s3 + $0xe8] sm:$0xff] }
   0x3   :  { %113 = vmatpush.msra.mxu1 %v105_v2  ;;  %v103_v5 = vld [vmem:[%s676_s3 + $0xe0] sm:$0xff]  ;;  %v101_v8 = vld [vmem:[%s676_s3 + $0xd0] sm:$0xff]  ;;  %v102_v9 = vld [vmem:[%s676_s3 + $0xd8] sm:$0xff] }
   0x4   :  { %68 = vmatpush.msra.mxu0 %v40_v1  ;;  %v38_v7 = vld [vmem:[%s677_s0] sm:$0x3f]  ;;  %134 = vmatpush.msra.mxu2 %v104_v6  ;;  %v100_v11 = vld [vmem:[%s676_s3 + $0xc8] sm:$0xff]  ;;  %v97_v12 = vld [vmem:[%s676_s3 + $0xb0] sm:$0xff] }
   0x5   :  { %114 = vmatpush.msra.mxu1 %v103_v5  ;;  %v99_v10 = vld [vmem:[%s676_s3 + $0xc0] sm:$0xff]  ;;  %v98_v13 = vld [vmem:[%s676_s3 + $0xb8] sm:$0xff]  ;;  %v96_v15 = vld [vmem:[%s676_s3 + $0xa8] sm:$0xff] }
   0x6   :  { %69 = vmatpush.msra.mxu0 %v39_v4  ;;  %135 = vmatpush.msra.mxu2 %v102_v9  ;;  %v95_v14 = vld [vmem:[%s676_s3 + $0xa0] sm:$0xff]  ;;  %v93_v16 = vld [vmem:[%s676_s3 + $0x90] sm:$0xff]  ;;  %v94_v17 = vld [vmem:[%s676_s3 + $0x98] sm:$0xff] }
   0x7   :  { %315 = vmatmul.msk.f32.vlgmr.msra.gmra.mxu0 %vm46_vm1, %v38_v7  ;;  %115 = vmatpush.msra.mxu1 %v101_v8  ;;  %v91_v18 = vld [vmem:[%s676_s3 + $0x80] sm:$0xff]  ;;  %v92_v19 = vld [vmem:[%s676_s3 + $0x88] sm:$0xff]  ;;  %v89_v20 = vld [vmem:[%s676_s3 + $0x70] sm:$0xff] }
   0x8   :  { %136 = vmatpush.msra.mxu2 %v100_v11  ;;  %v90_v21 = vld [vmem:[%s676_s3 + $0x78] sm:$0xff]  ;;  %v87_v22 = vld [vmem:[%s676_s3 + $0x60] sm:$0xff]  ;;  %v88_v23 = vld [vmem:[%s676_s3 + $0x68] sm:$0xff] }
   0x9   :  { %116 = vmatpush.msra.mxu1 %v99_v10  ;;  %v85_v24 = vld [vmem:[%s676_s3 + $0x50] sm:$0xff]  ;;  %v86_v25 = vld [vmem:[%s676_s3 + $0x58] sm:$0xff]  ;;  %v83_v26 = vld [vmem:[%s676_s3 + $0x40] sm:$0xff] }
   0xa   :  { %137 = vmatpush.msra.mxu2 %v98_v13  ;;  %v84_v27 = vld [vmem:[%s676_s3 + $0x48] sm:$0xff]  ;;  %v81_v28 = vld [vmem:[%s676_s3 + $0x30] sm:$0xff]  ;;  %v82_v29 = vld [vmem:[%s676_s3 + $0x38] sm:$0xff] }
   0xb   :  { %117 = vmatpush.msra.mxu1 %v97_v12  ;;  %v79_v30 = vld [vmem:[%s676_s3 + $0x20] sm:$0xff]  ;;  %v80_v31 = vld [vmem:[%s676_s3 + $0x28] sm:$0xff]  ;;  %v77_v32 = vld [vmem:[%s676_s3 + $0x10] sm:$0xff] }
   0xc   :  { %138 = vmatpush.msra.mxu2 %v96_v15  ;;  %v78_v33 = vld [vmem:[%s676_s3 + $0x18] sm:$0xff]  ;;  %v75_v34 = vld [vmem:[%s676_s3] sm:$0xff]  ;;  %v76_v35 = vld [vmem:[%s676_s3 + $0x8] sm:$0xff] }
   0xd   :  { %118 = vmatpush.msra.mxu1 %v95_v14  ;;  %v170_v36 = vld [vmem:[%s679_s5 + $0x78] sm:$0xff]  ;;  %v169_v37 = vld [vmem:[%s679_s5 + $0x70] sm:$0xff]  ;;  %v168_v39 = vld [vmem:[%s679_s5 + $0x68] sm:$0xff] }
   0xe   :  { %139 = vmatpush.msra.mxu2 %v94_v17  ;;  %191 = vmatpush.msra.mxu3 %v170_v36  ;;  %v186_v38 = vld [vmem:[%s679_s5 + $0xf8] sm:$0xff]  ;;  %v185_v40 = vld [vmem:[%s679_s5 + $0xf0] sm:$0xff]  ;;  %v184_v41 = vld [vmem:[%s679_s5 + $0xe8] sm:$0xff] }
   0xf   :  { %119 = vmatpush.msra.mxu1 %v93_v16  ;;  %211 = vmatpush.msrb.mxu0 %v186_v38  ;;  %v167_v42 = vld [vmem:[%s679_s5 + $0x60] sm:$0xff]  ;;  %v166_v44 = vld [vmem:[%s679_s5 + $0x58] sm:$0xff]  ;;  %v165_v46 = vld [vmem:[%s679_s5 + $0x50] sm:$0xff] }
  0x10   :  { %140 = vmatpush.msra.mxu2 %v92_v19  ;;  %192 = vmatpush.msra.mxu3 %v169_v37  ;;  %v183_v43 = vld [vmem:[%s679_s5 + $0xe0] sm:$0xff]  ;;  %v182_v45 = vld [vmem:[%s679_s5 + $0xd8] sm:$0xff]  ;;  %v181_v47 = vld [vmem:[%s679_s5 + $0xd0] sm:$0xff] }
  0x11   :  { %120 = vmatpush.msra.mxu1 %v91_v18  ;;  %212 = vmatpush.msrb.mxu0 %v185_v40  ;;  %v164_v48 = vld [vmem:[%s679_s5 + $0x48] sm:$0xff]  ;;  %v163_v50 = vld [vmem:[%s679_s5 + $0x40] sm:$0xff]  ;;  %v162_v52 = vld [vmem:[%s679_s5 + $0x38] sm:$0xff] }
  0x12   :  { %141 = vmatpush.msra.mxu2 %v90_v21  ;;  %193 = vmatpush.msra.mxu3 %v168_v39  ;;  %v180_v49 = vld [vmem:[%s679_s5 + $0xc8] sm:$0xff]  ;;  %v179_v51 = vld [vmem:[%s679_s5 + $0xc0] sm:$0xff]  ;;  %v178_v53 = vld [vmem:[%s679_s5 + $0xb8] sm:$0xff] }
  0x13   :  { %121 = vmatpush.msra.mxu1 %v89_v20  ;;  %213 = vmatpush.msrb.mxu0 %v184_v41  ;;  %v161_v54 = vld [vmem:[%s679_s5 + $0x30] sm:$0xff]  ;;  %v160_v56 = vld [vmem:[%s679_s5 + $0x28] sm:$0xff]  ;;  %v159_v57 = vld [vmem:[%s679_s5 + $0x20] sm:$0xff] }
  0x14   :  { %142 = vmatpush.msra.mxu2 %v88_v23  ;;  %194 = vmatpush.msra.mxu3 %v167_v42  ;;  %v177_v55 = vld [vmem:[%s679_s5 + $0xb0] sm:$0xff]  ;;  %v158_v58 = vld [vmem:[%s679_s5 + $0x18] sm:$0xff]  ;;  %v317_v59 = vld [vmem:[%s678_s2] ss:$0 sm:$0xff] }
  0x15   :  { %122 = vmatpush.msra.mxu1 %v87_v22  ;;  %214 = vmatpush.msrb.mxu0 %v183_v43  ;;  %v157_v63 = vld [vmem:[%s679_s5 + $0x10] sm:$0xff]  ;;  %v176_v0 = vld [vmem:[%s679_s5 + $0xa8] sm:$0xff]  ;;  %v175_v2 = vld [vmem:[%s679_s5 + $0xa0] sm:$0xff] }
  0x16   :  { %143 = vmatpush.msra.mxu2 %v86_v25  ;;  %195 = vmatpush.msra.mxu3 %v166_v44  ;;  %v156_v1 = vld [vmem:[%s679_s5 + $0x8] sm:$0xff]  ;;  %v155_v3 = vld [vmem:[%s679_s5] sm:$0xff]  ;;  %v174_v4 = vld [vmem:[%s679_s5 + $0x98] sm:$0xff] }
  0x17   :  { %123 = vmatpush.msra.mxu1 %v85_v24  ;;  %215 = vmatpush.msrb.mxu0 %v182_v45  ;;  %v173_v5 = vld [vmem:[%s679_s5 + $0x90] sm:$0xff]  ;;  %v172_v6 = vld [vmem:[%s679_s5 + $0x88] sm:$0xff]  ;;  %v171_v7 = vld [vmem:[%s679_s5 + $0x80] sm:$0xff] }
  0x18   :  { %144 = vmatpush.msra.mxu2 %v84_v27  ;;  %196 = vmatpush.msra.mxu3 %v165_v46  ;;  %v247_v8 = vld [vmem:[%s681_s7 + $0x78] sm:$0xff]  ;;  %v246_v9 = vld [vmem:[%s681_s7 + $0x70] sm:$0xff]  ;;  %v245_v10 = vld [vmem:[%s681_s7 + $0x68] sm:$0xff] }
  0x19   :  { %124 = vmatpush.msra.mxu1 %v83_v26  ;;  %216 = vmatpush.msrb.mxu0 %v181_v47  ;;  %v244_v11 = vld [vmem:[%s681_s7 + $0x60] sm:$0xff]  ;;  %v243_v12 = vld [vmem:[%s681_s7 + $0x58] sm:$0xff]  ;;  %v242_v13 = vld [vmem:[%s681_s7 + $0x50] sm:$0xff] }
  0x1a   :  { %145 = vmatpush.msra.mxu2 %v82_v29  ;;  %197 = vmatpush.msra.mxu3 %v164_v48  ;;  %v241_v14 = vld [vmem:[%s681_s7 + $0x48] sm:$0xff]  ;;  %v240_v15 = vld [vmem:[%s681_s7 + $0x40] sm:$0xff]  ;;  %v239_v16 = vld [vmem:[%s681_s7 + $0x38] sm:$0xff] }
  0x1b   :  { %125 = vmatpush.msra.mxu1 %v81_v28  ;;  %217 = vmatpush.msrb.mxu0 %v180_v49  ;;  %v107_v17 = vld [vmem:[%s682_s4] sm:$0x3]  ;;  %v238_v18 = vld [vmem:[%s681_s7 + $0x30] sm:$0xff]  ;;  %v237_v20 = vld [vmem:[%s681_s7 + $0x28] sm:$0xff] }
  0x1c   :  { %146 = vmatpush.msra.mxu2 %v80_v31  ;;  %198 = vmatpush.msra.mxu3 %v163_v50  ;;  %v109_v19 = vperm.slane %v107_v17, 0  ;;  %v236_v21 = vld [vmem:[%s681_s7 + $0x20] sm:$0xff]  ;;  %v110_v25 = vperm.slane %v107_v17, 1  ;;  %v235_v29 = vld [vmem:[%s681_s7 + $0x18] sm:$0xff]  ;;  %v233_v31 = vld [vmem:[%s681_s7 + $0x8] sm:$0xff] }
  0x1d   :  { %126 = vmatpush.msra.mxu1 %v79_v30  ;;  %218 = vmatpush.msrb.mxu0 %v179_v51  ;;  %v234_v30 = vld [vmem:[%s681_s7 + $0x10] sm:$0xff]  ;;  %v276_v36 = vld [vmem:[%s684_s9 + $0x20] sm:$0xff]  ;;  %v275_v37 = vld [vmem:[%s684_s9 + $0x18] sm:$0xff] }
  0x1e   :  { %147 = vmatpush.msra.mxu2 %v78_v33  ;;  %199 = vmatpush.msra.mxu3 %v162_v52  ;;  %v279_v33 = vld [vmem:[%s684_s9 + $0x38] sm:$0xff]  ;;  %v274_v38 = vld [vmem:[%s684_s9 + $0x10] sm:$0xff]  ;;  %v318_v39 = vld [vmem:[%s680_s6] ss:$0 sm:$0xff] }
  0x1f   :  { %127 = vmatpush.msra.mxu1 %v77_v32  ;;  %219 = vmatpush.msrb.mxu0 %v178_v53  ;;  %v232_v32 = vld [vmem:[%s681_s7] sm:$0xff]  ;;  %v273_v45 = vld [vmem:[%s684_s9 + $0x8] sm:$0xff] }
  0x20   :  { %148 = vmatpush.msra.mxu2 %v76_v35  ;;  %200 = vmatpush.msra.mxu3 %v161_v54  ;;  %v277_v35 = vld [vmem:[%s684_s9 + $0x28] sm:$0xff]  ;;  %v272_v46 = vld [vmem:[%s684_s9] sm:$0xff] }
  0x21   :  { %128 = vmatpush.msra.mxu1 %v75_v34  ;;  %220 = vmatpush.msrb.mxu0 %v177_v55  ;;  %v278_v34 = vld [vmem:[%s684_s9 + $0x30] sm:$0xff]  ;;  %v319_v47 = vld [vmem:[%s683_s8] ss:$0 sm:$0xff] }
  0x22   :  { %201 = vmatpush.msra.mxu3 %v160_v56  ;;  %296 = vmatpush.msrb.mxu2 %v279_v33  ;;  %v320_v50 = vld [vmem:[%s685_s10] ss:$0 sm:$0xff] }
  0x23   :  { %221 = vmatpush.msrb.mxu0 %v176_v0  ;;  %252 = vmatpush.msrb.mxu1 %v247_v8 }
  0x24   :  { %202 = vmatpush.msra.mxu3 %v159_v57  ;;  %297 = vmatpush.msrb.mxu2 %v278_v34 }
  0x25   :  { %222 = vmatpush.msrb.mxu0 %v175_v2  ;;  %253 = vmatpush.msrb.mxu1 %v246_v9 }
  0x26   :  { %203 = vmatpush.msra.mxu3 %v158_v58  ;;  %298 = vmatpush.msrb.mxu2 %v277_v35 }
  0x27   :  { %223 = vmatpush.msrb.mxu0 %v174_v4  ;;  %254 = vmatpush.msrb.mxu1 %v245_v10 }
  0x28   :  { %204 = vmatpush.msra.mxu3 %v157_v63  ;;  %299 = vmatpush.msrb.mxu2 %v276_v36 }
  0x29   :  { %224 = vmatpush.msrb.mxu0 %v173_v5  ;;  %255 = vmatpush.msrb.mxu1 %v244_v11 }
  0x2a   :  { %205 = vmatpush.msra.mxu3 %v156_v1  ;;  %300 = vmatpush.msrb.mxu2 %v275_v37 }
  0x2b   :  { %225 = vmatpush.msrb.mxu0 %v172_v6  ;;  %256 = vmatpush.msrb.mxu1 %v243_v12 }
  0x2c   :  { %206 = vmatpush.msra.mxu3 %v155_v3  ;;  %301 = vmatpush.msrb.mxu2 %v274_v38 }
  0x2d   :  { %226 = vmatpush.msrb.mxu0 %v171_v7  ;;  %257 = vmatpush.msrb.mxu1 %v242_v13 }
  0x2e   :  { %302 = vmatpush.msrb.mxu2 %v273_v45 }
  0x2f   :  { %258 = vmatpush.msrb.mxu1 %v241_v14 }
  0x30   :  { %303 = vmatpush.msrb.mxu2 %v272_v46 }
  0x31   :  { %259 = vmatpush.msrb.mxu1 %v240_v15 }
  0x33   :  { %260 = vmatpush.msrb.mxu1 %v239_v16 }
  0x35   :  { %261 = vmatpush.msrb.mxu1 %v238_v18 }
  0x37   :  { %262 = vmatpush.msrb.mxu1 %v237_v20 }
  0x39   :  { %263 = vmatpush.msrb.mxu1 %v236_v21 }
  0x3b   :  { %264 = vmatpush.msrb.mxu1 %v235_v29 }
  0x3d   :  { %265 = vmatpush.msrb.mxu1 %v234_v30 }
  0x3f   :  { %266 = vmatpush.msrb.mxu1 %v233_v31 }
  0x41   :  { %267 = vmatpush.msrb.mxu1 %v232_v32 }
  0x84   :  { %v71_v60 = vpop.f32.mrf.mxu0 }
  0x85   :  { %v72_v61 = vadd.f32 %v317_v59, %v71_v60 }
  0x87   :  { %v74_v62 = vmax.f32 %v72_v61, 0.0 }
  0x89   :  { %129 = vmatmul.f32.vlgmr.msra.gmra.mxu1 %v74_v62  ;;  %149 = vmatmul.f32.vlgmr.msra.gmra.mxu2 %v74_v62 }
 0x106   :  { %v130_v22 = vpop.f32.mrf.mxu1 }
 0x107   :  { %v131_v23 = vadd.f32 %v130_v22, %v109_v19 }
 0x109   :  { %v153_v24 = vmax.f32 %v131_v23, 0.0 }
 0x10b   :  { %207 = vmatmul.f32.vlgmr.msra.gmra.mxu3 %v153_v24 }
 0x10c   :  { %v150_v26 = vpop.f32.mrf.mxu2 }
 0x10d   :  { %v151_v27 = vadd.f32 %v150_v26, %v110_v25 }
 0x10f   :  { %v154_v28 = vmax.f32 %v151_v27, 0.0 }
 0x111   :  { %227 = vmatmul.f32.vlgmr.msrb.gmra.mxu0 %v154_v28 }
 0x18e   :  { %v208_v40 = vpop.f32.mrf.mxu3  ;;  %v228_v42 = vpop.f32.mrf.mxu0 }
 0x18f   :  { %v209_v41 = vadd.f32 %v318_v39, %v208_v40 }
 0x191   :  { %v229_v43 = vadd.f32 %v228_v42, %v209_v41 }
 0x193   :  { %v231_v44 = vmax.f32 %v229_v43, 0.0 }
 0x195   :  { %268 = vmatmul.f32.vlgmr.msrb.gmra.mxu1 %v231_v44 }
 0x212   :  { %v269_v48 = vpop.f32.mrf.mxu1 }
 0x213   :  { %v270_v49 = vadd.f32 %v319_v47, %v269_v48 }
 0x215   :  { %316 = vmatmul.msk.f32.vlgmr.msrb.gmra.mxu2 %vm284_vm2, %v270_v49 }
 0x298   :  { %v305_v51 = vpop.f32.mrf.mxu2 }
 0x299   :  { %v306_v52 = vadd.f32 %v320_v50, %v305_v51 }
 0x29b   :  { %309 = vst.msk [vmem:[%s686_s11] sm:$0x3f] %vm308_vm3, %v306_v52 }

</bundles_post_ra>
